<compile_context>
chip_gen: v5e
topology: v5e:2x2
jax: 0.10.0
libtpu: 0.0.40
codegen_flags: <defaults>
</compile_context>

<pallas_src>
import functools

import jax
import jax.numpy as jnp
from jax.experimental import pallas as pl
from jax.experimental.pallas import tpu as pltpu


def _resnet_block_kernel(x_ref, mask_ref, w0_ref, b0_ref, w1_ref, b1_ref,
                         out_ref, buf_ref, patch_ref, *, H, W, margin):
    """Fused h = relu(conv0(x)+b0); out = conv1(h)+b1 + x for one batch element.

    x_ref    : (1, C, P)          P = D*H*W, flat spatial on the lane axis
    mask_ref : (27, P)            {0,1} per-tap validity mask
    w0_ref   : (C, 27*C) bf16     fused conv0 weights, [o, k*C + i] = w0[k, i, o]
    b0_ref   : (C, 1)
    w1_ref   : (C, 27*C) bf16
    b1_ref   : (C, 1)
    out_ref  : (1, C, P)
    buf_ref  : (C, P + 2*margin)  VMEM scratch: flat margined activation (x, then h)
    patch_ref: (27*C, P)          VMEM scratch: im2col patch matrix
    """
    _, C, P = out_ref.shape
    HW = H * W
    offsets = [(od, oh, ow) for od in (-1, 0, 1) for oh in (-1, 0, 1)
               for ow in (-1, 0, 1)]

    def conv3(w_ref):
        # im2col: tap (od, oh, ow) is a lane shift of od*HW + oh*W + ow on the
        # flat spatial axis; the mask zeroes out-of-volume / row-wrapped reads.
        for k, (od, oh, ow) in enumerate(offsets):
            s = od * HW + oh * W + ow
            win = buf_ref[:, margin + s:margin + s + P]              # (C, P)
            patch_ref[k * C:(k + 1) * C, :] = win * mask_ref[k:k + 1, :]
        # Single MXU matmul per conv: (C, 27C) x (27C, P) -> (C, P), f32 acc.
        return jnp.dot(w_ref[...], patch_ref[...].astype(jnp.bfloat16),
                       preferred_element_type=jnp.float32)

    # Zero the flat margins once per step; interior writes never touch them, so
    # every masked (0 *) margin read stays finite afterwards.
    zeros_margin = jnp.zeros((C, margin), jnp.float32)
    buf_ref[:, :margin] = zeros_margin
    buf_ref[:, margin + P:] = zeros_margin

    x = x_ref[0]                                                      # (C, P)

    # ---------------- conv0 + bias + ReLU ----------------
    buf_ref[:, margin:margin + P] = x
    h = jnp.maximum(conv3(w0_ref) + b0_ref[...], 0.0)                 # (C, P)

    # ---------------- conv1 + bias + residual ----------------
    buf_ref[:, margin:margin + P] = h      # reuse the same margined buffer
    out = conv3(w1_ref) + b1_ref[...] + x
    out_ref[0] = out.astype(out_ref.dtype)


def _tap_masks(D, H, W):
    """(27, D*H*W) {0,1} float32: whether tap (od,oh,ow) stays inside the volume."""
    d = jnp.arange(D).reshape(D, 1, 1)
    h = jnp.arange(H).reshape(1, H, 1)
    w = jnp.arange(W).reshape(1, 1, W)
    rows = []
    for od in (-1, 0, 1):
        for oh in (-1, 0, 1):
            for ow in (-1, 0, 1):
                m = ((d + od >= 0) & (d + od < D) &
                     (h + oh >= 0) & (h + oh < H) &
                     (w + ow >= 0) & (w + ow < W))
                rows.append(m.reshape(-1))
    return jnp.stack(rows, axis=0).astype(jnp.float32)


@jax.jit
def resnet_block(x, w0, b0, w1, b1):
    """x: (N, C, D, H, W) float32; w*: (27, Cin, Cout); b*: (C,)."""
    N, C, D, H, W = x.shape
    P = D * H * W
    HW = H * W
    # Margin covers the largest tap shift (HW + W + 1), rounded up to a multiple
    # of 128 so the interior copy and margin zeroing stay lane-aligned.
    margin = ((HW + W + 1 + 127) // 128) * 128

    xf = x.reshape(N, C, P)                  # free reshape: spatial -> lane axis
    masks = _tap_masks(D, H, W)              # (27, P)
    # Fused im2col weights: [o, k*C + i] = w[k, i, o]; bf16 for the MXU.
    w0f = w0.transpose(2, 0, 1).reshape(C, 27 * C).astype(jnp.bfloat16)
    w1f = w1.transpose(2, 0, 1).reshape(C, 27 * C).astype(jnp.bfloat16)
    b0c = b0.reshape(C, 1)
    b1c = b1.reshape(C, 1)

    kernel = functools.partial(_resnet_block_kernel, H=H, W=W, margin=margin)

    grid_spec = pltpu.PrefetchScalarGridSpec(
        num_scalar_prefetch=0,
        grid=(N,),
        in_specs=[
            pl.BlockSpec((1, C, P), lambda n: (n, 0, 0)),
            pl.BlockSpec((27, P), lambda n: (0, 0)),
            pl.BlockSpec((C, 27 * C), lambda n: (0, 0)),
            pl.BlockSpec((C, 1), lambda n: (0, 0)),
            pl.BlockSpec((C, 27 * C), lambda n: (0, 0)),
            pl.BlockSpec((C, 1), lambda n: (0, 0)),
        ],
        out_specs=pl.BlockSpec((1, C, P), lambda n: (n, 0, 0)),
        scratch_shapes=[
            pltpu.VMEM((C, P + 2 * margin), jnp.float32),   # shared x/h buffer
            pltpu.VMEM((27 * C, P), jnp.float32),           # im2col patches
        ],
    )

    cost = pl.CostEstimate(
        flops=int(N * 2 * 2 * C * (27 * C) * P),     # 2 convs, MAC = 2 flops
        transcendentals=0,
        bytes_accessed=int(2 * N * C * P * 4 + 27 * P * 4 + 2 * C * 27 * C * 2),
    )

    out_flat = pl.pallas_call(
        kernel,
        out_shape=jax.ShapeDtypeStruct((N, C, P), x.dtype),
        grid_spec=grid_spec,
        compiler_params=pltpu.CompilerParams(
            dimension_semantics=("parallel",),
            vmem_limit_bytes=32 * 1024 * 1024),
        cost_estimate=cost,
    )(xf, masks, w0f, b0c, w1f, b1c)
    return out_flat.reshape(N, C, D, H, W)


def _reference(x, w0, b0, w1, b1):
    """Pure-JAX reference (lax.conv, f32) of the dense-grid ResNet block."""
    N, C, D, H, W = x.shape
    xl = jnp.transpose(x, (0, 2, 3, 4, 1))                     # NDHWC
    w0d = w0.reshape(3, 3, 3, C, C)
    w1d = w1.reshape(3, 3, 3, C, C)
    dn = jax.lax.conv_dimension_numbers(xl.shape, w0d.shape,
                                        ("NDHWC", "DHWIO", "NDHWC"))
    h = jax.lax.conv_general_dilated(xl, w0d, (1, 1, 1), "SAME",
                                     dimension_numbers=dn) + b0
    h = jnp.maximum(h, 0.0)
    y = jax.lax.conv_general_dilated(h, w1d, (1, 1, 1), "SAME",
                                     dimension_numbers=dn) + b1
    y = y + xl
    return jnp.transpose(y, (0, 4, 1, 2, 3))                   # back to NCDHW


if __name__ == "__main__":
    # Small shapes: batch=2, channels=8, 8^3 spatial grid, kernel_size=3, dimension=3.
    N, C, D, H, W = 2, 8, 8, 8, 8
    key = jax.random.PRNGKey(0)
    kx, k0, kb0, k1, kb1 = jax.random.split(key, 5)

    x = jax.random.normal(kx, (N, C, D, H, W), dtype=jnp.float32)
    fan_in = 27 * C
    w0 = jax.random.normal(k0, (27, C, C), dtype=jnp.float32) / jnp.sqrt(fan_in)
    b0 = jax.random.normal(kb0, (C,), dtype=jnp.float32) * 0.01
    w1 = jax.random.normal(k1, (27, C, C), dtype=jnp.float32) / jnp.sqrt(fan_in)
    b1 = jax.random.normal(kb1, (C,), dtype=jnp.float32) * 0.01

    out = jax.block_until_ready(resnet_block(x, w0, b0, w1, b1))
    ref = jax.block_until_ready(_reference(x, w0, b0, w1, b1))

    assert out.shape == (N, C, D, H, W)
    max_err = float(jnp.max(jnp.abs(out - ref)))
    # bf16 matmul operands (f32 accumulation) vs. f32 reference -> loosened tol.
    assert jnp.allclose(out, ref, rtol=5e-2, atol=5e-2), max_err
    print("KERNEL_OK")
</pallas_src>

<mosaic_0001>
module attributes {stable_mosaic.version = 11 : i64} {
  func.func @_resnet_block_kernel(%arg0: i32, %arg1: memref<1x8x512xf32, #tpu.memory_space<vmem>>, %arg2: memref<27x512xf32, #tpu.memory_space<vmem>>, %arg3: memref<8x216xbf16, #tpu.memory_space<vmem>>, %arg4: memref<8x1xf32, #tpu.memory_space<vmem>>, %arg5: memref<8x216xbf16, #tpu.memory_space<vmem>>, %arg6: memref<8x1xf32, #tpu.memory_space<vmem>>, %arg7: memref<1x8x512xf32, #tpu.memory_space<vmem>>, %arg8: memref<8x768xf32, #tpu.memory_space<vmem>>, %arg9: memref<216x512xf32, #tpu.memory_space<vmem>>) attributes {dimension_semantics = [#tpu.dimension_semantics<parallel>], iteration_bounds = array<i64: 2>, scalar_prefetch = 0 : i64, scratch_operands = 2 : i64, tpu.core_type = #tpu.core_type<tc>, window_params = [{transform_indices = @transform_0, window_bounds = array<i64: 1, 8, 512>}, {pipeline_mode = #tpu.pipeline_mode<synchronous>, transform_indices = @transform_1, window_bounds = array<i64: 27, 512>}, {pipeline_mode = #tpu.pipeline_mode<synchronous>, transform_indices = @transform_2, window_bounds = array<i64: 8, 216>}, {pipeline_mode = #tpu.pipeline_mode<synchronous>, transform_indices = @transform_3, window_bounds = array<i64: 8, 1>}, {pipeline_mode = #tpu.pipeline_mode<synchronous>, transform_indices = @transform_4, window_bounds = array<i64: 8, 216>}, {pipeline_mode = #tpu.pipeline_mode<synchronous>, transform_indices = @transform_5, window_bounds = array<i64: 8, 1>}, {transform_indices = @transform_6, window_bounds = array<i64: 1, 8, 512>}]} {
    %cst = arith.constant 0.000000e+00 : f32
    %0 = vector.broadcast %cst : f32 to vector<8x128xf32>
    %c0 = arith.constant 0 : index
    %c0_0 = arith.constant 0 : index
    %1 = vector.load %arg8[%c0, %c0_0] : memref<8x768xf32, #tpu.memory_space<vmem>>, vector<8x128xf32>
    tpu.vector_store %arg8[%c0, %c0_0], %0 {strides = array<i32>} : memref<8x768xf32, #tpu.memory_space<vmem>>, vector<8x128xf32>,
    %c0_1 = arith.constant 0 : index
    %c640 = arith.constant 640 : index
    %2 = vector.load %arg8[%c0_1, %c640] : memref<8x768xf32, #tpu.memory_space<vmem>>, vector<8x128xf32>
    tpu.vector_store %arg8[%c0_1, %c640], %0 {strides = array<i32>} : memref<8x768xf32, #tpu.memory_space<vmem>>, vector<8x128xf32>,
    %c0_2 = arith.constant 0 : index
    %c0_3 = arith.constant 0 : index
    %c0_4 = arith.constant 0 : index
    %3 = vector.load %arg1[%c0_2, %c0_3, %c0_4] : memref<1x8x512xf32, #tpu.memory_space<vmem>>, vector<1x8x512xf32>
    %4 = vector.shape_cast %3 : vector<1x8x512xf32> to vector<8x512xf32>
    %c0_5 = arith.constant 0 : index
    %c128 = arith.constant 128 : index
    %5 = vector.load %arg8[%c0_5, %c128] : memref<8x768xf32, #tpu.memory_space<vmem>>, vector<8x512xf32>
    tpu.vector_store %arg8[%c0_5, %c128], %4 {strides = array<i32>} : memref<8x768xf32, #tpu.memory_space<vmem>>, vector<8x512xf32>,
    %c0_6 = arith.constant 0 : index
    %c55 = arith.constant 55 : index
    %6 = vector.load %arg8[%c0_6, %c55] : memref<8x768xf32, #tpu.memory_space<vmem>>, vector<8x512xf32>
    %c0_7 = arith.constant 0 : index
    %c0_8 = arith.constant 0 : index
    %7 = vector.load %arg2[%c0_7, %c0_8] : memref<27x512xf32, #tpu.memory_space<vmem>>, vector<1x512xf32>
    %8 = vector.broadcast %7 : vector<1x512xf32> to vector<8x512xf32>
    %9 = arith.mulf %6, %8 : vector<8x512xf32>
    %c0_9 = arith.constant 0 : index
    %c0_10 = arith.constant 0 : index
    %10 = vector.load %arg9[%c0_9, %c0_10] : memref<216x512xf32, #tpu.memory_space<vmem>>, vector<8x512xf32>
    tpu.vector_store %arg9[%c0_9, %c0_10], %9 {strides = array<i32>} : memref<216x512xf32, #tpu.memory_space<vmem>>, vector<8x512xf32>,
    %c0_11 = arith.constant 0 : index
    %c56 = arith.constant 56 : index
    %11 = vector.load %arg8[%c0_11, %c56] : memref<8x768xf32, #tpu.memory_space<vmem>>, vector<8x512xf32>
    %c1 = arith.constant 1 : index
    %c0_12 = arith.constant 0 : index
    %12 = vector.load %arg2[%c1, %c0_12] : memref<27x512xf32, #tpu.memory_space<vmem>>, vector<1x512xf32>
    %13 = vector.broadcast %12 : vector<1x512xf32> to vector<8x512xf32>
    %14 = arith.mulf %11, %13 : vector<8x512xf32>
    %c8 = arith.constant 8 : index
    %c0_13 = arith.constant 0 : index
    %15 = vector.load %arg9[%c8, %c0_13] : memref<216x512xf32, #tpu.memory_space<vmem>>, vector<8x512xf32>
    tpu.vector_store %arg9[%c8, %c0_13], %14 {strides = array<i32>} : memref<216x512xf32, #tpu.memory_space<vmem>>, vector<8x512xf32>,
    %c0_14 = arith.constant 0 : index
    %c57 = arith.constant 57 : index
    %16 = vector.load %arg8[%c0_14, %c57] : memref<8x768xf32, #tpu.memory_space<vmem>>, vector<8x512xf32>
    %c2 = arith.constant 2 : index
    %c0_15 = arith.constant 0 : index
    %17 = vector.load %arg2[%c2, %c0_15] : memref<27x512xf32, #tpu.memory_space<vmem>>, vector<1x512xf32>
    %18 = vector.broadcast %17 : vector<1x512xf32> to vector<8x512xf32>
    %19 = arith.mulf %16, %18 : vector<8x512xf32>
    %c16 = arith.constant 16 : index
    %c0_16 = arith.constant 0 : index
    %20 = vector.load %arg9[%c16, %c0_16] : memref<216x512xf32, #tpu.memory_space<vmem>>, vector<8x512xf32>
    tpu.vector_store %arg9[%c16, %c0_16], %19 {strides = array<i32>} : memref<216x512xf32, #tpu.memory_space<vmem>>, vector<8x512xf32>,
    %c0_17 = arith.constant 0 : index
    %c63 = arith.constant 63 : index
    %21 = vector.load %arg8[%c0_17, %c63] : memref<8x768xf32, #tpu.memory_space<vmem>>, vector<8x512xf32>
    %c3 = arith.constant 3 : index
    %c0_18 = arith.constant 0 : index
    %22 = vector.load %arg2[%c3, %c0_18] : memref<27x512xf32, #tpu.memory_space<vmem>>, vector<1x512xf32>
    %23 = vector.broadcast %22 : vector<1x512xf32> to vector<8x512xf32>
    %24 = arith.mulf %21, %23 : vector<8x512xf32>
    %c24 = arith.constant 24 : index
    %c0_19 = arith.constant 0 : index
    %25 = vector.load %arg9[%c24, %c0_19] : memref<216x512xf32, #tpu.memory_space<vmem>>, vector<8x512xf32>
    tpu.vector_store %arg9[%c24, %c0_19], %24 {strides = array<i32>} : memref<216x512xf32, #tpu.memory_space<vmem>>, vector<8x512xf32>,
    %c0_20 = arith.constant 0 : index
    %c64 = arith.constant 64 : index
    %26 = vector.load %arg8[%c0_20, %c64] : memref<8x768xf32, #tpu.memory_space<vmem>>, vector<8x512xf32>
    %c4 = arith.constant 4 : index
    %c0_21 = arith.constant 0 : index
    %27 = vector.load %arg2[%c4, %c0_21] : memref<27x512xf32, #tpu.memory_space<vmem>>, vector<1x512xf32>
    %28 = vector.broadcast %27 : vector<1x512xf32> to vector<8x512xf32>
    %29 = arith.mulf %26, %28 : vector<8x512xf32>
    %c32 = arith.constant 32 : index
    %c0_22 = arith.constant 0 : index
    %30 = vector.load %arg9[%c32, %c0_22] : memref<216x512xf32, #tpu.memory_space<vmem>>, vector<8x512xf32>
    tpu.vector_store %arg9[%c32, %c0_22], %29 {strides = array<i32>} : memref<216x512xf32, #tpu.memory_space<vmem>>, vector<8x512xf32>,
    %c0_23 = arith.constant 0 : index
    %c65 = arith.constant 65 : index
    %31 = vector.load %arg8[%c0_23, %c65] : memref<8x768xf32, #tpu.memory_space<vmem>>, vector<8x512xf32>
    %c5 = arith.constant 5 : index
    %c0_24 = arith.constant 0 : index
    %32 = vector.load %arg2[%c5, %c0_24] : memref<27x512xf32, #tpu.memory_space<vmem>>, vector<1x512xf32>
    %33 = vector.broadcast %32 : vector<1x512xf32> to vector<8x512xf32>
    %34 = arith.mulf %31, %33 : vector<8x512xf32>
    %c40 = arith.constant 40 : index
    %c0_25 = arith.constant 0 : index
    %35 = vector.load %arg9[%c40, %c0_25] : memref<216x512xf32, #tpu.memory_space<vmem>>, vector<8x512xf32>
    tpu.vector_store %arg9[%c40, %c0_25], %34 {strides = array<i32>} : memref<216x512xf32, #tpu.memory_space<vmem>>, vector<8x512xf32>,
    %c0_26 = arith.constant 0 : index
    %c71 = arith.constant 71 : index
    %36 = vector.load %arg8[%c0_26, %c71] : memref<8x768xf32, #tpu.memory_space<vmem>>, vector<8x512xf32>
    %c6 = arith.constant 6 : index
    %c0_27 = arith.constant 0 : index
    %37 = vector.load %arg2[%c6, %c0_27] : memref<27x512xf32, #tpu.memory_space<vmem>>, vector<1x512xf32>
    %38 = vector.broadcast %37 : vector<1x512xf32> to vector<8x512xf32>
    %39 = arith.mulf %36, %38 : vector<8x512xf32>
    %c48 = arith.constant 48 : index
    %c0_28 = arith.constant 0 : index
    %40 = vector.load %arg9[%c48, %c0_28] : memref<216x512xf32, #tpu.memory_space<vmem>>, vector<8x512xf32>
    tpu.vector_store %arg9[%c48, %c0_28], %39 {strides = array<i32>} : memref<216x512xf32, #tpu.memory_space<vmem>>, vector<8x512xf32>,
    %c0_29 = arith.constant 0 : index
    %c72 = arith.constant 72 : index
    %41 = vector.load %arg8[%c0_29, %c72] : memref<8x768xf32, #tpu.memory_space<vmem>>, vector<8x512xf32>
    %c7 = arith.constant 7 : index
    %c0_30 = arith.constant 0 : index
    %42 = vector.load %arg2[%c7, %c0_30] : memref<27x512xf32, #tpu.memory_space<vmem>>, vector<1x512xf32>
    %43 = vector.broadcast %42 : vector<1x512xf32> to vector<8x512xf32>
    %44 = arith.mulf %41, %43 : vector<8x512xf32>
    %c56_31 = arith.constant 56 : index
    %c0_32 = arith.constant 0 : index
    %45 = vector.load %arg9[%c56_31, %c0_32] : memref<216x512xf32, #tpu.memory_space<vmem>>, vector<8x512xf32>
    tpu.vector_store %arg9[%c56_31, %c0_32], %44 {strides = array<i32>} : memref<216x512xf32, #tpu.memory_space<vmem>>, vector<8x512xf32>,
    %c0_33 = arith.constant 0 : index
    %c73 = arith.constant 73 : index
    %46 = vector.load %arg8[%c0_33, %c73] : memref<8x768xf32, #tpu.memory_space<vmem>>, vector<8x512xf32>
    %c8_34 = arith.constant 8 : index
    %c0_35 = arith.constant 0 : index
    %47 = vector.load %arg2[%c8_34, %c0_35] : memref<27x512xf32, #tpu.memory_space<vmem>>, vector<1x512xf32>
    %48 = vector.broadcast %47 : vector<1x512xf32> to vector<8x512xf32>
    %49 = arith.mulf %46, %48 : vector<8x512xf32>
    %c64_36 = arith.constant 64 : index
    %c0_37 = arith.constant 0 : index
    %50 = vector.load %arg9[%c64_36, %c0_37] : memref<216x512xf32, #tpu.memory_space<vmem>>, vector<8x512xf32>
    tpu.vector_store %arg9[%c64_36, %c0_37], %49 {strides = array<i32>} : memref<216x512xf32, #tpu.memory_space<vmem>>, vector<8x512xf32>,
    %c0_38 = arith.constant 0 : index
    %c119 = arith.constant 119 : index
    %51 = vector.load %arg8[%c0_38, %c119] : memref<8x768xf32, #tpu.memory_space<vmem>>, vector<8x512xf32>
    %c9 = arith.constant 9 : index
    %c0_39 = arith.constant 0 : index
    %52 = vector.load %arg2[%c9, %c0_39] : memref<27x512xf32, #tpu.memory_space<vmem>>, vector<1x512xf32>
    %53 = vector.broadcast %52 : vector<1x512xf32> to vector<8x512xf32>
    %54 = arith.mulf %51, %53 : vector<8x512xf32>
    %c72_40 = arith.constant 72 : index
    %c0_41 = arith.constant 0 : index
    %55 = vector.load %arg9[%c72_40, %c0_41] : memref<216x512xf32, #tpu.memory_space<vmem>>, vector<8x512xf32>
    tpu.vector_store %arg9[%c72_40, %c0_41], %54 {strides = array<i32>} : memref<216x512xf32, #tpu.memory_space<vmem>>, vector<8x512xf32>,
    %c0_42 = arith.constant 0 : index
    %c120 = arith.constant 120 : index
    %56 = vector.load %arg8[%c0_42, %c120] : memref<8x768xf32, #tpu.memory_space<vmem>>, vector<8x512xf32>
    %c10 = arith.constant 10 : index
    %c0_43 = arith.constant 0 : index
    %57 = vector.load %arg2[%c10, %c0_43] : memref<27x512xf32, #tpu.memory_space<vmem>>, vector<1x512xf32>
    %58 = vector.broadcast %57 : vector<1x512xf32> to vector<8x512xf32>
    %59 = arith.mulf %56, %58 : vector<8x512xf32>
    %c80 = arith.constant 80 : index
    %c0_44 = arith.constant 0 : index
    %60 = vector.load %arg9[%c80, %c0_44] : memref<216x512xf32, #tpu.memory_space<vmem>>, vector<8x512xf32>
    tpu.vector_store %arg9[%c80, %c0_44], %59 {strides = array<i32>} : memref<216x512xf32, #tpu.memory_space<vmem>>, vector<8x512xf32>,
    %c0_45 = arith.constant 0 : index
    %c121 = arith.constant 121 : index
    %61 = vector.load %arg8[%c0_45, %c121] : memref<8x768xf32, #tpu.memory_space<vmem>>, vector<8x512xf32>
    %c11 = arith.constant 11 : index
    %c0_46 = arith.constant 0 : index
    %62 = vector.load %arg2[%c11, %c0_46] : memref<27x512xf32, #tpu.memory_space<vmem>>, vector<1x512xf32>
    %63 = vector.broadcast %62 : vector<1x512xf32> to vector<8x512xf32>
    %64 = arith.mulf %61, %63 : vector<8x512xf32>
    %c88 = arith.constant 88 : index
    %c0_47 = arith.constant 0 : index
    %65 = vector.load %arg9[%c88, %c0_47] : memref<216x512xf32, #tpu.memory_space<vmem>>, vector<8x512xf32>
    tpu.vector_store %arg9[%c88, %c0_47], %64 {strides = array<i32>} : memref<216x512xf32, #tpu.memory_space<vmem>>, vector<8x512xf32>,
    %c0_48 = arith.constant 0 : index
    %c127 = arith.constant 127 : index
    %66 = vector.load %arg8[%c0_48, %c127] : memref<8x768xf32, #tpu.memory_space<vmem>>, vector<8x512xf32>
    %c12 = arith.constant 12 : index
    %c0_49 = arith.constant 0 : index
    %67 = vector.load %arg2[%c12, %c0_49] : memref<27x512xf32, #tpu.memory_space<vmem>>, vector<1x512xf32>
    %68 = vector.broadcast %67 : vector<1x512xf32> to vector<8x512xf32>
    %69 = arith.mulf %66, %68 : vector<8x512xf32>
    %c96 = arith.constant 96 : index
    %c0_50 = arith.constant 0 : index
    %70 = vector.load %arg9[%c96, %c0_50] : memref<216x512xf32, #tpu.memory_space<vmem>>, vector<8x512xf32>
    tpu.vector_store %arg9[%c96, %c0_50], %69 {strides = array<i32>} : memref<216x512xf32, #tpu.memory_space<vmem>>, vector<8x512xf32>,
    %c0_51 = arith.constant 0 : index
    %c128_52 = arith.constant 128 : index
    %71 = vector.load %arg8[%c0_51, %c128_52] : memref<8x768xf32, #tpu.memory_space<vmem>>, vector<8x512xf32>
    %c13 = arith.constant 13 : index
    %c0_53 = arith.constant 0 : index
    %72 = vector.load %arg2[%c13, %c0_53] : memref<27x512xf32, #tpu.memory_space<vmem>>, vector<1x512xf32>
    %73 = vector.broadcast %72 : vector<1x512xf32> to vector<8x512xf32>
    %74 = arith.mulf %71, %73 : vector<8x512xf32>
    %c104 = arith.constant 104 : index
    %c0_54 = arith.constant 0 : index
    %75 = vector.load %arg9[%c104, %c0_54] : memref<216x512xf32, #tpu.memory_space<vmem>>, vector<8x512xf32>
    tpu.vector_store %arg9[%c104, %c0_54], %74 {strides = array<i32>} : memref<216x512xf32, #tpu.memory_space<vmem>>, vector<8x512xf32>,
    %c0_55 = arith.constant 0 : index
    %c129 = arith.constant 129 : index
    %76 = vector.load %arg8[%c0_55, %c129] : memref<8x768xf32, #tpu.memory_space<vmem>>, vector<8x512xf32>
    %c14 = arith.constant 14 : index
    %c0_56 = arith.constant 0 : index
    %77 = vector.load %arg2[%c14, %c0_56] : memref<27x512xf32, #tpu.memory_space<vmem>>, vector<1x512xf32>
    %78 = vector.broadcast %77 : vector<1x512xf32> to vector<8x512xf32>
    %79 = arith.mulf %76, %78 : vector<8x512xf32>
    %c112 = arith.constant 112 : index
    %c0_57 = arith.constant 0 : index
    %80 = vector.load %arg9[%c112, %c0_57] : memref<216x512xf32, #tpu.memory_space<vmem>>, vector<8x512xf32>
    tpu.vector_store %arg9[%c112, %c0_57], %79 {strides = array<i32>} : memref<216x512xf32, #tpu.memory_space<vmem>>, vector<8x512xf32>,
    %c0_58 = arith.constant 0 : index
    %c135 = arith.constant 135 : index
    %81 = vector.load %arg8[%c0_58, %c135] : memref<8x768xf32, #tpu.memory_space<vmem>>, vector<8x512xf32>
    %c15 = arith.constant 15 : index
    %c0_59 = arith.constant 0 : index
    %82 = vector.load %arg2[%c15, %c0_59] : memref<27x512xf32, #tpu.memory_space<vmem>>, vector<1x512xf32>
    %83 = vector.broadcast %82 : vector<1x512xf32> to vector<8x512xf32>
    %84 = arith.mulf %81, %83 : vector<8x512xf32>
    %c120_60 = arith.constant 120 : index
    %c0_61 = arith.constant 0 : index
    %85 = vector.load %arg9[%c120_60, %c0_61] : memref<216x512xf32, #tpu.memory_space<vmem>>, vector<8x512xf32>
    tpu.vector_store %arg9[%c120_60, %c0_61], %84 {strides = array<i32>} : memref<216x512xf32, #tpu.memory_space<vmem>>, vector<8x512xf32>,
    %c0_62 = arith.constant 0 : index
    %c136 = arith.constant 136 : index
    %86 = vector.load %arg8[%c0_62, %c136] : memref<8x768xf32, #tpu.memory_space<vmem>>, vector<8x512xf32>
    %c16_63 = arith.constant 16 : index
    %c0_64 = arith.constant 0 : index
    %87 = vector.load %arg2[%c16_63, %c0_64] : memref<27x512xf32, #tpu.memory_space<vmem>>, vector<1x512xf32>
    %88 = vector.broadcast %87 : vector<1x512xf32> to vector<8x512xf32>
    %89 = arith.mulf %86, %88 : vector<8x512xf32>
    %c128_65 = arith.constant 128 : index
    %c0_66 = arith.constant 0 : index
    %90 = vector.load %arg9[%c128_65, %c0_66] : memref<216x512xf32, #tpu.memory_space<vmem>>, vector<8x512xf32>
    tpu.vector_store %arg9[%c128_65, %c0_66], %89 {strides = array<i32>} : memref<216x512xf32, #tpu.memory_space<vmem>>, vector<8x512xf32>,
    %c0_67 = arith.constant 0 : index
    %c137 = arith.constant 137 : index
    %91 = vector.load %arg8[%c0_67, %c137] : memref<8x768xf32, #tpu.memory_space<vmem>>, vector<8x512xf32>
    %c17 = arith.constant 17 : index
    %c0_68 = arith.constant 0 : index
    %92 = vector.load %arg2[%c17, %c0_68] : memref<27x512xf32, #tpu.memory_space<vmem>>, vector<1x512xf32>
    %93 = vector.broadcast %92 : vector<1x512xf32> to vector<8x512xf32>
    %94 = arith.mulf %91, %93 : vector<8x512xf32>
    %c136_69 = arith.constant 136 : index
    %c0_70 = arith.constant 0 : index
    %95 = vector.load %arg9[%c136_69, %c0_70] : memref<216x512xf32, #tpu.memory_space<vmem>>, vector<8x512xf32>
    tpu.vector_store %arg9[%c136_69, %c0_70], %94 {strides = array<i32>} : memref<216x512xf32, #tpu.memory_space<vmem>>, vector<8x512xf32>,
    %c0_71 = arith.constant 0 : index
    %c183 = arith.constant 183 : index
    %96 = vector.load %arg8[%c0_71, %c183] : memref<8x768xf32, #tpu.memory_space<vmem>>, vector<8x512xf32>
    %c18 = arith.constant 18 : index
    %c0_72 = arith.constant 0 : index
    %97 = vector.load %arg2[%c18, %c0_72] : memref<27x512xf32, #tpu.memory_space<vmem>>, vector<1x512xf32>
    %98 = vector.broadcast %97 : vector<1x512xf32> to vector<8x512xf32>
    %99 = arith.mulf %96, %98 : vector<8x512xf32>
    %c144 = arith.constant 144 : index
    %c0_73 = arith.constant 0 : index
    %100 = vector.load %arg9[%c144, %c0_73] : memref<216x512xf32, #tpu.memory_space<vmem>>, vector<8x512xf32>
    tpu.vector_store %arg9[%c144, %c0_73], %99 {strides = array<i32>} : memref<216x512xf32, #tpu.memory_space<vmem>>, vector<8x512xf32>,
    %c0_74 = arith.constant 0 : index
    %c184 = arith.constant 184 : index
    %101 = vector.load %arg8[%c0_74, %c184] : memref<8x768xf32, #tpu.memory_space<vmem>>, vector<8x512xf32>
    %c19 = arith.constant 19 : index
    %c0_75 = arith.constant 0 : index
    %102 = vector.load %arg2[%c19, %c0_75] : memref<27x512xf32, #tpu.memory_space<vmem>>, vector<1x512xf32>
    %103 = vector.broadcast %102 : vector<1x512xf32> to vector<8x512xf32>
    %104 = arith.mulf %101, %103 : vector<8x512xf32>
    %c152 = arith.constant 152 : index
    %c0_76 = arith.constant 0 : index
    %105 = vector.load %arg9[%c152, %c0_76] : memref<216x512xf32, #tpu.memory_space<vmem>>, vector<8x512xf32>
    tpu.vector_store %arg9[%c152, %c0_76], %104 {strides = array<i32>} : memref<216x512xf32, #tpu.memory_space<vmem>>, vector<8x512xf32>,
    %c0_77 = arith.constant 0 : index
    %c185 = arith.constant 185 : index
    %106 = vector.load %arg8[%c0_77, %c185] : memref<8x768xf32, #tpu.memory_space<vmem>>, vector<8x512xf32>
    %c20 = arith.constant 20 : index
    %c0_78 = arith.constant 0 : index
    %107 = vector.load %arg2[%c20, %c0_78] : memref<27x512xf32, #tpu.memory_space<vmem>>, vector<1x512xf32>
    %108 = vector.broadcast %107 : vector<1x512xf32> to vector<8x512xf32>
    %109 = arith.mulf %106, %108 : vector<8x512xf32>
    %c160 = arith.constant 160 : index
    %c0_79 = arith.constant 0 : index
    %110 = vector.load %arg9[%c160, %c0_79] : memref<216x512xf32, #tpu.memory_space<vmem>>, vector<8x512xf32>
    tpu.vector_store %arg9[%c160, %c0_79], %109 {strides = array<i32>} : memref<216x512xf32, #tpu.memory_space<vmem>>, vector<8x512xf32>,
    %c0_80 = arith.constant 0 : index
    %c191 = arith.constant 191 : index
    %111 = vector.load %arg8[%c0_80, %c191] : memref<8x768xf32, #tpu.memory_space<vmem>>, vector<8x512xf32>
    %c21 = arith.constant 21 : index
    %c0_81 = arith.constant 0 : index
    %112 = vector.load %arg2[%c21, %c0_81] : memref<27x512xf32, #tpu.memory_space<vmem>>, vector<1x512xf32>
    %113 = vector.broadcast %112 : vector<1x512xf32> to vector<8x512xf32>
    %114 = arith.mulf %111, %113 : vector<8x512xf32>
    %c168 = arith.constant 168 : index
    %c0_82 = arith.constant 0 : index
    %115 = vector.load %arg9[%c168, %c0_82] : memref<216x512xf32, #tpu.memory_space<vmem>>, vector<8x512xf32>
    tpu.vector_store %arg9[%c168, %c0_82], %114 {strides = array<i32>} : memref<216x512xf32, #tpu.memory_space<vmem>>, vector<8x512xf32>,
    %c0_83 = arith.constant 0 : index
    %c192 = arith.constant 192 : index
    %116 = vector.load %arg8[%c0_83, %c192] : memref<8x768xf32, #tpu.memory_space<vmem>>, vector<8x512xf32>
    %c22 = arith.constant 22 : index
    %c0_84 = arith.constant 0 : index
    %117 = vector.load %arg2[%c22, %c0_84] : memref<27x512xf32, #tpu.memory_space<vmem>>, vector<1x512xf32>
    %118 = vector.broadcast %117 : vector<1x512xf32> to vector<8x512xf32>
    %119 = arith.mulf %116, %118 : vector<8x512xf32>
    %c176 = arith.constant 176 : index
    %c0_85 = arith.constant 0 : index
    %120 = vector.load %arg9[%c176, %c0_85] : memref<216x512xf32, #tpu.memory_space<vmem>>, vector<8x512xf32>
    tpu.vector_store %arg9[%c176, %c0_85], %119 {strides = array<i32>} : memref<216x512xf32, #tpu.memory_space<vmem>>, vector<8x512xf32>,
    %c0_86 = arith.constant 0 : index
    %c193 = arith.constant 193 : index
    %121 = vector.load %arg8[%c0_86, %c193] : memref<8x768xf32, #tpu.memory_space<vmem>>, vector<8x512xf32>
    %c23 = arith.constant 23 : index
    %c0_87 = arith.constant 0 : index
    %122 = vector.load %arg2[%c23, %c0_87] : memref<27x512xf32, #tpu.memory_space<vmem>>, vector<1x512xf32>
    %123 = vector.broadcast %122 : vector<1x512xf32> to vector<8x512xf32>
    %124 = arith.mulf %121, %123 : vector<8x512xf32>
    %c184_88 = arith.constant 184 : index
    %c0_89 = arith.constant 0 : index
    %125 = vector.load %arg9[%c184_88, %c0_89] : memref<216x512xf32, #tpu.memory_space<vmem>>, vector<8x512xf32>
    tpu.vector_store %arg9[%c184_88, %c0_89], %124 {strides = array<i32>} : memref<216x512xf32, #tpu.memory_space<vmem>>, vector<8x512xf32>,
    %c0_90 = arith.constant 0 : index
    %c199 = arith.constant 199 : index
    %126 = vector.load %arg8[%c0_90, %c199] : memref<8x768xf32, #tpu.memory_space<vmem>>, vector<8x512xf32>
    %c24_91 = arith.constant 24 : index
    %c0_92 = arith.constant 0 : index
    %127 = vector.load %arg2[%c24_91, %c0_92] : memref<27x512xf32, #tpu.memory_space<vmem>>, vector<1x512xf32>
    %128 = vector.broadcast %127 : vector<1x512xf32> to vector<8x512xf32>
    %129 = arith.mulf %126, %128 : vector<8x512xf32>
    %c192_93 = arith.constant 192 : index
    %c0_94 = arith.constant 0 : index
    %130 = vector.load %arg9[%c192_93, %c0_94] : memref<216x512xf32, #tpu.memory_space<vmem>>, vector<8x512xf32>
    tpu.vector_store %arg9[%c192_93, %c0_94], %129 {strides = array<i32>} : memref<216x512xf32, #tpu.memory_space<vmem>>, vector<8x512xf32>,
    %c0_95 = arith.constant 0 : index
    %c200 = arith.constant 200 : index
    %131 = vector.load %arg8[%c0_95, %c200] : memref<8x768xf32, #tpu.memory_space<vmem>>, vector<8x512xf32>
    %c25 = arith.constant 25 : index
    %c0_96 = arith.constant 0 : index
    %132 = vector.load %arg2[%c25, %c0_96] : memref<27x512xf32, #tpu.memory_space<vmem>>, vector<1x512xf32>
    %133 = vector.broadcast %132 : vector<1x512xf32> to vector<8x512xf32>
    %134 = arith.mulf %131, %133 : vector<8x512xf32>
    %c200_97 = arith.constant 200 : index
    %c0_98 = arith.constant 0 : index
    %135 = vector.load %arg9[%c200_97, %c0_98] : memref<216x512xf32, #tpu.memory_space<vmem>>, vector<8x512xf32>
    tpu.vector_store %arg9[%c200_97, %c0_98], %134 {strides = array<i32>} : memref<216x512xf32, #tpu.memory_space<vmem>>, vector<8x512xf32>,
    %c0_99 = arith.constant 0 : index
    %c201 = arith.constant 201 : index
    %136 = vector.load %arg8[%c0_99, %c201] : memref<8x768xf32, #tpu.memory_space<vmem>>, vector<8x512xf32>
    %c26 = arith.constant 26 : index
    %c0_100 = arith.constant 0 : index
    %137 = vector.load %arg2[%c26, %c0_100] : memref<27x512xf32, #tpu.memory_space<vmem>>, vector<1x512xf32>
    %138 = vector.broadcast %137 : vector<1x512xf32> to vector<8x512xf32>
    %139 = arith.mulf %136, %138 : vector<8x512xf32>
    %c208 = arith.constant 208 : index
    %c0_101 = arith.constant 0 : index
    %140 = vector.load %arg9[%c208, %c0_101] : memref<216x512xf32, #tpu.memory_space<vmem>>, vector<8x512xf32>
    tpu.vector_store %arg9[%c208, %c0_101], %139 {strides = array<i32>} : memref<216x512xf32, #tpu.memory_space<vmem>>, vector<8x512xf32>,
    %c0_102 = arith.constant 0 : index
    %c0_103 = arith.constant 0 : index
    %141 = vector.load %arg3[%c0_102, %c0_103] : memref<8x216xbf16, #tpu.memory_space<vmem>>, vector<8x216xbf16>
    %c0_104 = arith.constant 0 : index
    %c0_105 = arith.constant 0 : index
    %142 = vector.load %arg9[%c0_104, %c0_105] : memref<216x512xf32, #tpu.memory_space<vmem>>, vector<216x512xf32>
    %143 = arith.truncf %142 : vector<216x512xf32> to vector<216x512xbf16>
    %cst_106 = arith.constant dense<0.000000e+00> : vector<8x512xf32>
    %144 = tpu.matmul %141, %143, %cst_106 {dimension_numbers = #tpu.dot_dimension_numbers<[1], [0], [0], [1], [0, 0, 1, 1], [], []>} : vector<8x216xbf16>, vector<216x512xbf16>, vector<8x512xf32> -> vector<8x512xf32>
    %c0_107 = arith.constant 0 : index
    %c0_108 = arith.constant 0 : index
    %145 = vector.load %arg4[%c0_107, %c0_108] : memref<8x1xf32, #tpu.memory_space<vmem>>, vector<8x1xf32>
    %146 = vector.broadcast %145 : vector<8x1xf32> to vector<8x512xf32>
    %147 = arith.addf %144, %146 : vector<8x512xf32>
    %cst_109 = arith.constant 0.000000e+00 : f32
    %148 = vector.broadcast %cst_109 : f32 to vector<8x512xf32>
    %149 = arith.maximumf %147, %148 : vector<8x512xf32>
    %c0_110 = arith.constant 0 : index
    %c128_111 = arith.constant 128 : index
    %150 = vector.load %arg8[%c0_110, %c128_111] : memref<8x768xf32, #tpu.memory_space<vmem>>, vector<8x512xf32>
    tpu.vector_store %arg8[%c0_110, %c128_111], %149 {strides = array<i32>} : memref<8x768xf32, #tpu.memory_space<vmem>>, vector<8x512xf32>,
    %c0_112 = arith.constant 0 : index
    %c55_113 = arith.constant 55 : index
    %151 = vector.load %arg8[%c0_112, %c55_113] : memref<8x768xf32, #tpu.memory_space<vmem>>, vector<8x512xf32>
    %c0_114 = arith.constant 0 : index
    %c0_115 = arith.constant 0 : index
    %152 = vector.load %arg2[%c0_114, %c0_115] : memref<27x512xf32, #tpu.memory_space<vmem>>, vector<1x512xf32>
    %153 = vector.broadcast %152 : vector<1x512xf32> to vector<8x512xf32>
    %154 = arith.mulf %151, %153 : vector<8x512xf32>
    %c0_116 = arith.constant 0 : index
    %c0_117 = arith.constant 0 : index
    %155 = vector.load %arg9[%c0_116, %c0_117] : memref<216x512xf32, #tpu.memory_space<vmem>>, vector<8x512xf32>
    tpu.vector_store %arg9[%c0_116, %c0_117], %154 {strides = array<i32>} : memref<216x512xf32, #tpu.memory_space<vmem>>, vector<8x512xf32>,
    %c0_118 = arith.constant 0 : index
    %c56_119 = arith.constant 56 : index
    %156 = vector.load %arg8[%c0_118, %c56_119] : memref<8x768xf32, #tpu.memory_space<vmem>>, vector<8x512xf32>
    %c1_120 = arith.constant 1 : index
    %c0_121 = arith.constant 0 : index
    %157 = vector.load %arg2[%c1_120, %c0_121] : memref<27x512xf32, #tpu.memory_space<vmem>>, vector<1x512xf32>
    %158 = vector.broadcast %157 : vector<1x512xf32> to vector<8x512xf32>
    %159 = arith.mulf %156, %158 : vector<8x512xf32>
    %c8_122 = arith.constant 8 : index
    %c0_123 = arith.constant 0 : index
    %160 = vector.load %arg9[%c8_122, %c0_123] : memref<216x512xf32, #tpu.memory_space<vmem>>, vector<8x512xf32>
    tpu.vector_store %arg9[%c8_122, %c0_123], %159 {strides = array<i32>} : memref<216x512xf32, #tpu.memory_space<vmem>>, vector<8x512xf32>,
    %c0_124 = arith.constant 0 : index
    %c57_125 = arith.constant 57 : index
    %161 = vector.load %arg8[%c0_124, %c57_125] : memref<8x768xf32, #tpu.memory_space<vmem>>, vector<8x512xf32>
    %c2_126 = arith.constant 2 : index
    %c0_127 = arith.constant 0 : index
    %162 = vector.load %arg2[%c2_126, %c0_127] : memref<27x512xf32, #tpu.memory_space<vmem>>, vector<1x512xf32>
    %163 = vector.broadcast %162 : vector<1x512xf32> to vector<8x512xf32>
    %164 = arith.mulf %161, %163 : vector<8x512xf32>
    %c16_128 = arith.constant 16 : index
    %c0_129 = arith.constant 0 : index
    %165 = vector.load %arg9[%c16_128, %c0_129] : memref<216x512xf32, #tpu.memory_space<vmem>>, vector<8x512xf32>
    tpu.vector_store %arg9[%c16_128, %c0_129], %164 {strides = array<i32>} : memref<216x512xf32, #tpu.memory_space<vmem>>, vector<8x512xf32>,
    %c0_130 = arith.constant 0 : index
    %c63_131 = arith.constant 63 : index
    %166 = vector.load %arg8[%c0_130, %c63_131] : memref<8x768xf32, #tpu.memory_space<vmem>>, vector<8x512xf32>
    %c3_132 = arith.constant 3 : index
    %c0_133 = arith.constant 0 : index
    %167 = vector.load %arg2[%c3_132, %c0_133] : memref<27x512xf32, #tpu.memory_space<vmem>>, vector<1x512xf32>
    %168 = vector.broadcast %167 : vector<1x512xf32> to vector<8x512xf32>
    %169 = arith.mulf %166, %168 : vector<8x512xf32>
    %c24_134 = arith.constant 24 : index
    %c0_135 = arith.constant 0 : index
    %170 = vector.load %arg9[%c24_134, %c0_135] : memref<216x512xf32, #tpu.memory_space<vmem>>, vector<8x512xf32>
    tpu.vector_store %arg9[%c24_134, %c0_135], %169 {strides = array<i32>} : memref<216x512xf32, #tpu.memory_space<vmem>>, vector<8x512xf32>,
    %c0_136 = arith.constant 0 : index
    %c64_137 = arith.constant 64 : index
    %171 = vector.load %arg8[%c0_136, %c64_137] : memref<8x768xf32, #tpu.memory_space<vmem>>, vector<8x512xf32>
    %c4_138 = arith.constant 4 : index
    %c0_139 = arith.constant 0 : index
    %172 = vector.load %arg2[%c4_138, %c0_139] : memref<27x512xf32, #tpu.memory_space<vmem>>, vector<1x512xf32>
    %173 = vector.broadcast %172 : vector<1x512xf32> to vector<8x512xf32>
    %174 = arith.mulf %171, %173 : vector<8x512xf32>
    %c32_140 = arith.constant 32 : index
    %c0_141 = arith.constant 0 : index
    %175 = vector.load %arg9[%c32_140, %c0_141] : memref<216x512xf32, #tpu.memory_space<vmem>>, vector<8x512xf32>
    tpu.vector_store %arg9[%c32_140, %c0_141], %174 {strides = array<i32>} : memref<216x512xf32, #tpu.memory_space<vmem>>, vector<8x512xf32>,
    %c0_142 = arith.constant 0 : index
    %c65_143 = arith.constant 65 : index
    %176 = vector.load %arg8[%c0_142, %c65_143] : memref<8x768xf32, #tpu.memory_space<vmem>>, vector<8x512xf32>
    %c5_144 = arith.constant 5 : index
    %c0_145 = arith.constant 0 : index
    %177 = vector.load %arg2[%c5_144, %c0_145] : memref<27x512xf32, #tpu.memory_space<vmem>>, vector<1x512xf32>
    %178 = vector.broadcast %177 : vector<1x512xf32> to vector<8x512xf32>
    %179 = arith.mulf %176, %178 : vector<8x512xf32>
    %c40_146 = arith.constant 40 : index
    %c0_147 = arith.constant 0 : index
    %180 = vector.load %arg9[%c40_146, %c0_147] : memref<216x512xf32, #tpu.memory_space<vmem>>, vector<8x512xf32>
    tpu.vector_store %arg9[%c40_146, %c0_147], %179 {strides = array<i32>} : memref<216x512xf32, #tpu.memory_space<vmem>>, vector<8x512xf32>,
    %c0_148 = arith.constant 0 : index
    %c71_149 = arith.constant 71 : index
    %181 = vector.load %arg8[%c0_148, %c71_149] : memref<8x768xf32, #tpu.memory_space<vmem>>, vector<8x512xf32>
    %c6_150 = arith.constant 6 : index
    %c0_151 = arith.constant 0 : index
    %182 = vector.load %arg2[%c6_150, %c0_151] : memref<27x512xf32, #tpu.memory_space<vmem>>, vector<1x512xf32>
    %183 = vector.broadcast %182 : vector<1x512xf32> to vector<8x512xf32>
    %184 = arith.mulf %181, %183 : vector<8x512xf32>
    %c48_152 = arith.constant 48 : index
    %c0_153 = arith.constant 0 : index
    %185 = vector.load %arg9[%c48_152, %c0_153] : memref<216x512xf32, #tpu.memory_space<vmem>>, vector<8x512xf32>
    tpu.vector_store %arg9[%c48_152, %c0_153], %184 {strides = array<i32>} : memref<216x512xf32, #tpu.memory_space<vmem>>, vector<8x512xf32>,
    %c0_154 = arith.constant 0 : index
    %c72_155 = arith.constant 72 : index
    %186 = vector.load %arg8[%c0_154, %c72_155] : memref<8x768xf32, #tpu.memory_space<vmem>>, vector<8x512xf32>
    %c7_156 = arith.constant 7 : index
    %c0_157 = arith.constant 0 : index
    %187 = vector.load %arg2[%c7_156, %c0_157] : memref<27x512xf32, #tpu.memory_space<vmem>>, vector<1x512xf32>
    %188 = vector.broadcast %187 : vector<1x512xf32> to vector<8x512xf32>
    %189 = arith.mulf %186, %188 : vector<8x512xf32>
    %c56_158 = arith.constant 56 : index
    %c0_159 = arith.constant 0 : index
    %190 = vector.load %arg9[%c56_158, %c0_159] : memref<216x512xf32, #tpu.memory_space<vmem>>, vector<8x512xf32>
    tpu.vector_store %arg9[%c56_158, %c0_159], %189 {strides = array<i32>} : memref<216x512xf32, #tpu.memory_space<vmem>>, vector<8x512xf32>,
    %c0_160 = arith.constant 0 : index
    %c73_161 = arith.constant 73 : index
    %191 = vector.load %arg8[%c0_160, %c73_161] : memref<8x768xf32, #tpu.memory_space<vmem>>, vector<8x512xf32>
    %c8_162 = arith.constant 8 : index
    %c0_163 = arith.constant 0 : index
    %192 = vector.load %arg2[%c8_162, %c0_163] : memref<27x512xf32, #tpu.memory_space<vmem>>, vector<1x512xf32>
    %193 = vector.broadcast %192 : vector<1x512xf32> to vector<8x512xf32>
    %194 = arith.mulf %191, %193 : vector<8x512xf32>
    %c64_164 = arith.constant 64 : index
    %c0_165 = arith.constant 0 : index
    %195 = vector.load %arg9[%c64_164, %c0_165] : memref<216x512xf32, #tpu.memory_space<vmem>>, vector<8x512xf32>
    tpu.vector_store %arg9[%c64_164, %c0_165], %194 {strides = array<i32>} : memref<216x512xf32, #tpu.memory_space<vmem>>, vector<8x512xf32>,
    %c0_166 = arith.constant 0 : index
    %c119_167 = arith.constant 119 : index
    %196 = vector.load %arg8[%c0_166, %c119_167] : memref<8x768xf32, #tpu.memory_space<vmem>>, vector<8x512xf32>
    %c9_168 = arith.constant 9 : index
    %c0_169 = arith.constant 0 : index
    %197 = vector.load %arg2[%c9_168, %c0_169] : memref<27x512xf32, #tpu.memory_space<vmem>>, vector<1x512xf32>
    %198 = vector.broadcast %197 : vector<1x512xf32> to vector<8x512xf32>
    %199 = arith.mulf %196, %198 : vector<8x512xf32>
    %c72_170 = arith.constant 72 : index
    %c0_171 = arith.constant 0 : index
    %200 = vector.load %arg9[%c72_170, %c0_171] : memref<216x512xf32, #tpu.memory_space<vmem>>, vector<8x512xf32>
    tpu.vector_store %arg9[%c72_170, %c0_171], %199 {strides = array<i32>} : memref<216x512xf32, #tpu.memory_space<vmem>>, vector<8x512xf32>,
    %c0_172 = arith.constant 0 : index
    %c120_173 = arith.constant 120 : index
    %201 = vector.load %arg8[%c0_172, %c120_173] : memref<8x768xf32, #tpu.memory_space<vmem>>, vector<8x512xf32>
    %c10_174 = arith.constant 10 : index
    %c0_175 = arith.constant 0 : index
    %202 = vector.load %arg2[%c10_174, %c0_175] : memref<27x512xf32, #tpu.memory_space<vmem>>, vector<1x512xf32>
    %203 = vector.broadcast %202 : vector<1x512xf32> to vector<8x512xf32>
    %204 = arith.mulf %201, %203 : vector<8x512xf32>
    %c80_176 = arith.constant 80 : index
    %c0_177 = arith.constant 0 : index
    %205 = vector.load %arg9[%c80_176, %c0_177] : memref<216x512xf32, #tpu.memory_space<vmem>>, vector<8x512xf32>
    tpu.vector_store %arg9[%c80_176, %c0_177], %204 {strides = array<i32>} : memref<216x512xf32, #tpu.memory_space<vmem>>, vector<8x512xf32>,
    %c0_178 = arith.constant 0 : index
    %c121_179 = arith.constant 121 : index
    %206 = vector.load %arg8[%c0_178, %c121_179] : memref<8x768xf32, #tpu.memory_space<vmem>>, vector<8x512xf32>
    %c11_180 = arith.constant 11 : index
    %c0_181 = arith.constant 0 : index
    %207 = vector.load %arg2[%c11_180, %c0_181] : memref<27x512xf32, #tpu.memory_space<vmem>>, vector<1x512xf32>
    %208 = vector.broadcast %207 : vector<1x512xf32> to vector<8x512xf32>
    %209 = arith.mulf %206, %208 : vector<8x512xf32>
    %c88_182 = arith.constant 88 : index
    %c0_183 = arith.constant 0 : index
    %210 = vector.load %arg9[%c88_182, %c0_183] : memref<216x512xf32, #tpu.memory_space<vmem>>, vector<8x512xf32>
    tpu.vector_store %arg9[%c88_182, %c0_183], %209 {strides = array<i32>} : memref<216x512xf32, #tpu.memory_space<vmem>>, vector<8x512xf32>,
    %c0_184 = arith.constant 0 : index
    %c127_185 = arith.constant 127 : index
    %211 = vector.load %arg8[%c0_184, %c127_185] : memref<8x768xf32, #tpu.memory_space<vmem>>, vector<8x512xf32>
    %c12_186 = arith.constant 12 : index
    %c0_187 = arith.constant 0 : index
    %212 = vector.load %arg2[%c12_186, %c0_187] : memref<27x512xf32, #tpu.memory_space<vmem>>, vector<1x512xf32>
    %213 = vector.broadcast %212 : vector<1x512xf32> to vector<8x512xf32>
    %214 = arith.mulf %211, %213 : vector<8x512xf32>
    %c96_188 = arith.constant 96 : index
    %c0_189 = arith.constant 0 : index
    %215 = vector.load %arg9[%c96_188, %c0_189] : memref<216x512xf32, #tpu.memory_space<vmem>>, vector<8x512xf32>
    tpu.vector_store %arg9[%c96_188, %c0_189], %214 {strides = array<i32>} : memref<216x512xf32, #tpu.memory_space<vmem>>, vector<8x512xf32>,
    %c0_190 = arith.constant 0 : index
    %c128_191 = arith.constant 128 : index
    %216 = vector.load %arg8[%c0_190, %c128_191] : memref<8x768xf32, #tpu.memory_space<vmem>>, vector<8x512xf32>
    %c13_192 = arith.constant 13 : index
    %c0_193 = arith.constant 0 : index
    %217 = vector.load %arg2[%c13_192, %c0_193] : memref<27x512xf32, #tpu.memory_space<vmem>>, vector<1x512xf32>
    %218 = vector.broadcast %217 : vector<1x512xf32> to vector<8x512xf32>
    %219 = arith.mulf %216, %218 : vector<8x512xf32>
    %c104_194 = arith.constant 104 : index
    %c0_195 = arith.constant 0 : index
    %220 = vector.load %arg9[%c104_194, %c0_195] : memref<216x512xf32, #tpu.memory_space<vmem>>, vector<8x512xf32>
    tpu.vector_store %arg9[%c104_194, %c0_195], %219 {strides = array<i32>} : memref<216x512xf32, #tpu.memory_space<vmem>>, vector<8x512xf32>,
    %c0_196 = arith.constant 0 : index
    %c129_197 = arith.constant 129 : index
    %221 = vector.load %arg8[%c0_196, %c129_197] : memref<8x768xf32, #tpu.memory_space<vmem>>, vector<8x512xf32>
    %c14_198 = arith.constant 14 : index
    %c0_199 = arith.constant 0 : index
    %222 = vector.load %arg2[%c14_198, %c0_199] : memref<27x512xf32, #tpu.memory_space<vmem>>, vector<1x512xf32>
    %223 = vector.broadcast %222 : vector<1x512xf32> to vector<8x512xf32>
    %224 = arith.mulf %221, %223 : vector<8x512xf32>
    %c112_200 = arith.constant 112 : index
    %c0_201 = arith.constant 0 : index
    %225 = vector.load %arg9[%c112_200, %c0_201] : memref<216x512xf32, #tpu.memory_space<vmem>>, vector<8x512xf32>
    tpu.vector_store %arg9[%c112_200, %c0_201], %224 {strides = array<i32>} : memref<216x512xf32, #tpu.memory_space<vmem>>, vector<8x512xf32>,
    %c0_202 = arith.constant 0 : index
    %c135_203 = arith.constant 135 : index
    %226 = vector.load %arg8[%c0_202, %c135_203] : memref<8x768xf32, #tpu.memory_space<vmem>>, vector<8x512xf32>
    %c15_204 = arith.constant 15 : index
    %c0_205 = arith.constant 0 : index
    %227 = vector.load %arg2[%c15_204, %c0_205] : memref<27x512xf32, #tpu.memory_space<vmem>>, vector<1x512xf32>
    %228 = vector.broadcast %227 : vector<1x512xf32> to vector<8x512xf32>
    %229 = arith.mulf %226, %228 : vector<8x512xf32>
    %c120_206 = arith.constant 120 : index
    %c0_207 = arith.constant 0 : index
    %230 = vector.load %arg9[%c120_206, %c0_207] : memref<216x512xf32, #tpu.memory_space<vmem>>, vector<8x512xf32>
    tpu.vector_store %arg9[%c120_206, %c0_207], %229 {strides = array<i32>} : memref<216x512xf32, #tpu.memory_space<vmem>>, vector<8x512xf32>,
    %c0_208 = arith.constant 0 : index
    %c136_209 = arith.constant 136 : index
    %231 = vector.load %arg8[%c0_208, %c136_209] : memref<8x768xf32, #tpu.memory_space<vmem>>, vector<8x512xf32>
    %c16_210 = arith.constant 16 : index
    %c0_211 = arith.constant 0 : index
    %232 = vector.load %arg2[%c16_210, %c0_211] : memref<27x512xf32, #tpu.memory_space<vmem>>, vector<1x512xf32>
    %233 = vector.broadcast %232 : vector<1x512xf32> to vector<8x512xf32>
    %234 = arith.mulf %231, %233 : vector<8x512xf32>
    %c128_212 = arith.constant 128 : index
    %c0_213 = arith.constant 0 : index
    %235 = vector.load %arg9[%c128_212, %c0_213] : memref<216x512xf32, #tpu.memory_space<vmem>>, vector<8x512xf32>
    tpu.vector_store %arg9[%c128_212, %c0_213], %234 {strides = array<i32>} : memref<216x512xf32, #tpu.memory_space<vmem>>, vector<8x512xf32>,
    %c0_214 = arith.constant 0 : index
    %c137_215 = arith.constant 137 : index
    %236 = vector.load %arg8[%c0_214, %c137_215] : memref<8x768xf32, #tpu.memory_space<vmem>>, vector<8x512xf32>
    %c17_216 = arith.constant 17 : index
    %c0_217 = arith.constant 0 : index
    %237 = vector.load %arg2[%c17_216, %c0_217] : memref<27x512xf32, #tpu.memory_space<vmem>>, vector<1x512xf32>
    %238 = vector.broadcast %237 : vector<1x512xf32> to vector<8x512xf32>
    %239 = arith.mulf %236, %238 : vector<8x512xf32>
    %c136_218 = arith.constant 136 : index
    %c0_219 = arith.constant 0 : index
    %240 = vector.load %arg9[%c136_218, %c0_219] : memref<216x512xf32, #tpu.memory_space<vmem>>, vector<8x512xf32>
    tpu.vector_store %arg9[%c136_218, %c0_219], %239 {strides = array<i32>} : memref<216x512xf32, #tpu.memory_space<vmem>>, vector<8x512xf32>,
    %c0_220 = arith.constant 0 : index
    %c183_221 = arith.constant 183 : index
    %241 = vector.load %arg8[%c0_220, %c183_221] : memref<8x768xf32, #tpu.memory_space<vmem>>, vector<8x512xf32>
    %c18_222 = arith.constant 18 : index
    %c0_223 = arith.constant 0 : index
    %242 = vector.load %arg2[%c18_222, %c0_223] : memref<27x512xf32, #tpu.memory_space<vmem>>, vector<1x512xf32>
    %243 = vector.broadcast %242 : vector<1x512xf32> to vector<8x512xf32>
    %244 = arith.mulf %241, %243 : vector<8x512xf32>
    %c144_224 = arith.constant 144 : index
    %c0_225 = arith.constant 0 : index
    %245 = vector.load %arg9[%c144_224, %c0_225] : memref<216x512xf32, #tpu.memory_space<vmem>>, vector<8x512xf32>
    tpu.vector_store %arg9[%c144_224, %c0_225], %244 {strides = array<i32>} : memref<216x512xf32, #tpu.memory_space<vmem>>, vector<8x512xf32>,
    %c0_226 = arith.constant 0 : index
    %c184_227 = arith.constant 184 : index
    %246 = vector.load %arg8[%c0_226, %c184_227] : memref<8x768xf32, #tpu.memory_space<vmem>>, vector<8x512xf32>
    %c19_228 = arith.constant 19 : index
    %c0_229 = arith.constant 0 : index
    %247 = vector.load %arg2[%c19_228, %c0_229] : memref<27x512xf32, #tpu.memory_space<vmem>>, vector<1x512xf32>
    %248 = vector.broadcast %247 : vector<1x512xf32> to vector<8x512xf32>
    %249 = arith.mulf %246, %248 : vector<8x512xf32>
    %c152_230 = arith.constant 152 : index
    %c0_231 = arith.constant 0 : index
    %250 = vector.load %arg9[%c152_230, %c0_231] : memref<216x512xf32, #tpu.memory_space<vmem>>, vector<8x512xf32>
    tpu.vector_store %arg9[%c152_230, %c0_231], %249 {strides = array<i32>} : memref<216x512xf32, #tpu.memory_space<vmem>>, vector<8x512xf32>,
    %c0_232 = arith.constant 0 : index
    %c185_233 = arith.constant 185 : index
    %251 = vector.load %arg8[%c0_232, %c185_233] : memref<8x768xf32, #tpu.memory_space<vmem>>, vector<8x512xf32>
    %c20_234 = arith.constant 20 : index
    %c0_235 = arith.constant 0 : index
    %252 = vector.load %arg2[%c20_234, %c0_235] : memref<27x512xf32, #tpu.memory_space<vmem>>, vector<1x512xf32>
    %253 = vector.broadcast %252 : vector<1x512xf32> to vector<8x512xf32>
    %254 = arith.mulf %251, %253 : vector<8x512xf32>
    %c160_236 = arith.constant 160 : index
    %c0_237 = arith.constant 0 : index
    %255 = vector.load %arg9[%c160_236, %c0_237] : memref<216x512xf32, #tpu.memory_space<vmem>>, vector<8x512xf32>
    tpu.vector_store %arg9[%c160_236, %c0_237], %254 {strides = array<i32>} : memref<216x512xf32, #tpu.memory_space<vmem>>, vector<8x512xf32>,
    %c0_238 = arith.constant 0 : index
    %c191_239 = arith.constant 191 : index
    %256 = vector.load %arg8[%c0_238, %c191_239] : memref<8x768xf32, #tpu.memory_space<vmem>>, vector<8x512xf32>
    %c21_240 = arith.constant 21 : index
    %c0_241 = arith.constant 0 : index
    %257 = vector.load %arg2[%c21_240, %c0_241] : memref<27x512xf32, #tpu.memory_space<vmem>>, vector<1x512xf32>
    %258 = vector.broadcast %257 : vector<1x512xf32> to vector<8x512xf32>
    %259 = arith.mulf %256, %258 : vector<8x512xf32>
    %c168_242 = arith.constant 168 : index
    %c0_243 = arith.constant 0 : index
    %260 = vector.load %arg9[%c168_242, %c0_243] : memref<216x512xf32, #tpu.memory_space<vmem>>, vector<8x512xf32>
    tpu.vector_store %arg9[%c168_242, %c0_243], %259 {strides = array<i32>} : memref<216x512xf32, #tpu.memory_space<vmem>>, vector<8x512xf32>,
    %c0_244 = arith.constant 0 : index
    %c192_245 = arith.constant 192 : index
    %261 = vector.load %arg8[%c0_244, %c192_245] : memref<8x768xf32, #tpu.memory_space<vmem>>, vector<8x512xf32>
    %c22_246 = arith.constant 22 : index
    %c0_247 = arith.constant 0 : index
    %262 = vector.load %arg2[%c22_246, %c0_247] : memref<27x512xf32, #tpu.memory_space<vmem>>, vector<1x512xf32>
    %263 = vector.broadcast %262 : vector<1x512xf32> to vector<8x512xf32>
    %264 = arith.mulf %261, %263 : vector<8x512xf32>
    %c176_248 = arith.constant 176 : index
    %c0_249 = arith.constant 0 : index
    %265 = vector.load %arg9[%c176_248, %c0_249] : memref<216x512xf32, #tpu.memory_space<vmem>>, vector<8x512xf32>
    tpu.vector_store %arg9[%c176_248, %c0_249], %264 {strides = array<i32>} : memref<216x512xf32, #tpu.memory_space<vmem>>, vector<8x512xf32>,
    %c0_250 = arith.constant 0 : index
    %c193_251 = arith.constant 193 : index
    %266 = vector.load %arg8[%c0_250, %c193_251] : memref<8x768xf32, #tpu.memory_space<vmem>>, vector<8x512xf32>
    %c23_252 = arith.constant 23 : index
    %c0_253 = arith.constant 0 : index
    %267 = vector.load %arg2[%c23_252, %c0_253] : memref<27x512xf32, #tpu.memory_space<vmem>>, vector<1x512xf32>
    %268 = vector.broadcast %267 : vector<1x512xf32> to vector<8x512xf32>
    %269 = arith.mulf %266, %268 : vector<8x512xf32>
    %c184_254 = arith.constant 184 : index
    %c0_255 = arith.constant 0 : index
    %270 = vector.load %arg9[%c184_254, %c0_255] : memref<216x512xf32, #tpu.memory_space<vmem>>, vector<8x512xf32>
    tpu.vector_store %arg9[%c184_254, %c0_255], %269 {strides = array<i32>} : memref<216x512xf32, #tpu.memory_space<vmem>>, vector<8x512xf32>,
    %c0_256 = arith.constant 0 : index
    %c199_257 = arith.constant 199 : index
    %271 = vector.load %arg8[%c0_256, %c199_257] : memref<8x768xf32, #tpu.memory_space<vmem>>, vector<8x512xf32>
    %c24_258 = arith.constant 24 : index
    %c0_259 = arith.constant 0 : index
    %272 = vector.load %arg2[%c24_258, %c0_259] : memref<27x512xf32, #tpu.memory_space<vmem>>, vector<1x512xf32>
    %273 = vector.broadcast %272 : vector<1x512xf32> to vector<8x512xf32>
    %274 = arith.mulf %271, %273 : vector<8x512xf32>
    %c192_260 = arith.constant 192 : index
    %c0_261 = arith.constant 0 : index
    %275 = vector.load %arg9[%c192_260, %c0_261] : memref<216x512xf32, #tpu.memory_space<vmem>>, vector<8x512xf32>
    tpu.vector_store %arg9[%c192_260, %c0_261], %274 {strides = array<i32>} : memref<216x512xf32, #tpu.memory_space<vmem>>, vector<8x512xf32>,
    %c0_262 = arith.constant 0 : index
    %c200_263 = arith.constant 200 : index
    %276 = vector.load %arg8[%c0_262, %c200_263] : memref<8x768xf32, #tpu.memory_space<vmem>>, vector<8x512xf32>
    %c25_264 = arith.constant 25 : index
    %c0_265 = arith.constant 0 : index
    %277 = vector.load %arg2[%c25_264, %c0_265] : memref<27x512xf32, #tpu.memory_space<vmem>>, vector<1x512xf32>
    %278 = vector.broadcast %277 : vector<1x512xf32> to vector<8x512xf32>
    %279 = arith.mulf %276, %278 : vector<8x512xf32>
    %c200_266 = arith.constant 200 : index
    %c0_267 = arith.constant 0 : index
    %280 = vector.load %arg9[%c200_266, %c0_267] : memref<216x512xf32, #tpu.memory_space<vmem>>, vector<8x512xf32>
    tpu.vector_store %arg9[%c200_266, %c0_267], %279 {strides = array<i32>} : memref<216x512xf32, #tpu.memory_space<vmem>>, vector<8x512xf32>,
    %c0_268 = arith.constant 0 : index
    %c201_269 = arith.constant 201 : index
    %281 = vector.load %arg8[%c0_268, %c201_269] : memref<8x768xf32, #tpu.memory_space<vmem>>, vector<8x512xf32>
    %c26_270 = arith.constant 26 : index
    %c0_271 = arith.constant 0 : index
    %282 = vector.load %arg2[%c26_270, %c0_271] : memref<27x512xf32, #tpu.memory_space<vmem>>, vector<1x512xf32>
    %283 = vector.broadcast %282 : vector<1x512xf32> to vector<8x512xf32>
    %284 = arith.mulf %281, %283 : vector<8x512xf32>
    %c208_272 = arith.constant 208 : index
    %c0_273 = arith.constant 0 : index
    %285 = vector.load %arg9[%c208_272, %c0_273] : memref<216x512xf32, #tpu.memory_space<vmem>>, vector<8x512xf32>
    tpu.vector_store %arg9[%c208_272, %c0_273], %284 {strides = array<i32>} : memref<216x512xf32, #tpu.memory_space<vmem>>, vector<8x512xf32>,
    %c0_274 = arith.constant 0 : index
    %c0_275 = arith.constant 0 : index
    %286 = vector.load %arg5[%c0_274, %c0_275] : memref<8x216xbf16, #tpu.memory_space<vmem>>, vector<8x216xbf16>
    %c0_276 = arith.constant 0 : index
    %c0_277 = arith.constant 0 : index
    %287 = vector.load %arg9[%c0_276, %c0_277] : memref<216x512xf32, #tpu.memory_space<vmem>>, vector<216x512xf32>
    %288 = arith.truncf %287 : vector<216x512xf32> to vector<216x512xbf16>
    %cst_278 = arith.constant dense<0.000000e+00> : vector<8x512xf32>
    %289 = tpu.matmul %286, %288, %cst_278 {dimension_numbers = #tpu.dot_dimension_numbers<[1], [0], [0], [1], [0, 0, 1, 1], [], []>} : vector<8x216xbf16>, vector<216x512xbf16>, vector<8x512xf32> -> vector<8x512xf32>
    %c0_279 = arith.constant 0 : index
    %c0_280 = arith.constant 0 : index
    %290 = vector.load %arg6[%c0_279, %c0_280] : memref<8x1xf32, #tpu.memory_space<vmem>>, vector<8x1xf32>
    %291 = vector.broadcast %290 : vector<8x1xf32> to vector<8x512xf32>
    %292 = arith.addf %289, %291 : vector<8x512xf32>
    %293 = arith.addf %292, %4 : vector<8x512xf32>
    %c0_281 = arith.constant 0 : index
    %c0_282 = arith.constant 0 : index
    %c0_283 = arith.constant 0 : index
    %294 = vector.load %arg7[%c0_281, %c0_282, %c0_283] : memref<1x8x512xf32, #tpu.memory_space<vmem>>, vector<1x8x512xf32>
    %295 = vector.shape_cast %294 : vector<1x8x512xf32> to vector<8x512xf32>
    %296 = vector.shape_cast %293 : vector<8x512xf32> to vector<1x8x512xf32>
    tpu.vector_store %arg7[%c0_281, %c0_282, %c0_283], %296 {strides = array<i32>} : memref<1x8x512xf32, #tpu.memory_space<vmem>>, vector<1x8x512xf32>,
    return
  }
  func.func @transform_0(%arg0: i32) -> (i32, i32, i32) {
    %c0_i32 = arith.constant 0 : i32
    %c0_i32_0 = arith.constant 0 : i32
    %c0_i32_1 = arith.constant 0 : i32
    return %arg0, %c0_i32, %c0_i32_0 : i32, i32, i32
  }
  func.func @transform_1(%arg0: i32) -> (i32, i32) {
    %c0_i32 = arith.constant 0 : i32
    %c0_i32_0 = arith.constant 0 : i32
    %c0_i32_1 = arith.constant 0 : i32
    return %c0_i32, %c0_i32_0 : i32, i32
  }
  func.func @transform_2(%arg0: i32) -> (i32, i32) {
    %c0_i32 = arith.constant 0 : i32
    %c0_i32_0 = arith.constant 0 : i32
    %c0_i32_1 = arith.constant 0 : i32
    return %c0_i32, %c0_i32_0 : i32, i32
  }
  func.func @transform_3(%arg0: i32) -> (i32, i32) {
    %c0_i32 = arith.constant 0 : i32
    %c0_i32_0 = arith.constant 0 : i32
    %c0_i32_1 = arith.constant 0 : i32
    return %c0_i32, %c0_i32_0 : i32, i32
  }
  func.func @transform_4(%arg0: i32) -> (i32, i32) {
    %c0_i32 = arith.constant 0 : i32
    %c0_i32_0 = arith.constant 0 : i32
    %c0_i32_1 = arith.constant 0 : i32
    return %c0_i32, %c0_i32_0 : i32, i32
  }
  func.func @transform_5(%arg0: i32) -> (i32, i32) {
    %c0_i32 = arith.constant 0 : i32
    %c0_i32_0 = arith.constant 0 : i32
    %c0_i32_1 = arith.constant 0 : i32
    return %c0_i32, %c0_i32_0 : i32, i32
  }
  func.func @transform_6(%arg0: i32) -> (i32, i32, i32) {
    %c0_i32 = arith.constant 0 : i32
    %c0_i32_0 = arith.constant 0 : i32
    %c0_i32_1 = arith.constant 0 : i32
    return %arg0, %c0_i32, %c0_i32_0 : i32, i32, i32
  }
}

</mosaic_0001>

<bundles_post_ra>
// kernel: resnet_block.1
= control target key start
LH: loop header
LB: loop body
LE: loop exit
PB: predicated region body
PF: predicated region fallthrough
CT: control target
= control target key end

     0   :  { %s4773_s21 = smov 0   ;;  %s7084_s0 = inlined_call_operand.vmem [shape: f32[2,8,512], index: 0, kind: input, shape index: {}]   ;;  %s7085_s1 = inlined_call_operand.vmem [shape: f32[27,512], index: 1, kind: input, shape index: {}]   ;;  %s7086_s2 = inlined_call_operand.vmem [shape: bf16[8,216], index: 2, kind: input, shape index: {}]   ;;  %s7087_s3 = inlined_call_operand.vmem [shape: f32[8,1], index: 3, kind: input, shape index: {}]   ;;  %s7088_s4 = inlined_call_operand.vmem [shape: bf16[8,216], index: 4, kind: input, shape index: {}]   ;;  %s7089_s5 = inlined_call_operand.vmem [shape: f32[8,1], index: 5, kind: input, shape index: {}]   ;;  %s7090_s6 = inlined_call_operand.vmem [shape: f32[2,8,512], index: 6, kind: output, shape index: {}]  }
   0x1 LB: > { %s4083_s22 = sadd.s32 4294967295, %s4718_s21   ;;  %p4087_p0 = scmp.ge.s32.totalorder %s4718_s21, 1  ;;  %s4718_s21 = sphi %s4773_s21, %s16_s21  }
   0x2   : > { %p212_p1 = scmp.lt.s32.totalorder %s4718_s21, 3 }
   0x4   : > { %p213_p2 = pnand %p4087_p0, %p212_p1 }
   0x6   : > { %216 = sbr.rel (%p213_p2) target bundleno = 5592 (0x15d8), region = 44 }
   0xb   : > { %v4092_v0 = vld [vmem:[%s7085_s1 + $0x1] ss:$8 sm:$0xf]  ;;  %v268_v2 = vld [vmem:[%s7085_s1] ss:$8 sm:$0xf] }
   0xc   : > { %v333_v1 = vperm.slane %v4092_v0, 1  ;;  %v272_v3 = vperm.slane %v268_v2, 2  ;;  %v270_v4 = vperm.slane %v268_v2, 0  ;;  %s4720_s27 = smov 56   ;;  %s4721_s28 = smov 55   ;;  %v273_v7 = vperm.slane %v268_v2, 3 }
   0xd   : > { %v4093_v5 = vld [vmem:[%s7085_s1 + $0x2] ss:$8 sm:$0xf]  ;;  %v271_v8 = vperm.slane %v268_v2, 1  ;;  %s4722_s7 = smov 57   ;;  %v332_v10 = vperm.slane %v4092_v0, 0 }
   0xe   : > { %338 = vrot.lane.b32.xlu2 %v333_v1, %s4720_s27  ;;  %278 = vrot.lane.b32.xlu1 %v272_v3, %s4721_s28  ;;  %v394_v6 = vperm.slane %v4093_v5, 0  ;;  %v397_v9 = vperm.slane %v4093_v5, 3  ;;  %v334_v11 = vperm.slane %v4092_v0, 2  ;;  %v4094_v12 = vld [vmem:[%s7085_s1 + $0x3] ss:$8 sm:$0xf] }
   0xf   : > { %274 = vrot.lane.b32.xlu0 %v270_v4, %s4721_s28  ;;  %v458_v13 = vperm.slane %v4094_v12, 2  ;;  %v335_v14 = vperm.slane %v4092_v0, 3  ;;  %v395_v15 = vperm.slane %v4093_v5, 1  ;;  %s4723_s10 = smov 63   ;;  %v396_v18 = vperm.slane %v4093_v5, 2  ;;  %s4724_s13 = smov 64  }
  0x10   : > { %v4095_v16 = vld [vmem:[%s7085_s1 + $0x4] ss:$8 sm:$0xf]  ;;  %v456_v19 = vperm.slane %v4094_v12, 0  ;;  %v457_v22 = vperm.slane %v4094_v12, 1  ;;  %v459_v23 = vperm.slane %v4094_v12, 3 }
  0x11   : > { %v519_v17 = vperm.slane %v4095_v16, 1  ;;  %v4096_v20 = vld [vmem:[%s7085_s1 + $0x5] ss:$8 sm:$0xf]  ;;  %s4725_s16 = smov 65   ;;  %v518_v25 = vperm.slane %v4095_v16, 0 }
  0x12   : > { %v579_v21 = vperm.slane %v4096_v20, 0  ;;  %v582_v24 = vperm.slane %v4096_v20, 3  ;;  %v520_v26 = vperm.slane %v4095_v16, 2  ;;  %v521_v27 = vperm.slane %v4095_v16, 3  ;;  %s4726_s19 = smov 71   ;;  %p242_p3 = scmp.lt.s32.totalorder %s4083_s22, 1 }
  0x13   : > { %v580_v28 = vperm.slane %v4096_v20, 1  ;;  %v4097_v29 = vld [vmem:[%s7085_s1 + $0x6] ss:$8 sm:$0xf]  ;;  %v581_v30 = vperm.slane %v4096_v20, 2  ;;  %s4727_s26 = smov 73  }
  0x14   : > { %v639_v31 = vperm.slane %v4097_v29, 0  ;;  %v642_v32 = vperm.slane %v4097_v29, 3  ;;  %v640_v33 = vperm.slane %v4097_v29, 1  ;;  %v641_v34 = vperm.slane %v4097_v29, 2  ;;  %s7363_s22 = smov (!%p242_p3, %s4083_s22), 1  ;;  %s4728_s29 = smov 72  }
  0x15   : > { %s4154_s20 = sshll.u32 %s7363_s22, 5  ;;  %vm7157_vm0 = vcmask 449536   ;;  %vm344_vm1 = vcmask 457728   ;;  %vm468_vm2 = vcmask 515072   ;;  %vm7159_vm3 = vcmask 465920   ;;  %s4729_s15 = smov 119  }
  0x16   : > { %398 = vrot.lane.b32.xlu2 %v394_v6, %s4722_s7  ;;  %280 = vrot.lane.b32.xlu1 %v273_v7, %s4721_s28  ;;  %s4844_s25 = scalar_lea.vmem %s7084_s0, %s4154_s20  ;;  %vm530_vm4 = vcmask 523264   ;;  %vm497_vm5 = vcmask 531456   ;;  %vm435_vm6 = vcmask 580608   ;;  %vm311_vm7 = vcmask 596992   ;;  %s4730_s17 = smov 9  }
  0x17   : > { %276 = vrot.lane.b32.xlu0 %v271_v8, %s4721_s28  ;;  %v4849_v38 = vld [vmem:[%s4844_s25 + $0x18] sm:$0xff]  ;;  %v4865_v54 = vld [vmem:[%s4844_s25] sm:$0xff]  ;;  %v4875_v62 = vld [vmem:[%s4844_s25 + $0x10] sm:$0xff]  ;;  %vm373_vm8 = vcmask 588800   ;;  %vm831_vm9 = vcmask 973824   ;;  %s4731_s24 = smov 120  }
  0x18   : > { %v4879_v0 = vld [vmem:[%s4844_s25 + $0x8] sm:$0xff]  ;;  %vm860_vm10 = vcmask 72704   ;;  %vm7116_vm11 = vcmask 982016   ;;  %s4732_s30 = smov 8   ;;  %s4733_s11 = smov 121   ;;  %vm922_vm12 = vcmask 64512  }
  0x19   : > { %s4734_s12 = smov 7   ;;  %s4735_s23 = smov 127   ;;  %vm7137_vm13 = vcmask 990208   ;;  %vm7136_vm14 = vcmask 56320   ;;  %vm7135_vm15 = vcmask 1039360  }
  0x1a   : > { %s4736_s8 = smov 1  }
  0x1e   : > { %404 = vrot.lane.b32.xlu2 %v397_v9, %s4722_s7  ;;  %336 = vrot.lane.b32.xlu1 %v332_v10, %s4720_s27 }
  0x1f   : > { %340 = vrot.lane.b32.xlu0 %v334_v11, %s4720_s27 }
  0x26   : > { %464 = vrot.lane.b32.xlu2 %v458_v13, %s4723_s10  ;;  %342 = vrot.lane.b32.xlu1 %v335_v14, %s4720_s27 }
  0x27   : > { %400 = vrot.lane.b32.xlu0 %v395_v15, %s4722_s7 }
  0x2e   : > { %524 = vrot.lane.b32.xlu2 %v519_v17, %s4724_s13  ;;  %402 = vrot.lane.b32.xlu1 %v396_v18, %s4722_s7 }
  0x2f   : > { %460 = vrot.lane.b32.xlu0 %v456_v19, %s4723_s10 }
  0x36   : > { %583 = vrot.lane.b32.xlu2 %v579_v21, %s4725_s16  ;;  %462 = vrot.lane.b32.xlu1 %v457_v22, %s4723_s10 }
  0x37   : > { %466 = vrot.lane.b32.xlu0 %v459_v23, %s4723_s10 }
  0x3e   : > { %589 = vrot.lane.b32.xlu2 %v582_v24, %s4725_s16  ;;  %522 = vrot.lane.b32.xlu1 %v518_v25, %s4724_s13 }
  0x3f   : > { %526 = vrot.lane.b32.xlu0 %v520_v26, %s4724_s13 }
  0x46   : > { %528 = vrot.lane.b32.xlu1 %v521_v27, %s4724_s13  ;;  %647 = vrot.lane.b32.xlu2 %v641_v34, %s4726_s19 }
  0x47   : > { %585 = vrot.lane.b32.xlu0 %v580_v28, %s4725_s16 }
  0x4e   : > { %587 = vrot.lane.b32.xlu1 %v581_v30, %s4725_s16 }
  0x4f   : > { %643 = vrot.lane.b32.xlu0 %v639_v31, %s4726_s19 }
  0x56   : > { %645 = vrot.lane.b32.xlu1 %v640_v33, %s4726_s19 }
  0x57   : > { %649 = vrot.lane.b32.xlu0 %v642_v32, %s4726_s19 }
  0x68   : > { %v339_v35 = vpop.permute.xlu2 %338 }
  0x70   : > { %v4836_v36 = vpop.permute.xlu2 %398 }
  0x71   : > { %v415_v24 = vmul.f32 0.0, %v4836_v36 }
  0x78   : > { %v4846_v37 = vpop.permute.xlu2 %404 }
  0x79   : > { %v419_v39 = vmul.f32 %v4846_v37, %v4849_v38 }
  0x7b   : > { %433 = vrot.lane.b32.xlu2 %v419_v39, %s4726_s19 }
  0x80   : > { %v465_v40 = vpop.permute.xlu2 %464  ;;  %v279_v41 = vpop.permute.xlu1 %278 }
  0x81   : > { %v275_v42 = vpop.permute.xlu0 %274 }
  0x82   : > { %v291_v57 = vmul.f32 0.0, %v275_v42 }
  0x88   : > { %v4854_v43 = vpop.permute.xlu2 %524  ;;  %v281_v44 = vpop.permute.xlu1 %280 }
  0x89   : > { %v277_v45 = vpop.permute.xlu0 %276  ;;  %v295_v46 = vmul.f32 %v281_v44, %v4849_v38  ;;  %v285_v63 = vsel %vm7157_vm0, %v279_v41, %v281_v44 }
  0x8a   : > { %v283_v55 = vsel %vm7157_vm0, %v275_v42, %v277_v45  ;;  %v284_v1 = vsel %vm7157_vm0, %v277_v45, %v279_v41  ;;  %v294_v2 = vmul.f32 %v285_v63, %v4875_v62 }
  0x8b   : > { %309 = vrot.lane.b32.xlu0 %v295_v46, %s4727_s26  ;;  %v292_v58 = vmul.f32 %v283_v55, %v4865_v54  ;;  %v293_v3 = vmul.f32 %v284_v1, %v4879_v0 }
  0x8d   : > { %v4182_v61 = vpack.i.bf16 %v292_v58, %v291_v57  ;;  %v4187_v6 = vpack.i.bf16 %v294_v2, %v293_v3 }
  0x90   : > { %v4858_v47 = vpop.permute.xlu2 %583  ;;  %v337_v48 = vpop.permute.xlu1 %336 }
  0x91   : > { %v341_v49 = vpop.permute.xlu0 %340  ;;  %v345_v7 = vsel %vm344_vm1, %v337_v48, %v339_v35  ;;  %v353_v11 = vmul.f32 0.0, %v337_v48 }
  0x92   : > { %v346_v9 = vsel %vm344_vm1, %v339_v35, %v341_v49  ;;  %v354_v12 = vmul.f32 %v345_v7, %v4865_v54 }
  0x93   : > { %v355_v13 = vmul.f32 %v346_v9, %v4879_v0 }
  0x94   : > { %v4192_v16 = vpack.i.bf16 %v354_v12, %v353_v11  ;;  %v4098_v12 = vld [vmem:[%s7085_s1 + $0x7] ss:$8 sm:$0xf] }
  0x98   : > { %v4860_v50 = vpop.permute.xlu2 %589  ;;  %v343_v52 = vpop.permute.xlu1 %342 }
  0x99   : > { %v603_v51 = vmul.f32 %v4860_v50, %v4849_v38  ;;  %v401_v53 = vpop.permute.xlu0 %400  ;;  %v357_v56 = vmul.f32 %v343_v52, %v4849_v38  ;;  %v347_v10 = vsel %vm344_vm1, %v341_v49, %v343_v52  ;;  %v599_v52 = vmul.f32 0.0, %v4858_v47 }
  0x9a   : > { %v356_v14 = vmul.f32 %v347_v10, %v4875_v62  ;;  %v407_v21 = vsel %vm7159_vm3, %v4836_v36, %v401_v53 }
  0x9b   : > { %617 = vrot.lane.b32.xlu2 %v603_v51, %s4723_s10  ;;  %371 = vrot.lane.b32.xlu1 %v357_v56, %s4728_s29  ;;  %v416_v25 = vmul.f32 %v407_v21, %v4865_v54 }
  0x9c   : > { %v4197_v20 = vpack.i.bf16 %v356_v14, %v355_v13  ;;  %v700_v13 = vperm.slane %v4098_v12, 1 }
  0x9d   : > { %v4202_v31 = vpack.i.bf16 %v416_v25, %v415_v24 }
  0xa0   : > { %v403_v59 = vpop.permute.xlu1 %402  ;;  %v648_v57 = vpop.permute.xlu2 %647 }
  0xa1   : > { %v4872_v60 = vpop.permute.xlu0 %460  ;;  %v408_v32 = vsel %vm7159_vm3, %v401_v53, %v403_v59  ;;  %v409_v33 = vsel %vm7159_vm3, %v403_v59, %v4846_v37 }
  0xa2   : > { %v418_v41 = vmul.f32 %v409_v33, %v4875_v62  ;;  %v477_v53 = vmul.f32 0.0, %v4872_v60 }
  0xa3   : > { %4183 = vrot.lane.b32.xlu2 %v4182_v61, %s4727_s26 }
  0xa8   : > { %v463_v4 = vpop.permute.xlu1 %462 }
  0xa9   : > { %v467_v5 = vpop.permute.xlu0 %466  ;;  %v470_v18 = vsel %vm468_vm2, %v463_v4, %v465_v40  ;;  %v469_v49 = vsel %vm468_vm2, %v4872_v60, %v463_v4 }
  0xaa   : > { %v481_v8 = vmul.f32 %v467_v5, %v4849_v38  ;;  %v471_v19 = vsel %vm468_vm2, %v465_v40, %v467_v5  ;;  %v479_v22 = vmul.f32 %v470_v18, %v4879_v0  ;;  %v417_v40 = vmul.f32 %v408_v32, %v4879_v0 }
  0xab   : > { %4188 = vrot.lane.b32.xlu2 %v4187_v6, %s4727_s26  ;;  %v480_v23 = vmul.f32 %v471_v19, %v4875_v62  ;;  %v478_v55 = vmul.f32 %v469_v49, %v4865_v54 }
  0xac   : > { %495 = vrot.lane.b32.xlu0 %v481_v8, %s4725_s16  ;;  %v4207_v46 = vpack.i.bf16 %v418_v41, %v417_v40 }
  0xad   : > { %v4217_v27 = vpack.i.bf16 %v480_v23, %v479_v22  ;;  %v4212_v61 = vpack.i.bf16 %v478_v55, %v477_v53 }
  0xb0   : > { %v523_v15 = vpop.permute.xlu1 %522 }
  0xb1   : > { %v527_v17 = vpop.permute.xlu0 %526  ;;  %v531_v29 = vsel %vm530_vm4, %v523_v15, %v4854_v43  ;;  %v539_v36 = vmul.f32 0.0, %v523_v15  ;;  %v701_v15 = vperm.slane %v4098_v12, 2 }
  0xb2   : > { %v532_v34 = vsel %vm530_vm4, %v4854_v43, %v527_v17  ;;  %v540_v39 = vmul.f32 %v531_v29, %v4865_v54 }
  0xb3   : > { %4193 = vrot.lane.b32.xlu2 %v4192_v16, %s4728_s29  ;;  %v541_v37 = vmul.f32 %v532_v34, %v4879_v0  ;;  %v699_v16 = vperm.slane %v4098_v12, 0 }
  0xb4   : > { %4198 = vrot.lane.b32.xlu0 %v4197_v20, %s4728_s29  ;;  %v4222_v43 = vpack.i.bf16 %v540_v39, %v539_v36 }
  0xb8   : > { %v529_v26 = vpop.permute.xlu1 %528 }
  0xb9   : > { %v586_v28 = vpop.permute.xlu0 %585  ;;  %v543_v30 = vmul.f32 %v529_v26, %v4849_v38  ;;  %v533_v35 = vsel %vm530_vm4, %v527_v17, %v529_v26  ;;  %v702_v17 = vperm.slane %v4098_v12, 3 }
  0xba   : > { %v542_v42 = vmul.f32 %v533_v35, %v4875_v62  ;;  %v591_v51 = vsel %vm497_vm5, %v4858_v47, %v586_v28 }
  0xbb   : > { %4218 = vrot.lane.b32.xlu2 %v4217_v27, %s4725_s16  ;;  %557 = vrot.lane.b32.xlu1 %v543_v30, %s4724_s13  ;;  %v600_v56 = vmul.f32 %v591_v51, %v4865_v54 }
  0xbc   : > { %4203 = vrot.lane.b32.xlu0 %v4202_v31, %s4726_s19  ;;  %v4227_v48 = vpack.i.bf16 %v542_v42, %v541_v37 }
  0xbd   : > { %v4232_v63 = vpack.i.bf16 %v600_v56, %v599_v52 }
  0xc0   : > { %v588_v44 = vpop.permute.xlu1 %587 }
  0xc1   : > { %v644_v45 = vpop.permute.xlu0 %643  ;;  %v592_v3 = vsel %vm497_vm5, %v586_v28, %v588_v44  ;;  %v593_v47 = vsel %vm497_vm5, %v588_v44, %v4860_v50 }
  0xc2   : > { %v601_v6 = vmul.f32 %v592_v3, %v4879_v0  ;;  %v602_v7 = vmul.f32 %v593_v47, %v4875_v62  ;;  %v659_v10 = vmul.f32 0.0, %v644_v45 }
  0xc3   : > { %4223 = vrot.lane.b32.xlu2 %v4222_v43, %s4724_s13  ;;  %4208 = vrot.lane.b32.xlu1 %v4207_v46, %s4726_s19 }
  0xc4   : > { %4228 = vrot.lane.b32.xlu0 %v4227_v48, %s4724_s13  ;;  %v4237_v50 = vpack.i.bf16 %v602_v7, %v601_v6 }
  0xc8   : > { %v646_v59 = vpop.permute.xlu1 %645 }
  0xc9   : > { %v650_v58 = vpop.permute.xlu0 %649  ;;  %v652_v1 = vsel %vm435_vm6, %v646_v59, %v648_v57  ;;  %v651_v9 = vsel %vm435_vm6, %v644_v45, %v646_v59 }
  0xca   : > { %v653_v2 = vsel %vm435_vm6, %v648_v57, %v650_v58  ;;  %v661_v60 = vmul.f32 %v652_v1, %v4879_v0  ;;  %v663_v8 = vmul.f32 %v650_v58, %v4849_v38  ;;  %v660_v11 = vmul.f32 %v651_v9, %v4865_v54 }
  0xcb   : > { %v662_v4 = vmul.f32 %v653_v2, %v4875_v62  ;;  %4213 = vrot.lane.b32.xlu1 %v4212_v61, %s4725_s16 }
  0xcc   : > { %4233 = vrot.lane.b32.xlu0 %v4232_v63, %s4723_s10  ;;  %v4242_v14 = vpack.i.bf16 %v660_v11, %v659_v10 }
  0xcd   : > { %v4247_v5 = vpack.i.bf16 %v662_v4, %v661_v60 }
  0xcf   : > { %4248 = vrot.lane.b32.xlu2 %v4247_v5, %s4722_s7 }
  0xd3   : > { %4238 = vrot.lane.b32.xlu1 %v4237_v50, %s4723_s10 }
  0xd4   : > { %677 = vrot.lane.b32.xlu0 %v663_v8, %s4722_s7 }
  0xd5   : > { %v4956_v18 = vpop.permute.xlu2 %433 }
  0xd7   : > { %705 = vrot.lane.b32.xlu2 %v700_v13, %s4728_s29 }
  0xdb   : > { %4243 = vrot.lane.b32.xlu1 %v4242_v14, %s4722_s7 }
  0xdc   : > { %707 = vrot.lane.b32.xlu0 %v701_v15, %s4728_s29  ;;  %v4099_v15 = vld [vmem:[%s7085_s1 + $0x20] ss:$8 sm:$0xf] }
  0xe3   : > { %703 = vrot.lane.b32.xlu1 %v699_v16, %s4728_s29 }
  0xeb   : > { %709 = vrot.lane.b32.xlu1 %v702_v17, %s4728_s29  ;;  %v759_v17 = vperm.slane %v4099_v15, 0 }
  0xf5   : > { %v4959_v19 = vpop.permute.xlu2 %617 }
  0xfd   : > { %v4961_v20 = vpop.permute.xlu2 %4183  ;;  %v4978_v27 = vpop.permute.xlu0 %309 }
  0xfe   : > { %7168 = vst [vmem:[#allocation5_spill] sm:$0xff] %v4978_v27 }
 0x105   : > { %v4963_v21 = vpop.permute.xlu2 %4188 }
 0x106   : > { %v7091_v22 = vunpack.i.h.bf16 %v4963_v21  ;;  %v7101_v23 = vunpack.i.l.bf16 %v4963_v21 }
 0x108   : > { %v4972_v24 = vsel %vm311_vm7, %v7101_v23, %v7091_v22 }
 0x109   : > { %7167 = vst [vmem:[#allocation4_spill] sm:$0xff] %v4972_v24 }
 0x10d   : > { %v4974_v25 = vpop.permute.xlu2 %4193  ;;  %v4993_v33 = vpop.permute.xlu1 %371 }
 0x10e   : > { %7171 = vst [vmem:[#allocation8_spill] sm:$0xff] %v4993_v33 }
 0x115   : > { %v4976_v26 = vpop.permute.xlu2 %4218 }
 0x116   : > { %v7093_v28 = vunpack.i.h.bf16 %v4976_v26  ;;  %v7104_v29 = vunpack.i.l.bf16 %v4976_v26 }
 0x118   : > { %v4987_v30 = vsel %vm497_vm5, %v7104_v29, %v7093_v28 }
 0x119   : > { %7169 = vst [vmem:[#allocation6_spill] sm:$0xff] %v4987_v30 }
 0x11d   : > { %v4991_v32 = vpop.permute.xlu2 %4223 }
 0x11e   : > { %v4989_v31 = vpop.permute.xlu0 %495 }
 0x11f   : > { %7170 = vst [vmem:[#allocation7_spill] sm:$0xff] %v4989_v31 }
 0x126   : > { %v4995_v34 = vpop.permute.xlu0 %4198 }
 0x127   : > { %v7092_v35 = vunpack.i.h.bf16 %v4995_v34  ;;  %v7102_v36 = vunpack.i.l.bf16 %v4995_v34 }
 0x129   : > { %v4999_v39 = vpop.permute.xlu2 %4248  ;;  %v5006_v40 = vsel %vm373_vm8, %v7102_v36, %v7092_v35 }
 0x12a   : > { %7172 = vst [vmem:[#allocation9_spill] sm:$0xff] %v5006_v40  ;;  %v7097_v41 = vunpack.i.h.bf16 %v4999_v39  ;;  %v7107_v37 = vunpack.i.l.bf16 %v4999_v39 }
 0x12c   : > { %v5017_v43 = vsel %vm7159_vm3, %v7107_v37, %v7097_v41 }
 0x12d   : > { %7173 = vst [vmem:[#allocation10_spill] sm:$0xff] %v5017_v43  ;;  %v5019_v44 = vpop.permute.xlu1 %557  ;;  %v4106_v43 = vld [vmem:[%s7085_s1 + $0x27] ss:$8 sm:$0xf] }
 0x12e   : > { %v5021_v45 = vpop.permute.xlu0 %4203 }
 0x131   : > { %v706_v4 = vpop.permute.xlu2 %705 }
 0x135   : > { %v5023_v46 = vpop.permute.xlu1 %4208 }
 0x136   : > { %v5025_v48 = vpop.permute.xlu0 %4228  ;;  %v7094_v49 = vunpack.i.h.bf16 %v5023_v46  ;;  %v7103_v51 = vunpack.i.l.bf16 %v5023_v46 }
 0x137   : > { %v7095_v52 = vunpack.i.h.bf16 %v5025_v48  ;;  %v7105_v53 = vunpack.i.l.bf16 %v5025_v48 }
 0x138   : > { %v5043_v56 = vsel %vm435_vm6, %v7103_v51, %v7094_v49 }
 0x139   : > { %v5036_v55 = vsel %vm530_vm4, %v7105_v53, %v7095_v52  ;;  %7175 = vst [vmem:[#allocation12_spill] sm:$0xff] %v5043_v56 }
 0x13a   : > { %7174 = vst [vmem:[#allocation11_spill] sm:$0xff] %v5036_v55 }
 0x13d   : > { %v5047_v58 = vpop.permute.xlu1 %4213 }
 0x13e   : > { %v5049_v59 = vpop.permute.xlu0 %4233 }
 0x145   : > { %v5051_v61 = vpop.permute.xlu1 %4238 }
 0x146   : > { %v7096_v63 = vunpack.i.h.bf16 %v5051_v61  ;;  %v7106_v1 = vunpack.i.l.bf16 %v5051_v61  ;;  %v5066_v60 = vpop.permute.xlu0 %677 }
 0x148   : > { %v5060_v2 = vsel %vm468_vm2, %v7106_v1, %v7096_v63 }
 0x149   : > { %7176 = vst [vmem:[#allocation13_spill] sm:$0xff] %v5060_v2 }
 0x14d   : > { %v5064_v47 = vpop.permute.xlu1 %4243 }
 0x14e   : > { %v708_v9 = vpop.permute.xlu0 %707 }
 0x14f   : > { %v712_v10 = vsel %vm373_vm8, %v706_v4, %v708_v9 }
 0x150   : > { %v721_v12 = vmul.f32 %v712_v10, %v4879_v0 }
 0x155   : > { %v704_v5 = vpop.permute.xlu1 %703 }
 0x156   : > { %v719_v6 = vmul.f32 0.0, %v704_v5  ;;  %v711_v7 = vsel %vm373_vm8, %v704_v5, %v706_v4  ;;  %v761_v4 = vperm.slane %v4099_v15, 2 }
 0x157   : > { %v720_v8 = vmul.f32 %v711_v7, %v4865_v54  ;;  %v762_v7 = vperm.slane %v4099_v15, 3 }
 0x159   : > { %v4252_v50 = vpack.i.bf16 %v720_v8, %v719_v6  ;;  %v760_v6 = vperm.slane %v4099_v15, 1 }
 0x15b   : > { %4253 = vrot.lane.b32.xlu2 %v4252_v50, %s4720_s27 }
 0x15d   : > { %v710_v11 = vpop.permute.xlu1 %709 }
 0x15e   : > { %v723_v13 = vmul.f32 %v710_v11, %v4849_v38  ;;  %v713_v14 = vsel %vm373_vm8, %v708_v9, %v710_v11 }
 0x15f   : > { %v722_v16 = vmul.f32 %v713_v14, %v4875_v62 }
 0x160   : > { %737 = vrot.lane.b32.xlu1 %v723_v13, %s4720_s27 }
 0x161   : > { %v4257_v5 = vpack.i.bf16 %v722_v16, %v721_v12  ;;  %v4100_v12 = vld [vmem:[%s7085_s1 + $0x21] ss:$8 sm:$0xf] }
 0x162   : > { %v821_v13 = vperm.slane %v4100_v12, 2 }
 0x163   : > { %4258 = vrot.lane.b32.xlu0 %v4257_v5, %s4720_s27  ;;  %763 = vrot.lane.b32.xlu2 %v759_v17, %s4727_s26  ;;  %v819_v5 = vperm.slane %v4100_v12, 0 }
 0x168   : > { %767 = vrot.lane.b32.xlu1 %v761_v4, %s4727_s26 }
 0x16b   : > { %765 = vrot.lane.b32.xlu0 %v760_v6, %s4727_s26  ;;  %769 = vrot.lane.b32.xlu2 %v762_v7, %s4727_s26 }
 0x1b5   : > { %v5085_v8 = vpop.permute.xlu2 %4253 }
 0x1bd   : > { %v764_v9 = vpop.permute.xlu2 %763 }
 0x1be   : > { %v779_v57 = vmul.f32 0.0, %v764_v9 }
 0x1c5   : > { %v770_v50 = vpop.permute.xlu2 %769 }
 0x1c6   : > { %v783_v10 = vmul.f32 %v770_v50, %v4849_v38 }
 0x1c8   : > { %797 = vrot.lane.b32.xlu2 %v783_v10, %s4721_s28 }
 0x1d0   : > { %827 = vrot.lane.b32.xlu2 %v821_v13, %s4729_s15 }
 0x1d2   : > { %v5089_v11 = vpop.permute.xlu1 %737 }
 0x1d5   : > { %v5094_v14 = vpop.permute.xlu0 %4258 }
 0x1d6   : > { %v7098_v15 = vunpack.i.h.bf16 %v5094_v14  ;;  %v7108_v16 = vunpack.i.l.bf16 %v5094_v14 }
 0x1d8   : > { %v5104_v17 = vsel %vm344_vm1, %v7108_v16, %v7098_v15 }
 0x1d9   : > { %7177 = vst [vmem:[#allocation14_spill] sm:$0xff] %v5104_v17  ;;  %v1150_v17 = vperm.slane %v4106_v43, 0 }
 0x1da   : > { %v768_v4 = vpop.permute.xlu1 %767 }
 0x1db   : > { %v773_v6 = vsel %vm311_vm7, %v768_v4, %v770_v50  ;;  %v820_v50 = vperm.slane %v4100_v12, 1 }
 0x1dc   : > { %v782_v10 = vmul.f32 %v773_v6, %v4875_v62  ;;  %v822_v6 = vperm.slane %v4100_v12, 3 }
 0x1dd   : > { %v766_v7 = vpop.permute.xlu0 %765 }
 0x1de   : > { %v771_v13 = vsel %vm311_vm7, %v764_v9, %v766_v7  ;;  %v772_v42 = vsel %vm311_vm7, %v766_v7, %v768_v4 }
 0x1df   : > { %v780_v3 = vmul.f32 %v771_v13, %v4865_v54  ;;  %v781_v22 = vmul.f32 %v772_v42, %v4879_v0 }
 0x1e1   : > { %v4262_v35 = vpack.i.bf16 %v780_v3, %v779_v57  ;;  %v4267_v28 = vpack.i.bf16 %v782_v10, %v781_v22 }
 0x1e3   : > { %4263 = vrot.lane.b32.xlu0 %v4262_v35, %s4721_s28  ;;  %4268 = vrot.lane.b32.xlu1 %v4267_v28, %s4721_s28 }
 0x1eb   : > { %823 = vrot.lane.b32.xlu0 %v819_v5, %s4729_s15  ;;  %825 = vrot.lane.b32.xlu1 %v820_v50, %s4729_s15 }
 0x1f3   : > { %829 = vrot.lane.b32.xlu0 %v822_v6, %s4729_s15  ;;  %v4101_v6 = vld [vmem:[%s7085_s1 + $0x22] ss:$8 sm:$0xf] }
 0x1f4   : > { %v881_v41 = vperm.slane %v4101_v6, 0 }
 0x222   : > { %v5132_v35 = vpop.permute.xlu2 %797 }
 0x22a   : > { %v828_v10 = vpop.permute.xlu2 %827 }
 0x255   : > { %v5119_v9 = vpop.permute.xlu0 %4263  ;;  %v5121_v4 = vpop.permute.xlu1 %4268 }
 0x256   : > { %v7099_v42 = vunpack.i.h.bf16 %v5121_v4  ;;  %v7109_v22 = vunpack.i.l.bf16 %v5121_v4 }
 0x258   : > { %v5130_v28 = vsel %vm7157_vm0, %v7109_v22, %v7099_v42 }
 0x259   : > { %7178 = vst [vmem:[#allocation15_spill] sm:$0xff] %v5130_v28 }
 0x25d   : > { %v824_v57 = vpop.permute.xlu0 %823  ;;  %v826_v3 = vpop.permute.xlu1 %825 }
 0x25e   : > { %v840_v12 = vmul.f32 0.0, %v824_v57  ;;  %v832_v5 = vsel %vm831_vm9, %v824_v57, %v826_v3  ;;  %v833_v50 = vsel %vm831_vm9, %v826_v3, %v828_v10  ;;  %v883_v3 = vperm.slane %v4101_v6, 2 }
 0x25f   : > { %v841_v7 = vmul.f32 %v832_v5, %v4865_v54  ;;  %v842_v57 = vmul.f32 %v833_v50, %v4879_v0 }
 0x261   : > { %v4272_v13 = vpack.i.bf16 %v841_v7, %v840_v12  ;;  %v884_v7 = vperm.slane %v4101_v6, 3 }
 0x263   : > { %4273 = vrot.lane.b32.xlu1 %v4272_v13, %s4730_s17  ;;  %v882_v13 = vperm.slane %v4101_v6, 1 }
 0x265   : > { %v830_v49 = vpop.permute.xlu0 %829 }
 0x266   : > { %v834_v52 = vsel %vm831_vm9, %v828_v10, %v830_v49  ;;  %v844_v63 = vmul.f32 %v830_v49, %v4849_v38 }
 0x267   : > { %v843_v5 = vmul.f32 %v834_v52, %v4875_v62 }
 0x268   : > { %858 = vrot.lane.b32.xlu0 %v844_v63, %s4730_s17 }
 0x269   : > { %v4277_v12 = vpack.i.bf16 %v843_v5, %v842_v57 }
 0x26b   : > { %4278 = vrot.lane.b32.xlu2 %v4277_v12, %s4730_s17  ;;  %885 = vrot.lane.b32.xlu1 %v881_v41, %s4731_s24 }
 0x270   : > { %889 = vrot.lane.b32.xlu0 %v883_v3, %s4731_s24 }
 0x273   : > { %891 = vrot.lane.b32.xlu1 %v884_v7, %s4731_s24  ;;  %887 = vrot.lane.b32.xlu2 %v882_v13, %s4731_s24 }
 0x2c5   : > { %v5151_v49 = vpop.permute.xlu2 %4278 }
 0x2c6   : > { %v7100_v52 = vunpack.i.h.bf16 %v5151_v49  ;;  %v7110_v63 = vunpack.i.l.bf16 %v5151_v49 }
 0x2c8   : > { %v5160_v41 = vsel %vm860_vm10, %v7110_v63, %v7100_v52 }
 0x2c9   : > { %7179 = vst [vmem:[#allocation16_spill] sm:$0xff] %v5160_v41 }
 0x2cd   : > { %v888_v57 = vpop.permute.xlu2 %887 }
 0x2d5   : > { %v5164_v50 = vpop.permute.xlu1 %4273 }
 0x2da   : > { %v5166_v6 = vpop.permute.xlu0 %858 }
 0x2dd   : > { %v886_v5 = vpop.permute.xlu1 %885 }
 0x2de   : > { %v894_v12 = vsel %vm7116_vm11, %v886_v5, %v888_v57  ;;  %v902_v3 = vmul.f32 0.0, %v886_v5  ;;  %v4102_v5 = vld [vmem:[%s7085_s1 + $0x23] ss:$8 sm:$0xf] }
 0x2df   : > { %v903_v7 = vmul.f32 %v894_v12, %v4865_v54 }
 0x2e1   : > { %v4282_v13 = vpack.i.bf16 %v903_v7, %v902_v3  ;;  %v943_v3 = vperm.slane %v4102_v5, 0 }
 0x2e2   : > { %v890_v15 = vpop.permute.xlu0 %889 }
 0x2e3   : > { %4283 = vrot.lane.b32.xlu2 %v4282_v13, %s4732_s30  ;;  %v895_v42 = vsel %vm7116_vm11, %v888_v57, %v890_v15  ;;  %v944_v57 = vperm.slane %v4102_v5, 1 }
 0x2e4   : > { %v904_v10 = vmul.f32 %v895_v42, %v4879_v0  ;;  %v945_v42 = vperm.slane %v4102_v5, 2 }
 0x2e5   : > { %v892_v52 = vpop.permute.xlu1 %891 }
 0x2e6   : > { %v896_v23 = vsel %vm7116_vm11, %v890_v15, %v892_v52  ;;  %v906_v36 = vmul.f32 %v892_v52, %v4849_v38  ;;  %v946_v15 = vperm.slane %v4102_v5, 3  ;;  %v4103_v5 = vld [vmem:[%s7085_s1 + $0x24] ss:$8 sm:$0xf]  ;;  %vm7134_vm11 = vcmask 7168  }
 0x2e7   : > { %v905_v12 = vmul.f32 %v896_v23, %v4875_v62 }
 0x2e8   : > { %920 = vrot.lane.b32.xlu1 %v906_v36, %s4732_s30 }
 0x2e9   : > { %v4287_v7 = vpack.i.bf16 %v905_v12, %v904_v10  ;;  %v1007_v12 = vperm.slane %v4103_v5, 2 }
 0x2eb   : > { %4288 = vrot.lane.b32.xlu0 %v4287_v7, %s4732_s30  ;;  %947 = vrot.lane.b32.xlu2 %v943_v3, %s4733_s11 }
 0x2f0   : > { %951 = vrot.lane.b32.xlu1 %v945_v42, %s4733_s11 }
 0x2f3   : > { %949 = vrot.lane.b32.xlu0 %v944_v57, %s4733_s11  ;;  %953 = vrot.lane.b32.xlu2 %v946_v15, %s4733_s11 }
 0x33d   : > { %v5185_v52 = vpop.permute.xlu2 %4283 }
 0x345   : > { %v948_v23 = vpop.permute.xlu2 %947 }
 0x346   : > { %v964_v1 = vmul.f32 0.0, %v948_v23 }
 0x34d   : > { %v954_v13 = vpop.permute.xlu2 %953 }
 0x34e   : > { %v968_v36 = vmul.f32 %v954_v13, %v4849_v38 }
 0x350   : > { %982 = vrot.lane.b32.xlu2 %v968_v36, %s4734_s12 }
 0x358   : > { %1013 = vrot.lane.b32.xlu2 %v1007_v12, %s4735_s23 }
 0x35a   : > { %v5189_v10 = vpop.permute.xlu1 %920 }
 0x35d   : > { %v5194_v3 = vpop.permute.xlu0 %4288 }
 0x35e   : > { %v7111_v7 = vunpack.i.h.bf16 %v5194_v3  ;;  %v7113_v42 = vunpack.i.l.bf16 %v5194_v3 }
 0x360   : > { %v5204_v57 = vsel %vm922_vm12, %v7113_v42, %v7111_v7  ;;  %v1006_v7 = vperm.slane %v4103_v5, 1 }
 0x361   : > { %7180 = vst [vmem:[#allocation17_spill] sm:$0xff] %v5204_v57 }
 0x362   : > { %v952_v15 = vpop.permute.xlu1 %951 }
 0x363   : > { %v958_v36 = vsel %vm7137_vm13, %v952_v15, %v954_v13  ;;  %v1005_v13 = vperm.slane %v4103_v5, 0 }
 0x364   : > { %v967_v51 = vmul.f32 %v958_v36, %v4875_v62  ;;  %v1008_v36 = vperm.slane %v4103_v5, 3 }
 0x365   : > { %v950_v29 = vpop.permute.xlu0 %949 }
 0x366   : > { %v956_v12 = vsel %vm7137_vm13, %v948_v23, %v950_v29  ;;  %v957_v53 = vsel %vm7137_vm13, %v950_v29, %v952_v15 }
 0x367   : > { %v965_v37 = vmul.f32 %v956_v12, %v4865_v54  ;;  %v966_v16 = vmul.f32 %v957_v53, %v4879_v0 }
 0x369   : > { %v4297_v22 = vpack.i.bf16 %v967_v51, %v966_v16  ;;  %v4292_v63 = vpack.i.bf16 %v965_v37, %v964_v1 }
 0x36b   : > { %4298 = vrot.lane.b32.xlu1 %v4297_v22, %s4734_s12  ;;  %4293 = vrot.lane.b32.xlu0 %v4292_v63, %s4734_s12 }
 0x373   : > { %1011 = vrot.lane.b32.xlu1 %v1006_v7, %s4735_s23  ;;  %1009 = vrot.lane.b32.xlu0 %v1005_v13, %s4735_s23 }
 0x37b   : > { %1015 = vrot.lane.b32.xlu0 %v1008_v36, %s4735_s23 }
 0x3aa   : > { %v5230_v1 = vpop.permute.xlu2 %982 }
 0x3b2   : > { %v1014_v12 = vpop.permute.xlu2 %1013 }
 0x3dd   : > { %v5217_v29 = vpop.permute.xlu1 %4298  ;;  %v5219_v23 = vpop.permute.xlu0 %4293 }
 0x3de   : > { %v7112_v37 = vunpack.i.h.bf16 %v5217_v29  ;;  %v7114_v51 = vunpack.i.l.bf16 %v5217_v29 }
 0x3e0   : > { %v5228_v53 = vsel %vm7136_vm14, %v7114_v51, %v7112_v37  ;;  %v4105_v37 = vld [vmem:[%s7085_s1 + $0x26] ss:$8 sm:$0xf] }
 0x3e1   : > { %7181 = vst [vmem:[#allocation18_spill] sm:$0xff] %v5228_v53  ;;  %v1090_v24 = vperm.slane %v4105_v37, 0 }
 0x3e5   : > { %v1012_v22 = vpop.permute.xlu1 %1011  ;;  %v1010_v63 = vpop.permute.xlu0 %1009 }
 0x3e6   : > { %v1018_v5 = vsel %vm7135_vm15, %v1010_v63, %v1012_v22  ;;  %v1026_v7 = vmul.f32 0.0, %v1010_v63  ;;  %v1019_v36 = vsel %vm7135_vm15, %v1012_v22, %v1014_v12  ;;  %v1092_v22 = vperm.slane %v4105_v37, 2 }
 0x3e7   : > { %v1027_v15 = vmul.f32 %v1018_v5, %v4865_v54  ;;  %v1028_v63 = vmul.f32 %v1019_v36, %v4879_v0 }
 0x3e9   : > { %v4302_v13 = vpack.i.bf16 %v1027_v15, %v1026_v7  ;;  %v1093_v15 = vperm.slane %v4105_v37, 3 }
 0x3eb   : > { %4303 = vrot.lane.b32.xlu1 %v4302_v13, %s4736_s8  ;;  %v1091_v13 = vperm.slane %v4105_v37, 1 }
 0x3ed   : > { %v1016_v16 = vpop.permute.xlu0 %1015 }
 0x3ee   : > { %v1020_v42 = vsel %vm7135_vm15, %v1014_v12, %v1016_v16  ;;  %v1030_v51 = vmul.f32 %v1016_v16, %v4849_v38 }
 0x3ef   : > { %v1029_v5 = vmul.f32 %v1020_v42, %v4875_v62  ;;  %v5254_v42 = vld [vmem:[%s7085_s1 + $0x25] ss:$8 sm:$0xf] }
 0x3f0   : > { %1044 = vrot.lane.b32.xlu0 %v1030_v51, %s4736_s8  ;;  %v1068_v51 = vperm.slane %v5254_v42, 2 }
 0x3f1   : > { %v4307_v7 = vpack.i.bf16 %v1029_v5, %v1028_v63 }
 0x3f3   : > { %1094 = vrot.lane.b32.xlu1 %v1090_v24, %s4736_s8  ;;  %4308 = vrot.lane.b32.xlu2 %v4307_v7, %s4736_s8  ;;  %v5260_v24 = vmul.f32 %v1068_v51, %v4875_v62 }
 0x3f5   : > { %7182 = vst [vmem:[#allocation19_spill] sm:$0xff] %v5260_v24 }
 0x3f8   : > { %1098 = vrot.lane.b32.xlu0 %v1092_v22, %s4736_s8 }
 0x3fb   : > { %1100 = vrot.lane.b32.xlu1 %v1093_v15, %s4736_s8  ;;  %1096 = vrot.lane.b32.xlu2 %v1091_v13, %s4736_s8 }
 0x44d   : > { %v5257_v16 = vpop.permute.xlu2 %4308 }
 0x44e   : > { %v7120_v37 = vunpack.i.h.bf16 %v5257_v16  ;;  %v7121_v12 = vunpack.i.l.bf16 %v5257_v16 }
 0x450   : > { %v5269_v36 = vsel %vm7134_vm11, %v7121_v12, %v7120_v37 }
 0x451   : > { %7183 = vst [vmem:[#allocation20_spill] sm:$0xff] %v5269_v36 }
 0x455   : > { %v1097_v22 = vpop.permute.xlu2 %1096 }
 0x45d   : > { %v5273_v5 = vpop.permute.xlu1 %4303 }
 0x462   : > { %v5275_v7 = vpop.permute.xlu0 %1044 }
 0x465   : > { %v1095_v15 = vpop.permute.xlu1 %1094 }
 0x466   : > { %v1110_v13 = vmul.f32 %v1095_v15, %v4865_v54  ;;  %v1102_v51 = vsel %vm7134_vm11, %v1095_v15, %v1097_v22 }
 0x467   : > { %v1111_v40 = vmul.f32 %v1102_v51, %v4879_v0 }
 0x469   : > { %v4312_v56 = vpack.i.bf16 %v1111_v40, %v1110_v13 }
 0x46a   : > { %v1099_v30 = vpop.permute.xlu0 %1098 }
 0x46b   : > { %4313 = vrot.lane.b32.xlu2 %v4312_v56, %s4735_s23  ;;  %v1103_v37 = vsel %vm7134_vm11, %v1097_v22, %v1099_v30  ;;  %v1152_v56 = vperm.slane %v4106_v43, 2  ;;  %v1151_v22 = vperm.slane %v4106_v43, 1 }
 0x46c   : > { %v1112_v63 = vmul.f32 %v1103_v37, %v4875_v62  ;;  %v1153_v37 = vperm.slane %v4106_v43, 3 }
 0x46d   : > { %v1101_v12 = vpop.permute.xlu1 %1100 }
 0x46e   : > { %v1114_v55 = vmul.f32 0.0, %v1101_v12  ;;  %v1104_v2 = vsel %vm7134_vm11, %v1099_v30, %v1101_v12 }
 0x46f   : > { %v1113_v15 = vmul.f32 %v1104_v2, %v4849_v38 }
 0x470   : > { %1128 = vrot.lane.b32.xlu1 %v1114_v55, %s4735_s23 }
 0x471   : > { %v4317_v40 = vpack.i.bf16 %v1113_v15, %v1112_v63 }
 0x473   : > { %4318 = vrot.lane.b32.xlu0 %v4317_v40, %s4735_s23  ;;  %1154 = vrot.lane.b32.xlu2 %v1150_v17, %s4734_s12  ;;  %v4107_v17 = vld [vmem:[%s7085_s1 + $0x40] ss:$8 sm:$0xf] }
 0x474   : > { %v1212_v63 = vperm.slane %v4107_v17, 2 }
 0x478   : > { %1158 = vrot.lane.b32.xlu1 %v1152_v56, %s4734_s12 }
 0x47b   : > { %1156 = vrot.lane.b32.xlu0 %v1151_v22, %s4734_s12  ;;  %1160 = vrot.lane.b32.xlu2 %v1153_v37, %s4734_s12 }
 0x4c5   : > { %v4314_v30 = vpop.permute.xlu2 %4313 }
 0x4cd   : > { %v1155_v12 = vpop.permute.xlu2 %1154 }
 0x4d5   : > { %v1161_v2 = vpop.permute.xlu2 %1160 }
 0x4d6   : > { %v1174_v13 = vmul.f32 0.0, %v1161_v2 }
 0x4d8   : > { %1188 = vrot.lane.b32.xlu2 %v1174_v13, %s4733_s11 }
 0x4e0   : > { %1218 = vrot.lane.b32.xlu2 %v1212_v63, %s4732_s30  ;;  %v1170_v63 = vmul.f32 %v1155_v12, %v4865_v54 }
 0x4e2   : > { %v5295_v55 = vpop.permute.xlu1 %1128 }
 0x4e5   : > { %v5300_v43 = vpop.permute.xlu0 %4318 }
 0x4e6   : > { %v7132_v51 = vunpack.i.h.bf16 %v5300_v43  ;;  %v4320_v15 = vunpack.i.l.bf16 %v5300_v43 }
 0x4e8   : > { %v5308_v40 = vsel %vm7135_vm15, %v4320_v15, %v7132_v51  ;;  %v1211_v51 = vperm.slane %v4107_v17, 1 }
 0x4ea   : > { %v1159_v56 = vpop.permute.xlu1 %1158 }
 0x4eb   : > { %v1164_v22 = vsel %vm7136_vm14, %v1159_v56, %v1161_v2  ;;  %v1210_v2 = vperm.slane %v4107_v17, 0 }
 0x4ec   : > { %v1173_v13 = vmul.f32 %v1164_v22, %v4849_v38  ;;  %v1213_v38 = vperm.slane %v4107_v17, 3 }
 0x4ed   : > { %v1157_v37 = vpop.permute.xlu0 %1156 }
 0x4ee   : > { %v1162_v28 = vsel %vm7136_vm14, %v1155_v12, %v1157_v37  ;;  %v1163_v41 = vsel %vm7136_vm14, %v1157_v37, %v1159_v56  ;;  %v4316_v12 = vunpack.i.h.bf16 %v4314_v30  ;;  %v4315_v56 = vunpack.i.l.bf16 %v4314_v30 }
 0x4ef   : > { %v1171_v57 = vmul.f32 %v1162_v28, %v4879_v0  ;;  %v1172_v53 = vmul.f32 %v1163_v41, %v4875_v62  ;;  %v1066_v28 = vperm.slane %v5254_v42, 0  ;;  %v4306_v41 = vunpack.i.h.bf16 %v5273_v5 }
 0x4f1   : > { %v4322_v36 = vpack.i.bf16 %v1171_v57, %v1170_v63  ;;  %v4327_v24 = vpack.i.bf16 %v1173_v13, %v1172_v53  ;;  %v4305_v57 = vunpack.i.l.bf16 %v5273_v5  ;;  %v1130_v13 = vsel %vm7135_vm15, %v4315_v56, %v4316_v12 }
 0x4f2   : > { %v1074_v30 = vmul.f32 %v1066_v28, %v4865_v54  ;;  %v4296_v28 = vunpack.i.h.bf16 %v5219_v23 }
 0x4f3   : > { %4323 = vrot.lane.b32.xlu0 %v4322_v36, %s4733_s11  ;;  %4328 = vrot.lane.b32.xlu1 %v4327_v24, %s4733_s11  ;;  %v1067_v24 = vperm.slane %v5254_v42, 1 }
 0x4f5   : > { %v1075_v31 = vmul.f32 %v1067_v24, %v4879_v0  ;;  %v4276_v24 = vunpack.i.h.bf16 %v5164_v50 }
 0x4fb   : > { %1214 = vrot.lane.b32.xlu0 %v1210_v2, %s4732_s30  ;;  %1216 = vrot.lane.b32.xlu1 %v1211_v51, %s4732_s30  ;;  %v1131_v2 = vsel %vm7135_vm15, %v4316_v12, %v4320_v15  ;;  %v4295_v15 = vunpack.i.l.bf16 %v5219_v23  ;;  %v1047_v12 = vsel %vm7134_vm11, %v4305_v57, %v4306_v41  ;;  %v4275_v23 = vunpack.i.l.bf16 %v5164_v50 }
 0x503   : > { %1220 = vrot.lane.b32.xlu0 %v1213_v38, %s4732_s30 }
 0x565   : > { %v4324_v53 = vpop.permute.xlu0 %4323  ;;  %v5325_v36 = vpop.permute.xlu1 %4328 }
 0x566   : > { %v4326_v22 = vunpack.i.h.bf16 %v4324_v53  ;;  %v4325_v37 = vunpack.i.l.bf16 %v4324_v53  ;;  %v7133_v51 = vunpack.i.h.bf16 %v5325_v36  ;;  %v4330_v17 = vunpack.i.l.bf16 %v5325_v36  ;;  %v5340_v53 = vpop.permute.xlu2 %1188 }
 0x568   : > { %v1190_v63 = vsel %vm7137_vm13, %v4325_v37, %v4326_v22  ;;  %v1191_v5 = vsel %vm7137_vm13, %v4326_v22, %v4330_v17  ;;  %v5338_v38 = vsel %vm7137_vm13, %v4330_v17, %v7133_v51  ;;  %v7184_v22 = vunpack.i.l.bf16 %v5257_v16 }
 0x569   : > { %v1999_v27 = vpack.c.bf16 %v1190_v63, %v1130_v13  ;;  %v2000_v33 = vpack.c.bf16 %v1191_v5, %v1131_v2  ;;  %v4286_v17 = vunpack.i.h.bf16 %v5185_v52  ;;  %v4285_v13 = vunpack.i.l.bf16 %v5185_v52 }
 0x56a   : > { %v1048_v37 = vsel %vm7134_vm11, %v4306_v41, %v7184_v22  ;;  %v1995_v5 = vpack.c.bf16 %v1074_v30, %v1047_v12  ;;  %v985_v41 = vsel %vm7136_vm14, %v4295_v15, %v4296_v28  ;;  %v4266_v22 = vunpack.i.h.bf16 %v5119_v9 }
 0x56b   : > { %2056 = vmatpush.bf16.msra.mxu0 %v1999_v27  ;;  %2082 = vmatpush.bf16.msra.mxu2 %v2000_v33  ;;  %v1996_v56 = vpack.c.bf16 %v1075_v31, %v1048_v37  ;;  %v7185_v33 = vunpack.i.l.bf16 %v5217_v29  ;;  %v4265_v31 = vunpack.i.l.bf16 %v5119_v9  ;;  %v923_v50 = vsel %vm922_vm12, %v4285_v13, %v4286_v17 }
 0x56c   : > { %v1991_v12 = vpack.c.bf16 %v985_v41, %v923_v50  ;;  %v7186_v37 = vunpack.i.l.bf16 %v5194_v3  ;;  %v7187_v9 = vunpack.i.l.bf16 %v5151_v49  ;;  %v4245_v41 = vunpack.i.l.bf16 %v5064_v47 }
 0x56d   : > { %v1215_v63 = vpop.permute.xlu0 %1214  ;;  %v1217_v2 = vpop.permute.xlu1 %1216  ;;  %v986_v52 = vsel %vm7136_vm14, %v4296_v28, %v7185_v33  ;;  %v861_v28 = vsel %vm860_vm10, %v4275_v23, %v4276_v24  ;;  %v4108_v23 = vld [vmem:[%s7085_s1 + $0x41] ss:$8 sm:$0xf]  ;;  %v7188_v33 = vunpack.i.l.bf16 %v5121_v4 }
 0x56e   : > { %v1230_v57 = vmul.f32 %v1215_v63, %v4865_v54  ;;  %v1222_v51 = vsel %vm922_vm12, %v1215_v63, %v1217_v2  ;;  %v1219_v30 = vpop.permute.xlu2 %1218  ;;  %v924_v15 = vsel %vm922_vm12, %v4286_v17, %v7186_v37  ;;  %v862_v13 = vsel %vm860_vm10, %v4276_v24, %v7187_v9 }
 0x56f   : > { %v1231_v27 = vmul.f32 %v1222_v51, %v4879_v0  ;;  %2057 = vmatpush.bf16.msra.mxu0 %v1995_v5  ;;  %2083 = vmatpush.bf16.msra.mxu2 %v1996_v56  ;;  %v4256_v0 = vunpack.i.h.bf16 %v5085_v8  ;;  %v4255_v51 = vunpack.i.l.bf16 %v5085_v8  ;;  %v1992_v56 = vpack.c.bf16 %v986_v52, %v924_v15 }
 0x570   : > { %v4236_v63 = vunpack.i.h.bf16 %v5049_v59  ;;  %v4235_v5 = vunpack.i.l.bf16 %v5049_v59  ;;  %v1223_v17 = vsel %vm922_vm12, %v1217_v2, %v1219_v30  ;;  %v799_v8 = vsel %vm7157_vm0, %v4265_v31, %v4266_v22 }
 0x571   : > { %v4332_v54 = vpack.i.bf16 %v1231_v27, %v1230_v57  ;;  %v4246_v57 = vunpack.i.h.bf16 %v5064_v47  ;;  %v1987_v24 = vpack.c.bf16 %v861_v28, %v799_v8  ;;  %v800_v52 = vsel %vm7157_vm0, %v4266_v22, %v7188_v33 }
 0x572   : > { %v1988_v50 = vpack.c.bf16 %v862_v13, %v800_v52  ;;  %v739_v31 = vsel %vm344_vm1, %v4255_v51, %v4256_v0  ;;  %v1270_v47 = vperm.slane %v4108_v23, 0  ;;  %v7189_v15 = vunpack.i.l.bf16 %v5094_v14 }
 0x573   : > { %4333 = vrot.lane.b32.xlu1 %v4332_v54, %s4731_s24  ;;  %2058 = vmatpush.bf16.msra.mxu0 %v1991_v12  ;;  %v1232_v54 = vmul.f32 %v1223_v17, %v4875_v62  ;;  %v5391_v12 = vld [vmem:[%s4844_s25 + $0x18] sm:$0xff]  ;;  %v4226_v22 = vunpack.i.h.bf16 %v4991_v32  ;;  %v679_v62 = vsel %vm7159_vm3, %v4245_v41, %v4246_v57  ;;  %v7190_v28 = vunpack.i.l.bf16 %v4999_v39 }
 0x574   : > { %2084 = vmatpush.bf16.msra.mxu2 %v1992_v56  ;;  %v740_v56 = vsel %vm344_vm1, %v4256_v0, %v7189_v15  ;;  %v1983_v13 = vpack.c.bf16 %v739_v31, %v679_v62  ;;  %v4216_v8 = vunpack.i.h.bf16 %v5047_v58  ;;  %v4215_v0 = vunpack.i.l.bf16 %v5047_v58 }
 0x575   : > { %v1221_v27 = vpop.permute.xlu0 %1220  ;;  %v680_v9 = vsel %vm7159_vm3, %v4246_v57, %v7190_v28  ;;  %v4205_v33 = vunpack.i.l.bf16 %v5021_v45  ;;  %v7192_v58 = vunpack.i.l.bf16 %v5025_v48  ;;  %v1271_v15 = vperm.slane %v4108_v23, 1 }
 0x576   : > { %v1224_v59 = vsel %vm922_vm12, %v1219_v30, %v1221_v27  ;;  %v1234_v2 = vmul.f32 0.0, %v1221_v27  ;;  %v4225_v30 = vunpack.i.l.bf16 %v4991_v32  ;;  %v1984_v17 = vpack.c.bf16 %v740_v56, %v680_v9 }
 0x577   : > { %v1233_v37 = vmul.f32 %v5391_v12, %v1224_v59  ;;  %2059 = vmatpush.bf16.msra.mxu0 %v1987_v24  ;;  %v619_v32 = vsel %vm468_vm2, %v4235_v5, %v4236_v63  ;;  %v7191_v27 = vunpack.i.l.bf16 %v5051_v61  ;;  %v4206_v24 = vunpack.i.h.bf16 %v5021_v45 }
 0x578   : > { %2085 = vmatpush.bf16.msra.mxu2 %v1988_v50  ;;  %1248 = vrot.lane.b32.xlu0 %v1234_v2, %s4731_s24  ;;  %v559_v57 = vsel %vm530_vm4, %v4225_v30, %v4226_v22  ;;  %v560_v52 = vsel %vm530_vm4, %v4226_v22, %v7192_v58  ;;  %v1272_v59 = vperm.slane %v4108_v23, 2  ;;  %v4196_v2 = vunpack.i.h.bf16 %v4974_v25 }
 0x579   : > { %v4337_v51 = vpack.i.bf16 %v1233_v37, %v1232_v54  ;;  %v620_v41 = vsel %vm468_vm2, %v4236_v63, %v7191_v27  ;;  %v4195_v5 = vunpack.i.l.bf16 %v4974_v25  ;;  %v1979_v50 = vpack.c.bf16 %v619_v32, %v559_v57 }
 0x57a   : > { %v1980_v31 = vpack.c.bf16 %v620_v41, %v560_v52  ;;  %v1273_v63 = vperm.slane %v4108_v23, 3  ;;  %v498_v54 = vsel %vm497_vm5, %v4215_v0, %v4216_v8  ;;  %v7193_v37 = vunpack.i.l.bf16 %v4976_v26 }
 0x57b   : > { %4338 = vrot.lane.b32.xlu2 %v4337_v51, %s4731_s24  ;;  %1274 = vrot.lane.b32.xlu1 %v1270_v47, %s4730_s17  ;;  %v4186_v45 = vunpack.i.h.bf16 %v4961_v20  ;;  %v4185_v56 = vunpack.i.l.bf16 %v4961_v20  ;;  %v436_v25 = vsel %vm435_vm6, %v4205_v33, %v4206_v24  ;;  %v7194_v22 = vunpack.i.l.bf16 %v5023_v46 }
 0x57c   : > { %2060 = vmatpush.bf16.msra.mxu0 %v1983_v13  ;;  %2086 = vmatpush.bf16.msra.mxu2 %v1984_v17  ;;  %v499_v47 = vsel %vm497_vm5, %v4216_v8, %v7193_v37  ;;  %v1975_v51 = vpack.c.bf16 %v498_v54, %v436_v25  ;;  %v374_v23 = vsel %vm373_vm8, %v4195_v5, %v4196_v2  ;;  %v7195_v28 = vunpack.i.l.bf16 %v4995_v34  ;;  %v7211_v37 = vld [vmem:[#allocation8_spill] sm:$0xff] }
 0x57d   : > { %v437_v30 = vsel %vm435_vm6, %v4206_v24, %v7194_v22  ;;  %v1069_v20 = vperm.slane %v5254_v42, 3  ;;  %v7196_v13 = vunpack.i.h.bf16 %v5325_v36  ;;  %v312_v8 = vsel %vm311_vm7, %v4185_v56, %v4186_v45 }
 0x57e   : > { %v1976_v62 = vpack.c.bf16 %v499_v47, %v437_v30  ;;  %v375_v9 = vsel %vm373_vm8, %v4196_v2, %v7195_v28  ;;  %v7197_v0 = vunpack.i.l.bf16 %v4963_v21  ;;  %v1971_v27 = vpack.c.bf16 %v374_v23, %v312_v8  ;;  %v7213_v47 = vld [vmem:[#allocation5_spill] sm:$0xff]  ;;  %v5511_v30 = vld [vmem:[%s4844_s25] sm:$0xff] }
 0x57f   : > { %v1193_v17 = vsel %vm7137_vm13, %v7196_v13, %v5340_v53  ;;  %v7198_v42 = vunpack.i.h.bf16 %v5300_v43  ;;  %v1077_v33 = vmul.f32 %v5391_v12, %v1069_v20  ;;  %v7199_v36 = vunpack.i.h.bf16 %v5257_v16  ;;  %v5521_v20 = vld [vmem:[%s4844_s25 + $0x10] sm:$0xff] }
 0x580   : > { %2061 = vmatpush.bf16.msra.mxu0 %v1979_v50  ;;  %2087 = vmatpush.bf16.msra.mxu2 %v1980_v31  ;;  %v313_v32 = vsel %vm311_vm7, %v4186_v45, %v7197_v0  ;;  %v7200_v52 = vunpack.i.h.bf16 %v5217_v29  ;;  %v7202_v16 = vunpack.i.h.bf16 %v5151_v49  ;;  %v7203_v5 = vunpack.i.h.bf16 %v5121_v4 }
 0x581   : > { %1278 = vrot.lane.b32.xlu0 %v1272_v59, %s4730_s17  ;;  %v1972_v41 = vpack.c.bf16 %v375_v9, %v313_v32  ;;  %v1133_v57 = vsel %vm7135_vm15, %v7198_v42, %v5295_v55  ;;  %v1050_v53 = vsel %vm7134_vm11, %v7199_v36, %v5275_v7  ;;  %v7201_v55 = vunpack.i.h.bf16 %v5194_v3  ;;  %v4109_v32 = vld [vmem:[%s7085_s1 + $0x42] ss:$8 sm:$0xf] }
 0x582   : > { %v2002_v24 = vpack.c.bf16 %v1193_v17, %v1133_v57  ;;  %v1998_v58 = vpack.c.bf16 %v1077_v33, %v1050_v53  ;;  %v988_v59 = vsel %vm7136_vm14, %v7200_v52, %v5230_v1  ;;  %v864_v7 = vsel %vm860_vm10, %v7202_v16, %v5166_v6 }
 0x583   : > { %1280 = vrot.lane.b32.xlu1 %v1273_v63, %s4730_s17  ;;  %1276 = vrot.lane.b32.xlu2 %v1271_v15, %s4730_s17  ;;  %v926_v43 = vsel %vm922_vm12, %v7201_v55, %v5189_v10  ;;  %v802_v29 = vsel %vm7157_vm0, %v7203_v5, %v5132_v35  ;;  %v7204_v1 = vunpack.i.h.bf16 %v5094_v14  ;;  %v7205_v10 = vunpack.i.h.bf16 %v4999_v39  ;;  %v4110_v55 = vld [vmem:[%s7085_s1 + $0x43] ss:$8 sm:$0xf] }
 0x584   : > { %2062 = vmatpush.bf16.msra.mxu0 %v1975_v51  ;;  %2088 = vmatpush.bf16.msra.mxu2 %v1976_v62  ;;  %v1994_v2 = vpack.c.bf16 %v988_v59, %v926_v43  ;;  %v1990_v50 = vpack.c.bf16 %v864_v7, %v802_v29  ;;  %v7206_v6 = vunpack.i.h.bf16 %v5051_v61  ;;  %v7207_v35 = vunpack.i.h.bf16 %v5025_v48 }
 0x585   : > { %v742_v3 = vsel %vm344_vm1, %v7204_v1, %v5089_v11  ;;  %v682_v49 = vsel %vm7159_vm3, %v7205_v10, %v5066_v60  ;;  %v7208_v11 = vunpack.i.h.bf16 %v5023_v46  ;;  %v7209_v60 = vld [vmem:[#allocation7_spill] sm:$0xff]  ;;  %v7210_v54 = vunpack.i.h.bf16 %v4976_v26 }
 0x586   : > { %v1986_v31 = vpack.c.bf16 %v742_v3, %v682_v49  ;;  %v622_v4 = vsel %vm468_vm2, %v7206_v6, %v4959_v19  ;;  %v562_v14 = vsel %vm530_vm4, %v7207_v35, %v5019_v44  ;;  %v7212_v48 = vunpack.i.h.bf16 %v4995_v34 }
 0x587   : > { %v1982_v63 = vpack.c.bf16 %v622_v4, %v562_v14  ;;  %v439_v39 = vsel %vm435_vm6, %v7208_v11, %v4956_v18  ;;  %v501_v19 = vsel %vm497_vm5, %v7210_v54, %v7209_v60  ;;  %v7214_v46 = vunpack.i.h.bf16 %v4963_v21  ;;  %v5515_v21 = vld [vmem:[%s4844_s25 + $0x8] sm:$0xff] }
 0x588   : > { %2063 = vmatpush.bf16.msra.mxu0 %v1971_v27  ;;  %2089 = vmatpush.bf16.msra.mxu2 %v1972_v41  ;;  %v1978_v61 = vpack.c.bf16 %v501_v19, %v439_v39  ;;  %v377_v44 = vsel %vm373_vm8, %v7212_v48, %v7211_v37  ;;  %v1330_v41 = vperm.slane %v4109_v32, 0  ;;  %v1332_v57 = vperm.slane %v4109_v32, 2 }
 0x589   : > { %v315_v15 = vsel %vm311_vm7, %v7214_v46, %v7213_v47  ;;  %v1333_v33 = vperm.slane %v4109_v32, 3  ;;  %v1392_v43 = vperm.slane %v4110_v55, 2  ;;  %v1391_v4 = vperm.slane %v4110_v55, 1  ;;  %v4111_v46 = vld [vmem:[%s7085_s1 + $0x44] ss:$8 sm:$0xf] }
 0x58a   : > { %v1974_v18 = vpack.c.bf16 %v377_v44, %v315_v15  ;;  %v1390_v35 = vperm.slane %v4110_v55, 0  ;;  %v1393_v14 = vperm.slane %v4110_v55, 3  ;;  %vm7150_vm11 = vcmask 1043456  }
 0x58b   : > { %vm7215_vm15 = vcmask 982016   ;;  %vm7144_vm14 = vcmask 719872  }
 0x58c   : > { %2134 = vmatpush.bf16.msrb.mxu0 %v2002_v24  ;;  %v1331_v24 = vperm.slane %v4109_v32, 1  ;;  %vm7238_vm13 = vmmov %vm7215_vm15 }
 0x590   : > { %2135 = vmatpush.bf16.msrb.mxu0 %v1998_v58 }
 0x594   : > { %2136 = vmatpush.bf16.msrb.mxu0 %v1994_v2 }
 0x598   : > { %2137 = vmatpush.bf16.msrb.mxu0 %v1990_v50 }
 0x59c   : > { %2138 = vmatpush.bf16.msrb.mxu0 %v1986_v31 }
 0x5a0   : > { %2139 = vmatpush.bf16.msrb.mxu0 %v1982_v63 }
 0x5a4   : > { %2140 = vmatpush.bf16.msrb.mxu0 %v1978_v61 }
 0x5a8   : > { %2141 = vmatpush.bf16.msrb.mxu0 %v1974_v18 }
 0x5d5   : > { %v5503_v45 = vpop.permute.xlu2 %4338 }
 0x5dd   : > { %v1277_v25 = vpop.permute.xlu2 %1276 }
 0x5e5   : > { %v5505_v26 = vpop.permute.xlu1 %4333 }
 0x5ea   : > { %v5507_v56 = vpop.permute.xlu0 %1248 }
 0x5ed   : > { %v1275_v22 = vpop.permute.xlu1 %1274 }
 0x5ee   : > { %v1282_v34 = vsel %vm860_vm10, %v1275_v22, %v1277_v25  ;;  %v1290_v51 = vmul.f32 %v5511_v30, %v1275_v22 }
 0x5ef   : > { %v1291_v62 = vmul.f32 %v5515_v21, %v1282_v34 }
 0x5f1   : > { %v4342_v23 = vpack.i.bf16 %v1291_v62, %v1290_v51  ;;  %v1450_v51 = vperm.slane %v4111_v46, 0 }
 0x5f3   : > { %4343 = vrot.lane.b32.xlu2 %v4342_v23, %s4729_s15  ;;  %v1279_v28 = vpop.permute.xlu0 %1278  ;;  %v1452_v23 = vperm.slane %v4111_v46, 2 }
 0x5f4   : > { %v1283_v9 = vsel %vm860_vm10, %v1277_v25, %v1279_v28 }
 0x5f5   : > { %v1292_v13 = vmul.f32 %v5521_v20, %v1283_v9  ;;  %v1281_v17 = vpop.permute.xlu1 %1280  ;;  %v1451_v9 = vperm.slane %v4111_v46, 1 }
 0x5f6   : > { %v1284_v8 = vsel %vm860_vm10, %v1279_v28, %v1281_v17  ;;  %v1294_v0 = vmul.f32 0.0, %v1281_v17  ;;  %v1453_v28 = vperm.slane %v4111_v46, 3 }
 0x5f7   : > { %v1293_v27 = vmul.f32 %v5391_v12, %v1284_v8 }
 0x5f8   : > { %1308 = vrot.lane.b32.xlu1 %v1294_v0, %s4729_s15 }
 0x5f9   : > { %v4347_v42 = vpack.i.bf16 %v1293_v27, %v1292_v13 }
 0x5fb   : > { %4348 = vrot.lane.b32.xlu0 %v4347_v42, %s4729_s15  ;;  %1334 = vrot.lane.b32.xlu2 %v1330_v41, %s4721_s28 }
 0x600   : > { %1338 = vrot.lane.b32.xlu1 %v1332_v57, %s4721_s28 }
 0x603   : > { %1336 = vrot.lane.b32.xlu0 %v1331_v24, %s4721_s28  ;;  %1340 = vrot.lane.b32.xlu2 %v1333_v33, %s4721_s28 }
 0x64d   : > { %v5535_v36 = vpop.permute.xlu2 %4343 }
 0x655   : > { %v1335_v53 = vpop.permute.xlu2 %1334 }
 0x656   : > { %v1350_v3 = vmul.f32 %v5511_v30, %v1335_v53 }
 0x65d   : > { %v1341_v58 = vpop.permute.xlu2 %1340 }
 0x65e   : > { %v1354_v52 = vmul.f32 0.0, %v1341_v58 }
 0x660   : > { %1368 = vrot.lane.b32.xlu2 %v1354_v52, %s4727_s26 }
 0x668   : > { %1398 = vrot.lane.b32.xlu2 %v1392_v43, %s4720_s27  ;;  %v4112_v43 = vld [vmem:[%s7085_s1 + $0x45] ss:$8 sm:$0xf] }
 0x66a   : > { %v5538_v59 = vpop.permute.xlu1 %1308 }
 0x66d   : > { %v5543_v2 = vpop.permute.xlu0 %4348 }
 0x672   : > { %v1339_v16 = vpop.permute.xlu1 %1338 }
 0x673   : > { %v1344_v7 = vsel %vm7157_vm0, %v1339_v16, %v1341_v58 }
 0x674   : > { %v1353_v5 = vmul.f32 %v5391_v12, %v1344_v7  ;;  %v1510_v7 = vperm.slane %v4112_v43, 0 }
 0x675   : > { %v1337_v29 = vpop.permute.xlu0 %1336 }
 0x676   : > { %v1342_v50 = vsel %vm7157_vm0, %v1335_v53, %v1337_v29  ;;  %v1343_v1 = vsel %vm7157_vm0, %v1337_v29, %v1339_v16  ;;  %v1512_v29 = vperm.slane %v4112_v43, 2 }
 0x677   : > { %v1351_v10 = vmul.f32 %v5515_v21, %v1342_v50  ;;  %v1352_v49 = vmul.f32 %v5521_v20, %v1343_v1  ;;  %v1511_v50 = vperm.slane %v4112_v43, 1  ;;  %v1513_v1 = vperm.slane %v4112_v43, 3 }
 0x679   : > { %v4357_v31 = vpack.i.bf16 %v1353_v5, %v1352_v49  ;;  %v4352_v6 = vpack.i.bf16 %v1351_v10, %v1350_v3 }
 0x67b   : > { %4358 = vrot.lane.b32.xlu1 %v4357_v31, %s4727_s26  ;;  %4353 = vrot.lane.b32.xlu0 %v4352_v6, %s4727_s26 }
 0x683   : > { %1396 = vrot.lane.b32.xlu1 %v1391_v4, %s4720_s27  ;;  %1394 = vrot.lane.b32.xlu0 %v1390_v35, %s4720_s27  ;;  %v4113_v4 = vld [vmem:[%s7085_s1 + $0x46] ss:$8 sm:$0xf] }
 0x684   : > { %v1572_v35 = vperm.slane %v4113_v4, 2 }
 0x68b   : > { %1400 = vrot.lane.b32.xlu0 %v1393_v14, %s4720_s27 }
 0x6ba   : > { %v5562_v39 = vpop.permute.xlu2 %1368 }
 0x6c2   : > { %v1399_v48 = vpop.permute.xlu2 %1398 }
 0x6ed   : > { %v5558_v63 = vpop.permute.xlu1 %4358  ;;  %v5560_v11 = vpop.permute.xlu0 %4353 }
 0x6f5   : > { %v1397_v60 = vpop.permute.xlu1 %1396  ;;  %v1395_v54 = vpop.permute.xlu0 %1394 }
 0x6f6   : > { %v1402_v19 = vsel %vm344_vm1, %v1395_v54, %v1397_v60  ;;  %v1410_v61 = vmul.f32 %v5511_v30, %v1395_v54  ;;  %v1403_v47 = vsel %vm344_vm1, %v1397_v60, %v1399_v48 }
 0x6f7   : > { %v1411_v37 = vmul.f32 %v5515_v21, %v1402_v19  ;;  %v1412_v22 = vmul.f32 %v5521_v20, %v1403_v47 }
 0x6f9   : > { %v4362_v44 = vpack.i.bf16 %v1411_v37, %v1410_v61 }
 0x6fb   : > { %4363 = vrot.lane.b32.xlu1 %v4362_v44, %s4728_s29 }
 0x6fd   : > { %v1401_v15 = vpop.permute.xlu0 %1400 }
 0x6fe   : > { %v1404_v18 = vsel %vm344_vm1, %v1399_v48, %v1401_v15  ;;  %v1414_v25 = vmul.f32 0.0, %v1401_v15 }
 0x6ff   : > { %v1413_v34 = vmul.f32 %v5391_v12, %v1404_v18 }
 0x700   : > { %1428 = vrot.lane.b32.xlu0 %v1414_v25, %s4728_s29  ;;  %v1570_v25 = vperm.slane %v4113_v4, 0 }
 0x701   : > { %v4367_v62 = vpack.i.bf16 %v1413_v34, %v1412_v22  ;;  %v1571_v22 = vperm.slane %v4113_v4, 1  ;;  %v1573_v34 = vperm.slane %v4113_v4, 3 }
 0x703   : > { %1454 = vrot.lane.b32.xlu1 %v1450_v51, %s4722_s7  ;;  %4368 = vrot.lane.b32.xlu2 %v4367_v62, %s4728_s29 }
 0x708   : > { %1458 = vrot.lane.b32.xlu0 %v1452_v23, %s4722_s7 }
 0x70b   : > { %1460 = vrot.lane.b32.xlu1 %v1453_v28, %s4722_s7  ;;  %1456 = vrot.lane.b32.xlu2 %v1451_v9, %s4722_s7 }
 0x75d   : > { %v5581_v13 = vpop.permute.xlu2 %4368 }
 0x765   : > { %v1457_v0 = vpop.permute.xlu2 %1456 }
 0x76d   : > { %v5583_v17 = vpop.permute.xlu1 %4363 }
 0x772   : > { %v5585_v8 = vpop.permute.xlu0 %1428 }
 0x775   : > { %v1455_v32 = vpop.permute.xlu1 %1454 }
 0x776   : > { %v1470_v27 = vmul.f32 %v5511_v30, %v1455_v32  ;;  %v1462_v41 = vsel %vm7159_vm3, %v1455_v32, %v1457_v0 }
 0x777   : > { %v1471_v42 = vmul.f32 %v5515_v21, %v1462_v41 }
 0x779   : > { %v4372_v57 = vpack.i.bf16 %v1471_v42, %v1470_v27 }
 0x77a   : > { %v1459_v24 = vpop.permute.xlu0 %1458 }
 0x77b   : > { %4373 = vrot.lane.b32.xlu2 %v4372_v57, %s4726_s19  ;;  %v1463_v33 = vsel %vm7159_vm3, %v1457_v0, %v1459_v24 }
 0x77c   : > { %v1472_v58 = vmul.f32 %v5521_v20, %v1463_v33 }
 0x77d   : > { %v1461_v53 = vpop.permute.xlu1 %1460 }
 0x77e   : > { %v1474_v52 = vmul.f32 0.0, %v1461_v53  ;;  %v1464_v55 = vsel %vm7159_vm3, %v1459_v24, %v1461_v53  ;;  %v4114_v24 = vld [vmem:[%s7085_s1 + $0x47] ss:$8 sm:$0xf] }
 0x77f   : > { %v1473_v16 = vmul.f32 %v5391_v12, %v1464_v55  ;;  %v1630_v43 = vperm.slane %v4114_v24, 0 }
 0x780   : > { %1488 = vrot.lane.b32.xlu1 %v1474_v52, %s4726_s19 }
 0x781   : > { %v4377_v5 = vpack.i.bf16 %v1473_v16, %v1472_v58 }
 0x783   : > { %4378 = vrot.lane.b32.xlu0 %v4377_v5, %s4726_s19  ;;  %1514 = vrot.lane.b32.xlu2 %v1510_v7, %s4723_s10  ;;  %v1632_v7 = vperm.slane %v4114_v24, 2  ;;  %v1633_v5 = vperm.slane %v4114_v24, 3 }
 0x788   : > { %1518 = vrot.lane.b32.xlu1 %v1512_v29, %s4723_s10  ;;  %v1631_v29 = vperm.slane %v4114_v24, 1 }
 0x78b   : > { %1516 = vrot.lane.b32.xlu0 %v1511_v50, %s4723_s10  ;;  %1520 = vrot.lane.b32.xlu2 %v1513_v1, %s4723_s10 }
 0x7d5   : > { %v5604_v3 = vpop.permute.xlu2 %4373 }
 0x7dd   : > { %v1515_v10 = vpop.permute.xlu2 %1514 }
 0x7de   : > { %v1530_v44 = vmul.f32 %v5511_v30, %v1515_v10 }
 0x7e5   : > { %v1521_v49 = vpop.permute.xlu2 %1520 }
 0x7e6   : > { %v1534_v31 = vmul.f32 0.0, %v1521_v49 }
 0x7e8   : > { %1548 = vrot.lane.b32.xlu2 %v1534_v31, %s4725_s16 }
 0x7f0   : > { %1578 = vrot.lane.b32.xlu2 %v1572_v35, %s4724_s13 }
 0x7f2   : > { %v5607_v6 = vpop.permute.xlu1 %1488 }
 0x7f5   : > { %v5612_v14 = vpop.permute.xlu0 %4378 }
 0x7fa   : > { %v1519_v60 = vpop.permute.xlu1 %1518 }
 0x7fb   : > { %v1524_v54 = vsel %vm468_vm2, %v1519_v60, %v1521_v49 }
 0x7fc   : > { %v1533_v61 = vmul.f32 %v5391_v12, %v1524_v54 }
 0x7fd   : > { %v1517_v19 = vpop.permute.xlu0 %1516 }
 0x7fe   : > { %v1522_v37 = vsel %vm468_vm2, %v1515_v10, %v1517_v19  ;;  %v1523_v48 = vsel %vm468_vm2, %v1517_v19, %v1519_v60 }
 0x7ff   : > { %v1531_v47 = vmul.f32 %v5515_v21, %v1522_v37  ;;  %v1532_v46 = vmul.f32 %v5521_v20, %v1523_v48 }
 0x801   : > { %v4382_v15 = vpack.i.bf16 %v1531_v47, %v1530_v44  ;;  %v4387_v18 = vpack.i.bf16 %v1533_v61, %v1532_v46  ;;  %v4115_v46 = vld [vmem:[%s7085_s1 + $0x60] ss:$8 sm:$0xf] }
 0x803   : > { %4383 = vrot.lane.b32.xlu0 %v4382_v15, %s4725_s16  ;;  %4388 = vrot.lane.b32.xlu1 %v4387_v18, %s4725_s16  ;;  %v1690_v18 = vperm.slane %v4115_v46, 0 }
 0x80b   : > { %1574 = vrot.lane.b32.xlu0 %v1570_v25, %s4724_s13  ;;  %1576 = vrot.lane.b32.xlu1 %v1571_v22, %s4724_s13  ;;  %v1692_v22 = vperm.slane %v4115_v46, 2 }
 0x813   : > { %1580 = vrot.lane.b32.xlu0 %v1573_v34, %s4724_s13  ;;  %v1691_v34 = vperm.slane %v4115_v46, 1 }
 0x842   : > { %v5631_v23 = vpop.permute.xlu2 %1548 }
 0x84a   : > { %v1579_v41 = vpop.permute.xlu2 %1578 }
 0x875   : > { %v5627_v51 = vpop.permute.xlu0 %4383  ;;  %v5629_v62 = vpop.permute.xlu1 %4388 }
 0x87d   : > { %v1575_v28 = vpop.permute.xlu0 %1574  ;;  %v1577_v9 = vpop.permute.xlu1 %1576 }
 0x87e   : > { %v1590_v0 = vmul.f32 %v5511_v30, %v1575_v28  ;;  %v1582_v32 = vsel %vm530_vm4, %v1575_v28, %v1577_v9  ;;  %v1583_v57 = vsel %vm530_vm4, %v1577_v9, %v1579_v41  ;;  %v1693_v28 = vperm.slane %v4115_v46, 3 }
 0x87f   : > { %v1591_v27 = vmul.f32 %v5515_v21, %v1582_v32  ;;  %v1592_v52 = vmul.f32 %v5521_v20, %v1583_v57 }
 0x881   : > { %v4392_v42 = vpack.i.bf16 %v1591_v27, %v1590_v0 }
 0x883   : > { %4393 = vrot.lane.b32.xlu1 %v4392_v42, %s4724_s13  ;;  %v4116_v42 = vld [vmem:[%s7085_s1 + $0x61] ss:$8 sm:$0xf] }
 0x884   : > { %v1752_v57 = vperm.slane %v4116_v42, 2 }
 0x885   : > { %v1581_v33 = vpop.permute.xlu0 %1580 }
 0x886   : > { %v1584_v53 = vsel %vm530_vm4, %v1579_v41, %v1581_v33  ;;  %v1594_v58 = vmul.f32 0.0, %v1581_v33 }
 0x887   : > { %v1593_v55 = vmul.f32 %v5391_v12, %v1584_v53 }
 0x888   : > { %1608 = vrot.lane.b32.xlu0 %v1594_v58, %s4724_s13 }
 0x889   : > { %v4397_v16 = vpack.i.bf16 %v1593_v55, %v1592_v52 }
 0x88b   : > { %4398 = vrot.lane.b32.xlu2 %v4397_v16, %s4724_s13  ;;  %1634 = vrot.lane.b32.xlu1 %v1630_v43, %s4725_s16 }
 0x890   : > { %1638 = vrot.lane.b32.xlu0 %v1632_v7, %s4725_s16 }
 0x893   : > { %1640 = vrot.lane.b32.xlu1 %v1633_v5, %s4725_s16  ;;  %1636 = vrot.lane.b32.xlu2 %v1631_v29, %s4725_s16 }
 0x8e5   : > { %v5650_v50 = vpop.permute.xlu2 %4398 }
 0x8ed   : > { %v1637_v49 = vpop.permute.xlu2 %1636 }
 0x8f5   : > { %v5652_v1 = vpop.permute.xlu1 %4393 }
 0x8fa   : > { %v5654_v10 = vpop.permute.xlu0 %1608 }
 0x8fd   : > { %v1635_v31 = vpop.permute.xlu1 %1634 }
 0x8fe   : > { %v1642_v4 = vsel %vm497_vm5, %v1635_v31, %v1637_v49  ;;  %v1650_v35 = vmul.f32 %v5511_v30, %v1635_v31  ;;  %v1751_v31 = vperm.slane %v4116_v42, 1 }
 0x8ff   : > { %v1651_v60 = vmul.f32 %v5515_v21, %v1642_v4  ;;  %v1750_v4 = vperm.slane %v4116_v42, 0 }
 0x901   : > { %v4402_v54 = vpack.i.bf16 %v1651_v60, %v1650_v35  ;;  %v1753_v35 = vperm.slane %v4116_v42, 3 }
 0x902   : > { %v1639_v19 = vpop.permute.xlu0 %1638 }
 0x903   : > { %4403 = vrot.lane.b32.xlu2 %v4402_v54, %s4723_s10  ;;  %v1643_v61 = vsel %vm497_vm5, %v1637_v49, %v1639_v19 }
 0x904   : > { %v1652_v37 = vmul.f32 %v5521_v20, %v1643_v61 }
 0x905   : > { %v1641_v48 = vpop.permute.xlu1 %1640 }
 0x906   : > { %v1644_v44 = vsel %vm497_vm5, %v1639_v19, %v1641_v48  ;;  %v1654_v47 = vmul.f32 0.0, %v1641_v48 }
 0x907   : > { %v1653_v15 = vmul.f32 %v5391_v12, %v1644_v44 }
 0x908   : > { %1668 = vrot.lane.b32.xlu1 %v1654_v47, %s4723_s10 }
 0x909   : > { %v4407_v25 = vpack.i.bf16 %v1653_v15, %v1652_v37 }
 0x90b   : > { %4408 = vrot.lane.b32.xlu0 %v4407_v25, %s4723_s10  ;;  %1694 = vrot.lane.b32.xlu2 %v1690_v18, %s4726_s19  ;;  %v4117_v25 = vld [vmem:[%s7085_s1 + $0x62] ss:$8 sm:$0xf] }
 0x910   : > { %1698 = vrot.lane.b32.xlu1 %v1692_v22, %s4726_s19 }
 0x913   : > { %1696 = vrot.lane.b32.xlu0 %v1691_v34, %s4726_s19  ;;  %1700 = vrot.lane.b32.xlu2 %v1693_v28, %s4726_s19 }
 0x95d   : > { %v5673_v9 = vpop.permute.xlu2 %4403 }
 0x965   : > { %v1695_v0 = vpop.permute.xlu2 %1694 }
 0x966   : > { %v1710_v16 = vmul.f32 %v5511_v30, %v1695_v0 }
 0x96d   : > { %v1701_v32 = vpop.permute.xlu2 %1700 }
 0x96e   : > { %v1714_v27 = vmul.f32 0.0, %v1701_v32 }
 0x970   : > { %1728 = vrot.lane.b32.xlu2 %v1714_v27, %s4722_s7  ;;  %v1810_v27 = vperm.slane %v4117_v25, 0 }
 0x978   : > { %1758 = vrot.lane.b32.xlu2 %v1752_v57, %s4728_s29  ;;  %v1812_v57 = vperm.slane %v4117_v25, 2 }
 0x97a   : > { %v5676_v41 = vpop.permute.xlu1 %1668 }
 0x97d   : > { %v5681_v24 = vpop.permute.xlu0 %4408 }
 0x982   : > { %v1699_v33 = vpop.permute.xlu1 %1698 }
 0x983   : > { %v1704_v53 = vsel %vm435_vm6, %v1699_v33, %v1701_v32 }
 0x984   : > { %v1713_v58 = vmul.f32 %v5391_v12, %v1704_v53  ;;  %v1811_v53 = vperm.slane %v4117_v25, 1 }
 0x985   : > { %v1697_v52 = vpop.permute.xlu0 %1696 }
 0x986   : > { %v1703_v55 = vsel %vm435_vm6, %v1697_v52, %v1699_v33  ;;  %v1702_v43 = vsel %vm435_vm6, %v1695_v0, %v1697_v52  ;;  %v1813_v33 = vperm.slane %v4117_v25, 3 }
 0x987   : > { %v1712_v7 = vmul.f32 %v5521_v20, %v1703_v55  ;;  %v1711_v5 = vmul.f32 %v5515_v21, %v1702_v43 }
 0x989   : > { %v4417_v29 = vpack.i.bf16 %v1713_v58, %v1712_v7  ;;  %v4412_v49 = vpack.i.bf16 %v1711_v5, %v1710_v16 }
 0x98b   : > { %4418 = vrot.lane.b32.xlu1 %v4417_v29, %s4722_s7  ;;  %4413 = vrot.lane.b32.xlu0 %v4412_v49, %s4722_s7 }
 0x993   : > { %1756 = vrot.lane.b32.xlu1 %v1751_v31, %s4728_s29  ;;  %1754 = vrot.lane.b32.xlu0 %v1750_v4, %s4728_s29 }
 0x99b   : > { %1760 = vrot.lane.b32.xlu0 %v1753_v35, %s4728_s29 }
 0x9ca   : > { %v5700_v19 = vpop.permute.xlu2 %1728 }
 0x9d2   : > { %v1759_v46 = vpop.permute.xlu2 %1758 }
 0x9fd   : > { %v5696_v60 = vpop.permute.xlu1 %4418  ;;  %v5698_v54 = vpop.permute.xlu0 %4413 }
 0xa05   : > { %v1757_v61 = vpop.permute.xlu1 %1756  ;;  %v1755_v37 = vpop.permute.xlu0 %1754 }
 0xa06   : > { %v1762_v48 = vsel %vm373_vm8, %v1755_v37, %v1757_v61  ;;  %v1770_v44 = vmul.f32 %v5511_v30, %v1755_v37  ;;  %v1763_v18 = vsel %vm373_vm8, %v1757_v61, %v1759_v46 }
 0xa07   : > { %v1771_v47 = vmul.f32 %v5515_v21, %v1762_v48  ;;  %v1772_v0 = vmul.f32 %v5521_v20, %v1763_v18 }
 0xa09   : > { %v4422_v15 = vpack.i.bf16 %v1771_v47, %v1770_v44 }
 0xa0b   : > { %4423 = vrot.lane.b32.xlu1 %v4422_v15, %s4720_s27 }
 0xa0d   : > { %v1761_v22 = vpop.permute.xlu0 %1760 }
 0xa0e   : > { %v1764_v34 = vsel %vm373_vm8, %v1759_v46, %v1761_v22  ;;  %v1774_v28 = vmul.f32 0.0, %v1761_v22 }
 0xa0f   : > { %v1773_v32 = vmul.f32 %v5391_v12, %v1764_v34  ;;  %v4416_v34 = vunpack.i.h.bf16 %v5698_v54 }
 0xa10   : > { %1788 = vrot.lane.b32.xlu0 %v1774_v28, %s4720_s27  ;;  %v4415_v28 = vunpack.i.l.bf16 %v5698_v54 }
 0xa11   : > { %v4427_v42 = vpack.i.bf16 %v1773_v32, %v1772_v0  ;;  %v4406_v32 = vunpack.i.h.bf16 %v5673_v9 }
 0xa13   : > { %1814 = vrot.lane.b32.xlu1 %v1810_v27, %s4727_s26  ;;  %4428 = vrot.lane.b32.xlu2 %v4427_v42, %s4720_s27  ;;  %v4405_v27 = vunpack.i.l.bf16 %v5673_v9  ;;  %v7227_v9 = vld [vmem:[#allocation10_spill] sm:$0xff] }
 0xa18   : > { %1818 = vrot.lane.b32.xlu0 %v1812_v57, %s4727_s26 }
 0xa1b   : > { %1820 = vrot.lane.b32.xlu1 %v1813_v33, %s4727_s26  ;;  %1816 = vrot.lane.b32.xlu2 %v1811_v53, %s4727_s26  ;;  %v4396_v33 = vunpack.i.h.bf16 %v5652_v1  ;;  %v4395_v53 = vunpack.i.l.bf16 %v5652_v1  ;;  %v4371_v1 = vunpack.i.h.bf16 %v5581_v13 }
 0xa6d   : > { %v5719_v58 = vpop.permute.xlu2 %4428 }
 0xa75   : > { %v1817_v43 = vpop.permute.xlu2 %1816 }
 0xa7d   : > { %v5721_v52 = vpop.permute.xlu1 %4423 }
 0xa7e   : > { %v4426_v18 = vunpack.i.h.bf16 %v5721_v52  ;;  %v4425_v25 = vunpack.i.l.bf16 %v5721_v52  ;;  %v4391_v52 = vunpack.i.h.bf16 %v5629_v62 }
 0xa80   : > { %v1790_v57 = vsel %vm344_vm1, %v4425_v25, %v4426_v18  ;;  %v4355_v25 = vunpack.i.l.bf16 %v5560_v11 }
 0xa82   : > { %v5723_v55 = vpop.permute.xlu0 %1788 }
 0xa85   : > { %v1815_v16 = vpop.permute.xlu1 %1814 }
 0xa86   : > { %v1830_v7 = vmul.f32 %v5511_v30, %v1815_v16  ;;  %v1822_v5 = vsel %vm311_vm7, %v1815_v16, %v1817_v43 }
 0xa87   : > { %v1831_v29 = vmul.f32 %v5515_v21, %v1822_v5  ;;  %v1862_v21 = vld [vmem:[%s7086_s2] sm:$0xff]  ;;  %v4385_v5 = vunpack.i.l.bf16 %v5627_v51 }
 0xa88   : > { %v2034_v47 = vunpack.c.l.b16 %v1862_v21 }
 0xa89   : > { %v4432_v49 = vpack.i.bf16 %v1831_v29, %v1830_v7  ;;  %v4386_v7 = vunpack.i.h.bf16 %v5627_v51  ;;  %v1670_v29 = vsel %vm468_vm2, %v4405_v27, %v4406_v32  ;;  %v4345_v27 = vunpack.i.l.bf16 %v5535_v36 }
 0xa8a   : > { %v1819_v31 = vpop.permute.xlu0 %1818  ;;  %v5738_v46 = vpack.c.b16 %v2034_v47, %v2034_v47 }
 0xa8b   : > { %4433 = vrot.lane.b32.xlu2 %v4432_v49, %s4721_s28  ;;  %v1823_v4 = vsel %vm311_vm7, %v1817_v43, %v1819_v31  ;;  %v1730_v43 = vsel %vm7159_vm3, %v4415_v28, %v4416_v34  ;;  %v5772_v49 = vld [vmem:[%s7085_s1] ss:$8 sm:$0xf]  ;;  %v1550_v47 = vsel %vm497_vm5, %v4385_v5, %v4386_v7 }
 0xa8c   : > { %v1832_v61 = vmul.f32 %v5521_v20, %v1823_v4  ;;  %2064 = vmatmul.bf16.vlgmr.msra.gmra.mxu0 %v5738_v46  ;;  %2090 = vmatmul.bf16.vlgmr.msra.gmra.mxu2 %v5738_v46  ;;  %v2019_v16 = vpack.c.bf16 %v1790_v57, %v1730_v43  ;;  %v2175_v4 = vperm.slane %v5772_v49, 0  ;;  %v4336_v57 = vunpack.i.h.bf16 %v5505_v26 }
 0xa8d   : > { %v1821_v35 = vpop.permute.xlu1 %1820 }
 0xa8e   : > { %v1834_v37 = vmul.f32 0.0, %v1821_v35  ;;  %v1824_v48 = vsel %vm311_vm7, %v1819_v31, %v1821_v35  ;;  %v2176_v31 = vperm.slane %v5772_v49, 1  ;;  %v4376_v35 = vunpack.i.h.bf16 %v5604_v3 }
 0xa8f   : > { %v1833_v44 = vmul.f32 %v5391_v12, %v1824_v48 }
 0xa90   : > { %1848 = vrot.lane.b32.xlu1 %v1834_v37, %s4721_s28  ;;  %v1610_v37 = vsel %vm530_vm4, %v4395_v53, %v4396_v33  ;;  %v4335_v53 = vunpack.i.l.bf16 %v5505_v26 }
 0xa91   : > { %v4437_v30 = vpack.i.bf16 %v1833_v44, %v1832_v61  ;;  %v4375_v61 = vunpack.i.l.bf16 %v5604_v3  ;;  %v2015_v48 = vpack.c.bf16 %v1670_v29, %v1610_v37  ;;  %v4366_v44 = vunpack.i.h.bf16 %v5583_v17 }
 0xa92   : > { %v2035_v29 = vunpack.c.h.b16 %v1862_v21  ;;  %v7216_v37 = vpack.c.bf16 %v5338_v38, %v5308_v40  ;;  %v2027_v21 = vld [vmem:[%s7087_s3] sm:$0xff] }
 0xa93   : > { %4438 = vrot.lane.b32.xlu0 %v4437_v30, %s4721_s28  ;;  %v4365_v30 = vunpack.i.l.bf16 %v5583_v17 }
 0xa98   : > { %2181 = vrot.lane.b32.xlu1 %v2176_v31, %s4721_s28  ;;  %v1250_v31 = vsel %vm7215_vm15, %v4335_v53, %v4336_v57 }
 0xa9b   : > { %2179 = vrot.lane.b32.xlu0 %v2175_v4, %s4721_s28 }
 0xa9c   : > { %2142 = vmatmul.bf16.vlgmr.msrb.gmra.mxu0 %v5738_v46 }
 0xae5   : > { %v5742_v20 = vpop.permute.xlu2 %4433 }
 0xae6   : > { %v4436_v12 = vunpack.i.h.bf16 %v5742_v20  ;;  %v4435_v15 = vunpack.i.l.bf16 %v5742_v20  ;;  %v4410_v20 = vunpack.i.l.bf16 %v5681_v24 }
 0xae8   : > { %v1850_v22 = vsel %vm7157_vm0, %v4435_v15, %v4436_v12  ;;  %v4356_v15 = vunpack.i.h.bf16 %v5560_v11  ;;  %v1671_v54 = vsel %vm468_vm2, %v4406_v32, %v4410_v20 }
 0xae9   : > { %v2023_v0 = vpack.c.bf16 %v1850_v22, %v1850_v22  ;;  %v1490_v22 = vsel %vm435_vm6, %v4375_v61, %v4376_v35  ;;  %v5810_v61 = vpack.c.b16 %v2035_v29, %v2035_v29  ;;  %v7220_v29 = vld [vmem:[#allocation18_spill] sm:$0xff] }
 0xaea   : > { %v2011_v28 = vpack.c.bf16 %v1550_v47, %v1490_v22  ;;  %v1370_v43 = vsel %vm311_vm7, %v4355_v25, %v4356_v15  ;;  %v7217_v47 = vld [vmem:[#allocation19_spill] sm:$0xff]  ;;  %v7218_v25 = vld [vmem:[#allocation20_spill] sm:$0xff] }
 0xaeb   : > { %v2045_v42 = vsel %vm7150_vm11, %v2023_v0, 0  ;;  %v4346_v0 = vunpack.i.h.bf16 %v5535_v36  ;;  %v7219_v22 = vpack.c.bf16 %v7217_v47, %v7218_v25 }
 0xaec   : > { %2071 = vmatpush.bf16.msra.mxu1 %v2045_v42  ;;  %v1430_v42 = vsel %vm373_vm8, %v4365_v30, %v4366_v44 }
 0xaed   : > { %v1310_v5 = vsel %vm831_vm9, %v4345_v27, %v4346_v0  ;;  %v4421_v27 = vunpack.i.h.bf16 %v5696_v60 }
 0xaee   : > { %v2003_v4 = vpack.c.bf16 %v1310_v5, %v1250_v31  ;;  %v4430_v5 = vunpack.i.l.bf16 %v5719_v58  ;;  %v7221_v31 = vld [vmem:[#allocation17_spill] sm:$0xff] }
 0xaf0   : > { %2072 = vmatpush.bf16.msra.mxu1 %v2019_v16  ;;  %v2007_v16 = vpack.c.bf16 %v1430_v42, %v1370_v43  ;;  %v4420_v42 = vunpack.i.l.bf16 %v5696_v60 }
 0xaf2   : > { %v1732_v26 = vsel %vm7159_vm3, %v4420_v42, %v4421_v27 }
 0xaf4   : > { %2073 = vmatpush.bf16.msra.mxu1 %v2015_v48  ;;  %v4737_v48 = vmov 0  }
 0xaf5   : > { %4442 = vset.pattern.permute.xlu2 %v4737_v48  ;;  %4703 = vset.pattern.permute.xlu0 %v4737_v48 }
 0xaf6   : > { %2030 = vperm.xlu2 %4442, %v2027_v21   ;;  %v4411_v21 = vunpack.i.h.bf16 %v5681_v24 }
 0xaf8   : > { %2074 = vmatpush.bf16.msra.mxu1 %v2011_v28 }
 0xafc   : > { %2075 = vmatpush.bf16.msra.mxu1 %v2007_v16  ;;  %v4431_v16 = vunpack.i.h.bf16 %v5719_v58  ;;  %v1672_v58 = vsel %vm468_vm2, %v4410_v20, %v4411_v21 }
 0xb00   : > { %2076 = vmatpush.bf16.msra.mxu1 %v2003_v4  ;;  %v7222_v4 = vpack.c.bf16 %v7220_v29, %v7221_v31  ;;  %v1733_v29 = vsel %vm7159_vm3, %v4421_v27, %v5700_v19  ;;  %v1673_v19 = vsel %vm468_vm2, %v4411_v21, %v5676_v41 }
 0xb02   : > { %v1849_v28 = vpop.permute.xlu1 %1848 }
 0xb03   : > { %4118 = vmatmul.msk.bf16.vlgmr.msra.gmra.mxu1 %vm7144_vm14, %v5810_v61 }
 0xb04   : > { %2108 = vmatpush.bf16.msrb.mxu1 %v7216_v37 }
 0xb05   : > { %v5820_v30 = vpop.permute.xlu0 %4438 }
 0xb06   : > { %v4441_v40 = vunpack.i.h.bf16 %v5820_v30  ;;  %v4440_v38 = vunpack.i.l.bf16 %v5820_v30 }
 0xb08   : > { %2109 = vmatpush.bf16.msrb.mxu1 %v7219_v22  ;;  %v1851_v53 = vsel %vm7157_vm0, %v4436_v12, %v4440_v38  ;;  %v1853_v43 = vsel %vm7157_vm0, %v4441_v40, %v1849_v28  ;;  %v1793_v12 = vsel %vm344_vm1, %v4431_v16, %v5723_v55  ;;  %v1791_v22 = vsel %vm344_vm1, %v4426_v18, %v4430_v5  ;;  %v7223_v28 = vld [vmem:[#allocation16_spill] sm:$0xff] }
 0xb09   : > { %v2024_v37 = vpack.c.bf16 %v1851_v53, %v1851_v53  ;;  %v2026_v48 = vpack.c.bf16 %v1853_v43, %v1853_v43  ;;  %v7224_v53 = vld [vmem:[#allocation15_spill] sm:$0xff]  ;;  %v1731_v55 = vsel %vm7159_vm3, %v4416_v34, %v4420_v42  ;;  %v4390_v18 = vunpack.i.l.bf16 %v5629_v62 }
 0xb0a   : > { %v7225_v43 = vpack.c.bf16 %v7223_v28, %v7224_v53  ;;  %v2020_v31 = vpack.c.bf16 %v1791_v22, %v1731_v55  ;;  %v4381_v34 = vunpack.i.h.bf16 %v5612_v14  ;;  %v4360_v55 = vunpack.i.l.bf16 %v5558_v63 }
 0xb0b   : > { %v2048_v47 = vsel %vm7150_vm11, %v2024_v37, 0  ;;  %v2054_v25 = vsel %vm7150_vm11, %v2026_v48, 0  ;;  %v4401_v37 = vunpack.i.h.bf16 %v5650_v50  ;;  %v4400_v48 = vunpack.i.l.bf16 %v5650_v50 }
 0xb0c   : > { %2110 = vmatpush.bf16.msrb.mxu1 %v7222_v4  ;;  %2097 = vmatpush.bf16.msra.mxu3 %v2048_v47  ;;  %v2022_v4 = vpack.c.bf16 %v1793_v12, %v1733_v29  ;;  %v4380_v12 = vunpack.i.l.bf16 %v5612_v14  ;;  %v1551_v53 = vsel %vm497_vm5, %v4386_v7, %v4390_v18  ;;  %v7229_v29 = vld [vmem:[#allocation13_spill] sm:$0xff]  ;;  %v2178_v7 = vperm.slane %v5772_v49, 3  ;;  %v2065_v14 = vpop.f32.mrf.mxu0 }
 0xb0d   : > { %2149 = vmatpush.bf16.msrb.mxu2 %v2054_v25  ;;  %v1613_v47 = vsel %vm530_vm4, %v4401_v37, %v5654_v10  ;;  %v7226_v25 = vld [vmem:[#allocation14_spill] sm:$0xff]  ;;  %v1611_v41 = vsel %vm530_vm4, %v4396_v33, %v4400_v48  ;;  %v1553_v10 = vsel %vm497_vm5, %v4391_v52, %v5631_v23  ;;  %v4370_v33 = vunpack.i.l.bf16 %v5581_v13 }
 0xb0e   : > { %v7228_v22 = vpack.c.bf16 %v7226_v25, %v7227_v9  ;;  %v2016_v32 = vpack.c.bf16 %v1671_v54, %v1611_v41  ;;  %v2018_v28 = vpack.c.bf16 %v1673_v19, %v1613_v47  ;;  %v1491_v23 = vsel %vm435_vm6, %v4376_v35, %v4380_v12  ;;  %2185 = vrot.lane.b32.xlu0 %v2178_v7, %s4721_s28  ;;  %v7232_v47 = vld [vmem:[#allocation6_spill] sm:$0xff]  ;;  %v7233_v25 = vld [vmem:[#allocation12_spill] sm:$0xff]  ;;  %v7235_v41 = vld [vmem:[#allocation9_spill] sm:$0xff] }
 0xb0f   : > { %v4350_v13 = vunpack.i.l.bf16 %v5543_v2  ;;  %v1433_v19 = vsel %vm373_vm8, %v4371_v1, %v5585_v8  ;;  %v1431_v3 = vsel %vm373_vm8, %v4366_v44, %v4370_v33  ;;  %v4351_v35 = vunpack.i.h.bf16 %v5543_v2 }
 0xb10   : > { %2111 = vmatpush.bf16.msrb.mxu1 %v7225_v43  ;;  %2098 = vmatpush.bf16.msra.mxu3 %v2020_v31  ;;  %v4361_v43 = vunpack.i.h.bf16 %v5558_v63  ;;  %v7230_v31 = vld [vmem:[#allocation11_spill] sm:$0xff]  ;;  %v1493_v63 = vsel %vm435_vm6, %v4381_v34, %v5607_v6  ;;  %v2177_v6 = vperm.slane %v5772_v49, 2  ;;  %v7234_v9 = vpack.c.bf16 %v7232_v47, %v7233_v25 }
 0xb11   : > { %2150 = vmatpush.bf16.msrb.mxu2 %v2022_v4  ;;  %v7231_v51 = vpack.c.bf16 %v7229_v29, %v7230_v31  ;;  %v2012_v4 = vpack.c.bf16 %v1551_v53, %v1491_v23  ;;  %v2014_v54 = vpack.c.bf16 %v1553_v10, %v1493_v63  ;;  %v1371_v8 = vsel %vm311_vm7, %v4356_v15, %v4360_v55  ;;  %v2180_v53 = vpop.permute.xlu0 %2179  ;;  %v4122_v23 = vld [vmem:[%s7085_s1 + $0x1] ss:$8 sm:$0xf] }
 0xb12   : > { %v1373_v17 = vsel %vm311_vm7, %v4361_v43, %v5562_v39  ;;  %v1852_v2 = vsel %vm7157_vm0, %v4440_v38, %v4441_v40  ;;  %v2008_v44 = vpack.c.bf16 %v1431_v3, %v1371_v8  ;;  %2183 = vrot.lane.b32.xlu2 %v2177_v6, %s4721_s28  ;;  %v4340_v49 = vunpack.i.l.bf16 %v5503_v45  ;;  %v7236_v40 = vld [vmem:[#allocation4_spill] sm:$0xff] }
 0xb13   : > { %v1311_v11 = vsel %vm831_vm9, %v4346_v0, %v4350_v13  ;;  %v4341_v15 = vunpack.i.h.bf16 %v5503_v45  ;;  %v1313_v39 = vsel %vm831_vm9, %v4351_v35, %v5538_v59  ;;  %v2025_v30 = vpack.c.bf16 %v1852_v2, %v1852_v2 }
 0xb14   : > { %2112 = vmatpush.bf16.msrb.mxu1 %v7228_v22  ;;  %2099 = vmatpush.bf16.msra.mxu3 %v2016_v32  ;;  %v2010_v22 = vpack.c.bf16 %v1433_v19, %v1373_v17  ;;  %v7237_v38 = vpack.c.bf16 %v7235_v41, %v7236_v40  ;;  %v1251_v32 = vsel %vm7215_vm15, %v4336_v57, %v4340_v49  ;;  %v2067_v20 = vpop.f32.mrf.mxu0  ;;  %v2195_v29 = vmul.f32 0.0, %v2180_v53  ;;  %vm7255_vm15 = vmmov %vm7238_vm13 }
 0xb15   : > { %2151 = vmatpush.bf16.msrb.mxu2 %v2018_v28  ;;  %v1253_v36 = vsel %vm7238_vm13, %v4341_v15, %v5507_v56  ;;  %v2004_v0 = vpack.c.bf16 %v1311_v11, %v1251_v32  ;;  %v2051_v45 = vsel %vm7150_vm11, %v2025_v30, 0  ;;  %v1792_v59 = vsel %vm344_vm1, %v4430_v5, %v4431_v16 }
 0xb16   : > { %v2006_v28 = vpack.c.bf16 %v1313_v39, %v1253_v36  ;;  %v2021_v56 = vpack.c.bf16 %v1792_v59, %v1732_v26  ;;  %v1612_v60 = vsel %vm530_vm4, %v4400_v48, %v4401_v37  ;;  %v1552_v57 = vsel %vm497_vm5, %v4390_v18, %v4391_v52  ;;  %v2091_v52 = vpop.f32.mrf.mxu2 }
 0xb17   : > { %v1492_v24 = vsel %vm435_vm6, %v4380_v12, %v4381_v34  ;;  %v1432_v42 = vsel %vm373_vm8, %v4370_v33, %v4371_v1  ;;  %v1372_v50 = vsel %vm311_vm7, %v4360_v55, %v4361_v43  ;;  %v1312_v5 = vsel %vm831_vm9, %v4350_v13, %v4351_v35  ;;  %v2182_v12 = vpop.permute.xlu1 %2181 }
 0xb18   : > { %2113 = vmatpush.bf16.msrb.mxu1 %v7231_v51  ;;  %2100 = vmatpush.bf16.msra.mxu3 %v2012_v4  ;;  %v2013_v27 = vpack.c.bf16 %v1552_v57, %v1492_v24  ;;  %v2009_v16 = vpack.c.bf16 %v1432_v42, %v1372_v50  ;;  %v1252_v62 = vsel %vm7238_vm13, %v4340_v49, %v4341_v15  ;;  %v2234_v63 = vperm.slane %v4122_v23, 0 }
 0xb19   : > { %2152 = vmatpush.bf16.msrb.mxu2 %v2014_v54  ;;  %v2005_v21 = vpack.c.bf16 %v1312_v5, %v1252_v62  ;;  %v2187_v1 = vsel %vm7157_vm0, %v2180_v53, %v2182_v12  ;;  %v2237_v7 = vperm.slane %v4122_v23, 3  ;;  %v2236_v17 = vperm.slane %v4122_v23, 2 }
 0xb1c   : > { %2114 = vmatpush.bf16.msrb.mxu1 %v7234_v9  ;;  %2101 = vmatpush.bf16.msra.mxu3 %v2008_v44  ;;  %v2143_v37 = vpop.f32.mrf.mxu0 }
 0xb1d   : > { %2153 = vmatpush.bf16.msrb.mxu2 %v2010_v22 }
 0xb1e   : > { %v2093_v18 = vpop.f32.mrf.mxu2 }
 0xb20   : > { %2115 = vmatpush.bf16.msrb.mxu1 %v7237_v38  ;;  %2102 = vmatpush.bf16.msra.mxu3 %v2004_v0 }
 0xb21   : > { %2154 = vmatpush.bf16.msrb.mxu2 %v2006_v28  ;;  %v2235_v28 = vperm.slane %v4122_v23, 1 }
 0xb23   : > { %2116 = vmatmul.bf16.vlgmr.msrb.gmra.mxu1 %v5738_v46  ;;  %4119 = vmatmul.msk.bf16.vlgmr.msra.gmra.mxu3 %vm7144_vm14, %v5810_v61  ;;  %v2017_v46 = vpack.c.bf16 %v1672_v58, %v1612_v60  ;;  %v4123_v58 = vld [vmem:[%s7085_s1 + $0x2] ss:$8 sm:$0xf] }
 0xb24   : > { %2123 = vmatpush.bf16.msrb.mxu3 %v2051_v45  ;;  %4121 = vmatmul.msk.bf16.vlgmr.msrb.gmra.mxu2 %vm7144_vm14, %v5810_v61  ;;  %v2145_v55 = vpop.f32.mrf.mxu0  ;;  %v2295_v60 = vperm.slane %v4123_v58, 2  ;;  %v2293_v18 = vperm.slane %v4123_v58, 0 }
 0xb25   : > { %v4124_v55 = vld [vmem:[%s7085_s1 + $0x3] ss:$8 sm:$0xf] }
 0xb28   : > { %2124 = vmatpush.bf16.msrb.mxu3 %v2021_v56 }
 0xb2c   : > { %2125 = vmatpush.bf16.msrb.mxu3 %v2017_v46 }
 0xb30   : > { %2126 = vmatpush.bf16.msrb.mxu3 %v2013_v27 }
 0xb34   : > { %2127 = vmatpush.bf16.msrb.mxu3 %v2009_v16 }
 0xb38   : > { %2128 = vmatpush.bf16.msrb.mxu3 %v2005_v21 }
 0xb3b   : > { %4120 = vmatmul.msk.bf16.vlgmr.msrb.gmra.mxu3 %vm7144_vm14, %v5810_v61  ;;  %vm7256_vm14 = vmmov %vm7238_vm13 }
 0xb50   : > { %v2031_v48 = vpop.permute.xlu2 %2030 }
 0xb51   : > { %v2066_v34 = vadd.f32 %v2065_v14, %v2031_v48  ;;  %v2144_v13 = vadd.f32 %v2143_v37, %v2031_v48  ;;  %v2092_v2 = vadd.f32 %v2091_v52, %v2031_v48  ;;  %v2294_v37 = vperm.slane %v4123_v58, 1 }
 0xb6c   : > { %v2184_v11 = vpop.permute.xlu2 %2183 }
 0xb6d   : > { %v2188_v41 = vsel %vm7157_vm0, %v2182_v12, %v2184_v11 }
 0xb80   : > { %v2078_v10 = vpop.f32.mrf.mxu1  ;;  %v2186_v6 = vpop.permute.xlu0 %2185 }
 0xb81   : > { %v2079_v43 = vadd.f32 %v2078_v10, %v2066_v34  ;;  %v2189_v40 = vsel %vm7157_vm0, %v2184_v11, %v2186_v6 }
 0xb83   : > { %v6001_v33 = vmax.f32 %v2079_v43, 0.0 }
 0xb85   : > { %v2196_v31 = vmul.f32 %v2187_v1, %v6001_v33  ;;  %v2354_v1 = vperm.slane %v4124_v55, 2 }
 0xb87   : > { %v4443_v61 = vpack.i.bf16 %v2196_v31, %v2195_v29 }
 0xb88   : > { %v2080_v51 = vpop.f32.mrf.mxu1 }
 0xb89   : > { %4444 = vrot.lane.b32.xlu1 %v4443_v61, %s4727_s26 }
 0xb91   : > { %2238 = vrot.lane.b32.xlu1 %v2234_v63, %s4720_s27 }
 0xb99   : > { %2244 = vrot.lane.b32.xlu1 %v2237_v7, %s4720_s27 }
 0xba0   : > { %v2117_v4 = vpop.f32.mrf.mxu1 }
 0xba1   : > { %v2118_v22 = vadd.f32 %v2117_v4, %v2031_v48  ;;  %v2296_v48 = vperm.slane %v4123_v58, 3 }
 0xba6   : > { %v2104_v19 = vpop.f32.mrf.mxu3 }
 0xba7   : > { %v2156_v3 = vpop.f32.mrf.mxu2  ;;  %v2105_v44 = vadd.f32 %v2104_v19, %v2092_v2 }
 0xba8   : > { %v2119_v54 = vpop.f32.mrf.mxu1  ;;  %v2157_v35 = vadd.f32 %v2156_v3, %v2144_v13 }
 0xba9   : > { %v6015_v15 = vmax.f32 %v2105_v44, 0.0  ;;  %v2353_v44 = vperm.slane %v4124_v55, 1 }
 0xbaa   : > { %v6010_v47 = vmax.f32 %v2157_v35, 0.0 }
 0xbab   : > { %v2197_v38 = vmul.f32 %v2188_v41, %v6015_v15 }
 0xbac   : > { %v2199_v25 = vmul.f32 %v2186_v6, %v6010_v47 }
 0xbae   : > { %2213 = vrot.lane.b32.xlu0 %v2199_v25, %s4727_s26  ;;  %v2106_v9 = vpop.f32.mrf.mxu3 }
 0xbaf   : > { %v2158_v8 = vpop.f32.mrf.mxu2 }
 0xbb6   : > { %2242 = vrot.lane.b32.xlu0 %v2236_v17, %s4720_s27 }
 0xbbe   : > { %v2130_v49 = vpop.f32.mrf.mxu3 }
 0xbbf   : > { %v2131_v39 = vadd.f32 %v2130_v49, %v2118_v22  ;;  %v2352_v22 = vperm.slane %v4124_v55, 0  ;;  %v2355_v49 = vperm.slane %v4124_v55, 3 }
 0xbc1   : > { %v6017_v30 = vmax.f32 %v2131_v39, 0.0 }
 0xbc3   : > { %v2198_v32 = vmul.f32 %v2189_v40, %v6017_v30 }
 0xbc5   : > { %v4448_v36 = vpack.i.bf16 %v2198_v32, %v2197_v38 }
 0xbc6   : > { %v2132_v0 = vpop.f32.mrf.mxu3 }
 0xbc7   : > { %4449 = vrot.lane.b32.xlu2 %v4448_v36, %s4727_s26 }
 0xbcf   : > { %2240 = vrot.lane.b32.xlu2 %v2235_v28, %s4720_s27 }
 0xbfb   : > { %v6025_v45 = vpop.permute.xlu1 %4444 }
 0xc03   : > { %v2239_v59 = vpop.permute.xlu1 %2238 }
 0xc04   : > { %v2254_v42 = vmul.f32 0.0, %v2239_v59 }
 0xc0b   : > { %v2245_v26 = vpop.permute.xlu1 %2244 }
 0xc0c   : > { %v2258_v56 = vmul.f32 %v2245_v26, %v6010_v47 }
 0xc0e   : > { %2272 = vrot.lane.b32.xlu1 %v2258_v56, %s4728_s29  ;;  %v4125_v56 = vld [vmem:[%s7085_s1 + $0x4] ss:$8 sm:$0xf] }
 0xc16   : > { %2301 = vrot.lane.b32.xlu1 %v2295_v60, %s4722_s7 }
 0xc20   : > { %v6035_v57 = vpop.permute.xlu0 %2213 }
 0xc21   : > { %v6033_v46 = vpop.permute.xlu2 %4449  ;;  %7239 = vst [vmem:[#allocation7_spill] sm:$0xff] %v6035_v57 }
 0xc22   : > { %v7138_v29 = vunpack.i.h.bf16 %v6033_v46  ;;  %v7143_v31 = vunpack.i.l.bf16 %v6033_v46 }
 0xc24   : > { %v6069_v63 = vsel %vm311_vm7, %v7143_v31, %v7138_v29 }
 0xc25   : > { %7241 = vst [vmem:[#allocation5_spill] sm:$0xff] %v6069_v63 }
 0xc28   : > { %v2243_v16 = vpop.permute.xlu0 %2242 }
 0xc29   : > { %v2241_v24 = vpop.permute.xlu2 %2240  ;;  %v2248_v62 = vsel %vm344_vm1, %v2243_v16, %v2245_v26 }
 0xc2a   : > { %v2246_v27 = vsel %vm344_vm1, %v2239_v59, %v2241_v24  ;;  %v2247_v5 = vsel %vm344_vm1, %v2241_v24, %v2243_v16  ;;  %v2257_v20 = vmul.f32 %v2248_v62, %v6017_v30  ;;  %v2414_v62 = vperm.slane %v4125_v56, 3 }
 0xc2b   : > { %v2255_v50 = vmul.f32 %v2246_v27, %v6001_v33  ;;  %v2256_v14 = vmul.f32 %v2247_v5, %v6015_v15  ;;  %v2413_v5 = vperm.slane %v4125_v56, 2 }
 0xc2d   : > { %v4453_v21 = vpack.i.bf16 %v2255_v50, %v2254_v42  ;;  %v4458_v52 = vpack.i.bf16 %v2257_v20, %v2256_v14  ;;  %v2411_v50 = vperm.slane %v4125_v56, 0 }
 0xc2f   : > { %4454 = vrot.lane.b32.xlu2 %v4453_v21, %s4728_s29  ;;  %4459 = vrot.lane.b32.xlu0 %v4458_v52, %s4728_s29  ;;  %v2412_v21 = vperm.slane %v4125_v56, 1 }
 0xc37   : > { %2297 = vrot.lane.b32.xlu2 %v2293_v18, %s4722_s7  ;;  %2299 = vrot.lane.b32.xlu0 %v2294_v37, %s4722_s7 }
 0xc3f   : > { %2303 = vrot.lane.b32.xlu2 %v2296_v48, %s4722_s7 }
 0xc80   : > { %v6052_v43 = vpop.permute.xlu1 %2272 }
 0xc81   : > { %7240 = vst [vmem:[#allocation8_spill] sm:$0xff] %v6052_v43 }
 0xc88   : > { %v2302_v4 = vpop.permute.xlu1 %2301 }
 0xc89   : > { %v6048_v34 = vpop.permute.xlu2 %4454 }
 0xc91   : > { %v2298_v12 = vpop.permute.xlu2 %2297 }
 0xc92   : > { %v2313_v6 = vmul.f32 0.0, %v2298_v12 }
 0xc99   : > { %v2304_v53 = vpop.permute.xlu2 %2303 }
 0xc9a   : > { %v2317_v10 = vmul.f32 %v2304_v53, %v6010_v47  ;;  %v2307_v13 = vsel %vm7159_vm3, %v2302_v4, %v2304_v53 }
 0xc9b   : > { %v2316_v25 = vmul.f32 %v2307_v13, %v6017_v30 }
 0xc9c   : > { %2331 = vrot.lane.b32.xlu2 %v2317_v10, %s4726_s19 }
 0xca1   : > { %v6059_v61 = vpop.permute.xlu0 %4459 }
 0xca2   : > { %v7139_v51 = vunpack.i.h.bf16 %v6059_v61  ;;  %v7145_v23 = vunpack.i.l.bf16 %v6059_v61 }
 0xca4   : > { %2360 = vrot.lane.b32.xlu2 %v2354_v1, %s4723_s10  ;;  %v6076_v7 = vsel %vm373_vm8, %v7145_v23, %v7139_v51 }
 0xca5   : > { %7242 = vst [vmem:[#allocation19_spill] sm:$0xff] %v6076_v7 }
 0xca9   : > { %v2300_v19 = vpop.permute.xlu0 %2299 }
 0xcaa   : > { %v2306_v3 = vsel %vm7159_vm3, %v2300_v19, %v2302_v4  ;;  %v2305_v35 = vsel %vm7159_vm3, %v2298_v12, %v2300_v19 }
 0xcab   : > { %v2315_v9 = vmul.f32 %v2306_v3, %v6015_v15  ;;  %v2314_v8 = vmul.f32 %v2305_v35, %v6001_v33 }
 0xcad   : > { %v4468_v17 = vpack.i.bf16 %v2316_v25, %v2315_v9  ;;  %v4463_v2 = vpack.i.bf16 %v2314_v8, %v2313_v6  ;;  %v4126_v9 = vld [vmem:[%s7085_s1 + $0x5] ss:$8 sm:$0xf] }
 0xcaf   : > { %4469 = vrot.lane.b32.xlu1 %v4468_v17, %s4726_s19  ;;  %4464 = vrot.lane.b32.xlu0 %v4463_v2, %s4726_s19 }
 0xcb7   : > { %2358 = vrot.lane.b32.xlu1 %v2353_v44, %s4723_s10  ;;  %2356 = vrot.lane.b32.xlu0 %v2352_v22, %s4723_s10 }
 0xcbf   : > { %2362 = vrot.lane.b32.xlu0 %v2355_v49, %s4723_s10  ;;  %v2470_v49 = vperm.slane %v4126_v9, 0 }
 0xcf6   : > { %v6095_v41 = vpop.permute.xlu2 %2331 }
 0xcf7   : > { %7243 = vst [vmem:[#allocation20_spill] sm:$0xff] %v6095_v41 }
 0xcfe   : > { %v2361_v28 = vpop.permute.xlu2 %2360 }
 0xd21   : > { %v6091_v11 = vpop.permute.xlu1 %4469  ;;  %v6093_v39 = vpop.permute.xlu0 %4464 }
 0xd22   : > { %v7140_v14 = vunpack.i.h.bf16 %v6091_v11  ;;  %v7146_v20 = vunpack.i.l.bf16 %v6091_v11 }
 0xd24   : > { %v6125_v48 = vsel %vm435_vm6, %v7146_v20, %v7140_v14 }
 0xd25   : > { %7244 = vst [vmem:[#allocation18_spill] sm:$0xff] %v6125_v48 }
 0xd29   : > { %v2359_v40 = vpop.permute.xlu1 %2358  ;;  %v2357_v38 = vpop.permute.xlu0 %2356 }
 0xd2a   : > { %v2364_v32 = vsel %vm468_vm2, %v2357_v38, %v2359_v40  ;;  %v2372_v36 = vmul.f32 0.0, %v2357_v38  ;;  %v2365_v26 = vsel %vm468_vm2, %v2359_v40, %v2361_v28  ;;  %v2472_v38 = vperm.slane %v4126_v9, 2 }
 0xd2b   : > { %v2373_v0 = vmul.f32 %v2364_v32, %v6001_v33  ;;  %v2374_v27 = vmul.f32 %v2365_v26, %v6015_v15  ;;  %v2471_v32 = vperm.slane %v4126_v9, 1 }
 0xd2d   : > { %v4473_v59 = vpack.i.bf16 %v2373_v0, %v2372_v36  ;;  %v2473_v36 = vperm.slane %v4126_v9, 3 }
 0xd2f   : > { %4474 = vrot.lane.b32.xlu1 %v4473_v59, %s4725_s16 }
 0xd31   : > { %v2363_v58 = vpop.permute.xlu0 %2362 }
 0xd32   : > { %v2366_v60 = vsel %vm468_vm2, %v2361_v28, %v2363_v58  ;;  %v2376_v24 = vmul.f32 %v2363_v58, %v6010_v47  ;;  %v4127_v58 = vld [vmem:[%s7085_s1 + $0x6] ss:$8 sm:$0xf] }
 0xd33   : > { %v2375_v42 = vmul.f32 %v2366_v60, %v6017_v30  ;;  %v2531_v60 = vperm.slane %v4127_v58, 2 }
 0xd34   : > { %2390 = vrot.lane.b32.xlu0 %v2376_v24, %s4725_s16 }
 0xd35   : > { %v4478_v16 = vpack.i.bf16 %v2375_v42, %v2374_v27 }
 0xd37   : > { %2415 = vrot.lane.b32.xlu1 %v2411_v50, %s4724_s13  ;;  %4479 = vrot.lane.b32.xlu2 %v4478_v16, %s4725_s16 }
 0xd3c   : > { %2419 = vrot.lane.b32.xlu0 %v2413_v5, %s4724_s13 }
 0xd3f   : > { %2421 = vrot.lane.b32.xlu1 %v2414_v62, %s4724_s13  ;;  %2417 = vrot.lane.b32.xlu2 %v2412_v21, %s4724_s13 }
 0xd91   : > { %v6116_v52 = vpop.permute.xlu2 %4479 }
 0xd92   : > { %v7141_v18 = vunpack.i.h.bf16 %v6116_v52  ;;  %v7147_v37 = vunpack.i.l.bf16 %v6116_v52 }
 0xd94   : > { %v6132_v12 = vsel %vm497_vm5, %v7147_v37, %v7141_v18 }
 0xd95   : > { %7245 = vst [vmem:[#allocation17_spill] sm:$0xff] %v6132_v12 }
 0xd99   : > { %v2418_v1 = vpop.permute.xlu2 %2417 }
 0xda1   : > { %v6136_v10 = vpop.permute.xlu1 %4474 }
 0xda6   : > { %v6138_v55 = vpop.permute.xlu0 %2390 }
 0xda7   : > { %7246 = vst [vmem:[#allocation16_spill] sm:$0xff] %v6138_v55 }
 0xda9   : > { %v2416_v4 = vpop.permute.xlu1 %2415 }
 0xdaa   : > { %v2431_v13 = vmul.f32 0.0, %v2416_v4  ;;  %v2423_v19 = vsel %vm530_vm4, %v2416_v4, %v2418_v1 }
 0xdab   : > { %v2432_v3 = vmul.f32 %v2423_v19, %v6001_v33 }
 0xdad   : > { %v4483_v35 = vpack.i.bf16 %v2432_v3, %v2431_v13  ;;  %v2529_v3 = vperm.slane %v4127_v58, 0 }
 0xdae   : > { %v2420_v6 = vpop.permute.xlu0 %2419 }
 0xdaf   : > { %4484 = vrot.lane.b32.xlu2 %v4483_v35, %s4724_s13  ;;  %v2424_v25 = vsel %vm530_vm4, %v2418_v1, %v2420_v6  ;;  %v2530_v35 = vperm.slane %v4127_v58, 1 }
 0xdb0   : > { %v2433_v44 = vmul.f32 %v2424_v25, %v6015_v15 }
 0xdb1   : > { %v2422_v8 = vpop.permute.xlu1 %2421 }
 0xdb2   : > { %v2425_v17 = vsel %vm530_vm4, %v2420_v6, %v2422_v8  ;;  %v2435_v2 = vmul.f32 %v2422_v8, %v6010_v47  ;;  %v2532_v6 = vperm.slane %v4127_v58, 3 }
 0xdb3   : > { %v2434_v22 = vmul.f32 %v2425_v17, %v6017_v30 }
 0xdb4   : > { %2449 = vrot.lane.b32.xlu1 %v2435_v2, %s4724_s13 }
 0xdb5   : > { %v4488_v40 = vpack.i.bf16 %v2434_v22, %v2433_v44 }
 0xdb7   : > { %4489 = vrot.lane.b32.xlu0 %v4488_v40, %s4724_s13  ;;  %2474 = vrot.lane.b32.xlu2 %v2470_v49, %s4725_s16 }
 0xdbc   : > { %2478 = vrot.lane.b32.xlu1 %v2472_v38, %s4725_s16 }
 0xdbf   : > { %2476 = vrot.lane.b32.xlu0 %v2471_v32, %s4725_s16  ;;  %2480 = vrot.lane.b32.xlu2 %v2473_v36, %s4725_s16 }
 0xe09   : > { %v6157_v0 = vpop.permute.xlu2 %4484 }
 0xe11   : > { %v2475_v28 = vpop.permute.xlu2 %2474 }
 0xe12   : > { %v2490_v62 = vmul.f32 0.0, %v2475_v28 }
 0xe19   : > { %v2481_v59 = vpop.permute.xlu2 %2480 }
 0xe1a   : > { %v2494_v26 = vmul.f32 %v2481_v59, %v6010_v47 }
 0xe1c   : > { %2508 = vrot.lane.b32.xlu2 %v2494_v26, %s4723_s10 }
 0xe24   : > { %2537 = vrot.lane.b32.xlu2 %v2531_v60, %s4726_s19 }
 0xe26   : > { %v6161_v56 = vpop.permute.xlu1 %2449 }
 0xe27   : > { %7247 = vst [vmem:[#allocation15_spill] sm:$0xff] %v6161_v56 }
 0xe29   : > { %v6166_v24 = vpop.permute.xlu0 %4489 }
 0xe2a   : > { %v7142_v25 = vunpack.i.h.bf16 %v6166_v24  ;;  %v7148_v9 = vunpack.i.l.bf16 %v6166_v24 }
 0xe2c   : > { %v6195_v38 = vsel %vm530_vm4, %v7148_v9, %v7142_v25  ;;  %v4131_v25 = vld [vmem:[%s7085_s1 + $0x22] ss:$8 sm:$0xf] }
 0xe2d   : > { %7248 = vst [vmem:[#allocation14_spill] sm:$0xff] %v6195_v38 }
 0xe2e   : > { %v2479_v27 = vpop.permute.xlu1 %2478 }
 0xe2f   : > { %v2484_v42 = vsel %vm497_vm5, %v2479_v27, %v2481_v59 }
 0xe30   : > { %v2493_v21 = vmul.f32 %v2484_v42, %v6017_v30 }
 0xe31   : > { %v2477_v50 = vpop.permute.xlu0 %2476 }
 0xe32   : > { %v2482_v16 = vsel %vm497_vm5, %v2475_v28, %v2477_v50  ;;  %v2483_v5 = vsel %vm497_vm5, %v2477_v50, %v2479_v27 }
 0xe33   : > { %v2491_v1 = vmul.f32 %v2482_v16, %v6001_v33  ;;  %v2492_v4 = vmul.f32 %v2483_v5, %v6015_v15  ;;  %v4128_v5 = vld [vmem:[%s7085_s1 + $0x7] ss:$8 sm:$0xf] }
 0xe35   : > { %v4493_v13 = vpack.i.bf16 %v2491_v1, %v2490_v62  ;;  %v4498_v19 = vpack.i.bf16 %v2493_v21, %v2492_v4 }
 0xe37   : > { %4494 = vrot.lane.b32.xlu0 %v4493_v13, %s4723_s10  ;;  %4499 = vrot.lane.b32.xlu1 %v4498_v19, %s4723_s10  ;;  %v2588_v19 = vperm.slane %v4128_v5, 0 }
 0xe3f   : > { %2533 = vrot.lane.b32.xlu0 %v2529_v3, %s4726_s19  ;;  %2535 = vrot.lane.b32.xlu1 %v2530_v35, %s4726_s19  ;;  %v2590_v35 = vperm.slane %v4128_v5, 2 }
 0xe47   : > { %2539 = vrot.lane.b32.xlu0 %v2532_v6, %s4726_s19  ;;  %v2591_v6 = vperm.slane %v4128_v5, 3 }
 0xe76   : > { %v2509_v49 = vpop.permute.xlu2 %2508 }
 0xe7e   : > { %v2538_v42 = vpop.permute.xlu2 %2537 }
 0xea9   : > { %v6182_v8 = vpop.permute.xlu0 %4494  ;;  %v4500_v17 = vpop.permute.xlu1 %4499 }
 0xeaa   : > { %v7149_v2 = vunpack.i.h.bf16 %v6182_v8  ;;  %v4502_v44 = vunpack.i.h.bf16 %v4500_v17  ;;  %v4501_v22 = vunpack.i.l.bf16 %v4500_v17  ;;  %v2589_v17 = vperm.slane %v4128_v5, 1 }
 0xeac   : > { %v6188_v40 = vsel %vm468_vm2, %v7149_v2, %v4501_v22  ;;  %v6198_v32 = vsel %vm468_vm2, %v4501_v22, %v4502_v44  ;;  %v6201_v36 = vsel %vm468_vm2, %v4502_v44, %v2509_v49 }
 0xead   : > { %7249 = vst [vmem:[#allocation10_spill] sm:$0xff] %v6198_v32 }
 0xeae   : > { %7250 = vst [vmem:[#allocation13_spill] sm:$0xff] %v6201_v36 }
 0xeb1   : > { %v2534_v59 = vpop.permute.xlu0 %2533  ;;  %v2536_v26 = vpop.permute.xlu1 %2535 }
 0xeb2   : > { %v2549_v58 = vmul.f32 0.0, %v2534_v59  ;;  %v2541_v60 = vsel %vm435_vm6, %v2534_v59, %v2536_v26  ;;  %v2542_v16 = vsel %vm435_vm6, %v2536_v26, %v2538_v42 }
 0xeb3   : > { %v2550_v27 = vmul.f32 %v2541_v60, %v6001_v33  ;;  %v2551_v4 = vmul.f32 %v2542_v16, %v6015_v15 }
 0xeb5   : > { %v4503_v50 = vpack.i.bf16 %v2550_v27, %v2549_v58 }
 0xeb7   : > { %4504 = vrot.lane.b32.xlu1 %v4503_v50, %s4722_s7 }
 0xeb9   : > { %v2540_v62 = vpop.permute.xlu0 %2539 }
 0xeba   : > { %v2543_v21 = vsel %vm435_vm6, %v2538_v42, %v2540_v62  ;;  %v2553_v1 = vmul.f32 %v2540_v62, %v6010_v47 }
 0xebb   : > { %v2552_v13 = vmul.f32 %v2543_v21, %v6017_v30 }
 0xebc   : > { %2567 = vrot.lane.b32.xlu0 %v2553_v1, %s4722_s7 }
 0xebd   : > { %v4508_v3 = vpack.i.bf16 %v2552_v13, %v2551_v4 }
 0xebf   : > { %4509 = vrot.lane.b32.xlu2 %v4508_v3, %s4722_s7  ;;  %2592 = vrot.lane.b32.xlu1 %v2588_v19, %s4728_s29  ;;  %v4129_v19 = vld [vmem:[%s7085_s1 + $0x20] ss:$8 sm:$0xf] }
 0xec4   : > { %2596 = vrot.lane.b32.xlu0 %v2590_v35, %s4728_s29 }
 0xec7   : > { %2598 = vrot.lane.b32.xlu1 %v2591_v6, %s4728_s29  ;;  %2594 = vrot.lane.b32.xlu2 %v2589_v17, %s4728_s29 }
 0xf19   : > { %v4510_v44 = vpop.permute.xlu2 %4509 }
 0xf1a   : > { %v4512_v22 = vunpack.i.h.bf16 %v4510_v44  ;;  %v4511_v49 = vunpack.i.l.bf16 %v4510_v44 }
 0xf1c   : > { %v6223_v59 = vsel %vm7159_vm3, %v4511_v49, %v4512_v22 }
 0xf21   : > { %v2595_v50 = vpop.permute.xlu2 %2594 }
 0xf29   : > { %v4505_v26 = vpop.permute.xlu1 %4504 }
 0xf2a   : > { %v4507_v58 = vunpack.i.h.bf16 %v4505_v26 }
 0xf2c   : > { %v6226_v60 = vsel %vm7159_vm3, %v4507_v58, %v4511_v49 }
 0xf2e   : > { %v2568_v27 = vpop.permute.xlu0 %2567 }
 0xf2f   : > { %v6229_v42 = vsel %vm7159_vm3, %v4512_v22, %v2568_v27  ;;  %v2647_v22 = vperm.slane %v4129_v19, 0  ;;  %v2649_v27 = vperm.slane %v4129_v19, 2 }
 0xf30   : > { %7251 = vst [vmem:[#allocation11_spill] sm:$0xff] %v6229_v42 }
 0xf31   : > { %v2593_v16 = vpop.permute.xlu1 %2592 }
 0xf32   : > { %v2600_v5 = vsel %vm373_vm8, %v2593_v16, %v2595_v50  ;;  %v2608_v62 = vmul.f32 0.0, %v2593_v16  ;;  %v2648_v16 = vperm.slane %v4129_v19, 1 }
 0xf33   : > { %v2609_v21 = vmul.f32 %v2600_v5, %v6001_v33  ;;  %v4506_v5 = vunpack.i.l.bf16 %v4505_v26  ;;  %v4130_v26 = vld [vmem:[%s7085_s1 + $0x21] ss:$8 sm:$0xf] }
 0xf34   : > { %v2707_v18 = vperm.slane %v4130_v26, 1 }
 0xf35   : > { %v4513_v1 = vpack.i.bf16 %v2609_v21, %v2608_v62 }
 0xf36   : > { %v2597_v4 = vpop.permute.xlu0 %2596 }
 0xf37   : > { %4514 = vrot.lane.b32.xlu2 %v4513_v1, %s4720_s27  ;;  %v2601_v13 = vsel %vm373_vm8, %v2595_v50, %v2597_v4  ;;  %v2650_v50 = vperm.slane %v4129_v19, 3 }
 0xf38   : > { %v2610_v17 = vmul.f32 %v2601_v13, %v6015_v15 }
 0xf39   : > { %v2599_v3 = vpop.permute.xlu1 %2598 }
 0xf3a   : > { %v2602_v35 = vsel %vm373_vm8, %v2597_v4, %v2599_v3  ;;  %v2612_v6 = vmul.f32 %v2599_v3, %v6010_v47  ;;  %v6249_v4 = vsel %vm7159_vm3, %v4506_v5, %v4507_v58 }
 0xf3b   : > { %v2611_v44 = vmul.f32 %v2602_v35, %v6017_v30 }
 0xf3c   : > { %2626 = vrot.lane.b32.xlu1 %v2612_v6, %s4720_s27 }
 0xf3d   : > { %v4518_v49 = vpack.i.bf16 %v2611_v44, %v2610_v17  ;;  %v2708_v44 = vperm.slane %v4130_v26, 2 }
 0xf3f   : > { %2651 = vrot.lane.b32.xlu2 %v2647_v22, %s4727_s26  ;;  %4519 = vrot.lane.b32.xlu0 %v4518_v49, %s4720_s27 }
 0xf44   : > { %2655 = vrot.lane.b32.xlu1 %v2649_v27, %s4727_s26 }
 0xf47   : > { %2657 = vrot.lane.b32.xlu2 %v2650_v50, %s4727_s26  ;;  %2653 = vrot.lane.b32.xlu0 %v2648_v16, %s4727_s26 }
 0xf91   : > { %v4515_v62 = vpop.permute.xlu2 %4514 }
 0xf92   : > { %v4517_v21 = vunpack.i.h.bf16 %v4515_v62  ;;  %v4516_v1 = vunpack.i.l.bf16 %v4515_v62 }
 0xf94   : > { %v6252_v13 = vsel %vm344_vm1, %v4516_v1, %v4517_v21 }
 0xf99   : > { %v2652_v19 = vpop.permute.xlu2 %2651 }
 0xf9a   : > { %v2667_v29 = vmul.f32 0.0, %v2652_v19 }
 0xfa1   : > { %v2658_v35 = vpop.permute.xlu2 %2657 }
 0xfa2   : > { %v2671_v6 = vmul.f32 %v2658_v35, %v6010_v47 }
 0xfa4   : > { %2685 = vrot.lane.b32.xlu2 %v2671_v6, %s4721_s28 }
 0xfac   : > { %2714 = vrot.lane.b32.xlu2 %v2708_v44, %s4729_s15 }
 0xfae   : > { %v2627_v17 = vpop.permute.xlu1 %2626 }
 0xfb1   : > { %v4520_v58 = vpop.permute.xlu0 %4519 }
 0xfb2   : > { %v4522_v22 = vunpack.i.h.bf16 %v4520_v58  ;;  %v4521_v49 = vunpack.i.l.bf16 %v4520_v58 }
 0xfb4   : > { %v6263_v27 = vsel %vm344_vm1, %v4517_v21, %v4521_v49  ;;  %v6266_v50 = vsel %vm344_vm1, %v4521_v49, %v4522_v22  ;;  %v6269_v16 = vsel %vm344_vm1, %v4522_v22, %v2627_v17 }
 0xfb5   : > { %7252 = vst [vmem:[#allocation6_spill] sm:$0xff] %v6269_v16 }
 0xfb6   : > { %v2656_v6 = vpop.permute.xlu1 %2655 }
 0xfb7   : > { %v2661_v44 = vsel %vm311_vm7, %v2656_v6, %v2658_v35  ;;  %v2706_v35 = vperm.slane %v4130_v26, 0 }
 0xfb8   : > { %v2670_v17 = vmul.f32 %v2661_v44, %v6017_v30 }
 0xfb9   : > { %v2654_v21 = vpop.permute.xlu0 %2653 }
 0xfba   : > { %v2660_v58 = vsel %vm311_vm7, %v2654_v21, %v2656_v6  ;;  %v2659_v49 = vsel %vm311_vm7, %v2652_v19, %v2654_v21  ;;  %v2709_v6 = vperm.slane %v4130_v26, 3 }
 0xfbb   : > { %v2669_v22 = vmul.f32 %v2660_v58, %v6015_v15  ;;  %v2668_v51 = vmul.f32 %v2659_v49, %v6001_v33 }
 0xfbd   : > { %v4528_v14 = vpack.i.bf16 %v2670_v17, %v2669_v22  ;;  %v4523_v54 = vpack.i.bf16 %v2668_v51, %v2667_v29 }
 0xfbf   : > { %4529 = vrot.lane.b32.xlu1 %v4528_v14, %s4721_s28  ;;  %4524 = vrot.lane.b32.xlu0 %v4523_v54, %s4721_s28 }
 0xfc7   : > { %2712 = vrot.lane.b32.xlu1 %v2707_v18, %s4729_s15  ;;  %2710 = vrot.lane.b32.xlu0 %v2706_v35, %s4729_s15 }
 0xfcf   : > { %2716 = vrot.lane.b32.xlu0 %v2709_v6, %s4729_s15 }
 0xffe   : > { %v2686_v17 = vpop.permute.xlu2 %2685 }
0x1006   : > { %v2715_v6 = vpop.permute.xlu2 %2714 }
0x1031   : > { %v4530_v19 = vpop.permute.xlu1 %4529  ;;  %v4525_v44 = vpop.permute.xlu0 %4524 }
0x1032   : > { %v4532_v21 = vunpack.i.h.bf16 %v4530_v19  ;;  %v4531_v58 = vunpack.i.l.bf16 %v4530_v19  ;;  %v4527_v49 = vunpack.i.h.bf16 %v4525_v44 }
0x1034   : > { %v6289_v29 = vsel %vm7157_vm0, %v4532_v21, %v2686_v17  ;;  %v6292_v51 = vsel %vm7157_vm0, %v4527_v49, %v4531_v58  ;;  %v6295_v54 = vsel %vm7157_vm0, %v4531_v58, %v4532_v21 }
0x1035   : > { %7253 = vst [vmem:[#allocation12_spill] sm:$0xff] %v6289_v29 }
0x1039   : > { %v2713_v14 = vpop.permute.xlu1 %2712  ;;  %v2711_v18 = vpop.permute.xlu0 %2710 }
0x103a   : > { %v2718_v26 = vsel %vm831_vm9, %v2711_v18, %v2713_v14  ;;  %v2726_v22 = vmul.f32 0.0, %v2711_v18  ;;  %v2719_v17 = vsel %vm831_vm9, %v2713_v14, %v2715_v6  ;;  %v2767_v14 = vperm.slane %v4131_v25, 2 }
0x103b   : > { %v2727_v35 = vmul.f32 %v2718_v26, %v6001_v33  ;;  %v2728_v53 = vmul.f32 %v2719_v17, %v6015_v15  ;;  %v2765_v26 = vperm.slane %v4131_v25, 0 }
0x103d   : > { %v4533_v19 = vpack.i.bf16 %v2727_v35, %v2726_v22  ;;  %v2768_v35 = vperm.slane %v4131_v25, 3 }
0x103f   : > { %4534 = vrot.lane.b32.xlu1 %v4533_v19, %s4730_s17  ;;  %v2766_v19 = vperm.slane %v4131_v25, 1 }
0x1041   : > { %v2717_v1 = vpop.permute.xlu0 %2716 }
0x1042   : > { %v2720_v21 = vsel %vm831_vm9, %v2715_v6, %v2717_v1  ;;  %v2730_v58 = vmul.f32 %v2717_v1, %v6010_v47 }
0x1043   : > { %v2729_v18 = vmul.f32 %v2720_v21, %v6017_v30 }
0x1044   : > { %2744 = vrot.lane.b32.xlu0 %v2730_v58, %s4730_s17  ;;  %v4526_v58 = vunpack.i.l.bf16 %v4525_v44 }
0x1045   : > { %v4538_v22 = vpack.i.bf16 %v2729_v18, %v2728_v53 }
0x1046   : > { %v6320_v25 = vsel %vm7157_vm0, %v4526_v58, %v4527_v49 }
0x1047   : > { %2769 = vrot.lane.b32.xlu1 %v2765_v26, %s4731_s24  ;;  %4539 = vrot.lane.b32.xlu2 %v4538_v22, %s4730_s17 }
0x104c   : > { %2773 = vrot.lane.b32.xlu0 %v2767_v14, %s4731_s24 }
0x104f   : > { %2775 = vrot.lane.b32.xlu1 %v2768_v35, %s4731_s24  ;;  %2771 = vrot.lane.b32.xlu2 %v2766_v19, %s4731_s24 }
0x10a1   : > { %v4540_v1 = vpop.permute.xlu2 %4539 }
0x10a2   : > { %v4542_v6 = vunpack.i.h.bf16 %v4540_v1  ;;  %v4541_v17 = vunpack.i.l.bf16 %v4540_v1 }
0x10a4   : > { %v6315_v21 = vsel %vm860_vm10, %v4541_v17, %v4542_v6 }
0x10b1   : > { %v4535_v18 = vpop.permute.xlu1 %4534 }
0x10b2   : > { %v4537_v26 = vunpack.i.h.bf16 %v4535_v18  ;;  %v4536_v22 = vunpack.i.l.bf16 %v4535_v18  ;;  %v2772_v18 = vpop.permute.xlu2 %2771 }
0x10b4   : > { %v6323_v14 = vsel %vm860_vm10, %v4536_v22, %v4537_v26  ;;  %v6326_v35 = vsel %vm860_vm10, %v4537_v26, %v4541_v17 }
0x10b6   : > { %v2745_v28 = vpop.permute.xlu0 %2744 }
0x10b7   : > { %v6333_v44 = vsel %vm860_vm10, %v4542_v6, %v2745_v28  ;;  %v4132_v28 = vld [vmem:[%s7085_s1 + $0x23] ss:$8 sm:$0xf] }
0x10b8   : > { %7254 = vst [vmem:[#allocation9_spill] sm:$0xff] %v6333_v44 }
0x10b9   : > { %v2770_v58 = vpop.permute.xlu1 %2769 }
0x10ba   : > { %v2785_v22 = vmul.f32 0.0, %v2770_v58  ;;  %v2777_v62 = vsel %vm7255_vm15, %v2770_v58, %v2772_v18 }
0x10bb   : > { %v2786_v17 = vmul.f32 %v2777_v62, %v6001_v33  ;;  %v2824_v62 = vperm.slane %v4132_v28, 0 }
0x10bd   : > { %v4543_v26 = vpack.i.bf16 %v2786_v17, %v2785_v22  ;;  %v2825_v17 = vperm.slane %v4132_v28, 1 }
0x10be   : > { %v2774_v53 = vpop.permute.xlu0 %2773 }
0x10bf   : > { %4544 = vrot.lane.b32.xlu2 %v4543_v26, %s4732_s30  ;;  %v2778_v31 = vsel %vm7238_vm13, %v2772_v18, %v2774_v53  ;;  %v2826_v18 = vperm.slane %v4132_v28, 2  ;;  %v2827_v26 = vperm.slane %v4132_v28, 3 }
0x10c0   : > { %v2787_v20 = vmul.f32 %v2778_v31, %v6015_v15 }
0x10c1   : > { %v2776_v6 = vpop.permute.xlu1 %2775 }
0x10c2   : > { %v2779_v23 = vsel %vm7256_vm14, %v2774_v53, %v2776_v6  ;;  %v2789_v49 = vmul.f32 %v2776_v6, %v6010_v47  ;;  %vm7258_vm14 = vcmask 990208  }
0x10c3   : > { %v2788_v58 = vmul.f32 %v2779_v23, %v6017_v30  ;;  %vm7259_vm15 = vmmov %vm7258_vm14 }
0x10c4   : > { %2803 = vrot.lane.b32.xlu1 %v2789_v49, %s4732_s30  ;;  %v4133_v49 = vld [vmem:[%s7085_s1 + $0x24] ss:$8 sm:$0xf]  ;;  %vm7260_vm13 = vmmov %vm7258_vm14 }
0x10c5   : > { %v4548_v22 = vpack.i.bf16 %v2788_v58, %v2787_v20  ;;  %v2885_v58 = vperm.slane %v4133_v49, 2 }
0x10c7   : > { %4549 = vrot.lane.b32.xlu0 %v4548_v22, %s4732_s30  ;;  %2828 = vrot.lane.b32.xlu2 %v2824_v62, %s4733_s11 }
0x10cc   : > { %2832 = vrot.lane.b32.xlu1 %v2826_v18, %s4733_s11 }
0x10cf   : > { %2830 = vrot.lane.b32.xlu0 %v2825_v17, %s4733_s11  ;;  %2834 = vrot.lane.b32.xlu2 %v2827_v26, %s4733_s11 }
0x1119   : > { %v4545_v31 = vpop.permute.xlu2 %4544 }
0x111a   : > { %v4547_v62 = vunpack.i.h.bf16 %v4545_v31 }
0x1121   : > { %v2829_v53 = vpop.permute.xlu2 %2828 }
0x1122   : > { %v2844_v2 = vmul.f32 0.0, %v2829_v53 }
0x1129   : > { %v2835_v23 = vpop.permute.xlu2 %2834 }
0x112a   : > { %v2848_v6 = vmul.f32 %v2835_v23, %v6010_v47 }
0x112c   : > { %2862 = vrot.lane.b32.xlu2 %v2848_v6, %s4734_s12 }
0x1134   : > { %2891 = vrot.lane.b32.xlu2 %v2885_v58, %s4735_s23 }
0x1136   : > { %v2804_v20 = vpop.permute.xlu1 %2803 }
0x1139   : > { %v4550_v28 = vpop.permute.xlu0 %4549 }
0x113a   : > { %v4552_v22 = vunpack.i.h.bf16 %v4550_v28  ;;  %v4551_v18 = vunpack.i.l.bf16 %v4550_v28 }
0x113c   : > { %v6361_v17 = vsel %vm922_vm12, %v4547_v62, %v4551_v18  ;;  %v6364_v26 = vsel %vm922_vm12, %v4551_v18, %v4552_v22  ;;  %v6367_v6 = vsel %vm922_vm12, %v4552_v22, %v2804_v20  ;;  %v2883_v20 = vperm.slane %v4133_v49, 0 }
0x113d   : > { %7257 = vst [vmem:[#allocation4_spill] sm:$0xff] %v6367_v6 }
0x113e   : > { %v2833_v37 = vpop.permute.xlu1 %2832 }
0x113f   : > { %v2838_v9 = vsel %vm7258_vm14, %v2833_v37, %v2835_v23  ;;  %v2884_v23 = vperm.slane %v4133_v49, 1  ;;  %vm7261_vm14 = vcmask 56320  }
0x1140   : > { %v2847_v28 = vmul.f32 %v2838_v9, %v6017_v30  ;;  %v4546_v9 = vunpack.i.l.bf16 %v4545_v31 }
0x1141   : > { %v2831_v5 = vpop.permute.xlu0 %2830 }
0x1142   : > { %v2836_v3 = vsel %vm7259_vm15, %v2829_v53, %v2831_v5  ;;  %v2837_v58 = vsel %vm7260_vm13, %v2831_v5, %v2833_v37  ;;  %v2886_v37 = vperm.slane %v4133_v49, 3  ;;  %vm7262_vm15 = vmmov %vm7261_vm14 }
0x1143   : > { %v2845_v1 = vmul.f32 %v2836_v3, %v6001_v33  ;;  %v2846_v19 = vmul.f32 %v2837_v58, %v6015_v15  ;;  %v6381_v58 = vsel %vm922_vm12, %v4546_v9, %v4547_v62  ;;  %vm7263_vm13 = vmmov %vm7261_vm14 }
0x1144   : > { %vm7264_vm11 = vmmov %vm7263_vm13 }
0x1145   : > { %v4553_v18 = vpack.i.bf16 %v2845_v1, %v2844_v2  ;;  %v4558_v57 = vpack.i.bf16 %v2847_v28, %v2846_v19 }
0x1147   : > { %4554 = vrot.lane.b32.xlu0 %v4553_v18, %s4734_s12  ;;  %4559 = vrot.lane.b32.xlu1 %v4558_v57, %s4734_s12 }
0x114f   : > { %2887 = vrot.lane.b32.xlu0 %v2883_v20, %s4735_s23  ;;  %2889 = vrot.lane.b32.xlu1 %v2884_v23, %s4735_s23 }
0x1157   : > { %2893 = vrot.lane.b32.xlu0 %v2886_v37, %s4735_s23 }
0x1186   : > { %v2863_v1 = vpop.permute.xlu2 %2862 }
0x11b9   : > { %v4555_v5 = vpop.permute.xlu0 %4554  ;;  %v4560_v3 = vpop.permute.xlu1 %4559 }
0x11ba   : > { %v4557_v53 = vunpack.i.h.bf16 %v4555_v5  ;;  %v4556_v22 = vunpack.i.l.bf16 %v4555_v5  ;;  %v4562_v2 = vunpack.i.h.bf16 %v4560_v3  ;;  %v4561_v19 = vunpack.i.l.bf16 %v4560_v3 }
0x11bc   : > { %v6384_v57 = vsel %vm7261_vm14, %v4556_v22, %v4557_v53  ;;  %v6387_v28 = vsel %vm7262_vm15, %v4557_v53, %v4561_v19  ;;  %v6390_v49 = vsel %vm7263_vm13, %v4561_v19, %v4562_v2  ;;  %v6393_v31 = vsel %vm7264_vm11, %v4562_v2, %v2863_v1  ;;  %v2892_v22 = vpop.permute.xlu2 %2891  ;;  %v4135_v1 = vld [vmem:[%s7085_s1 + $0x26] ss:$8 sm:$0xf] }
0x11bd   : > { %vm7265_vm14 = vcmask 1039360   ;;  %vm7268_vm13 = vcmask 7168  }
0x11be   : > { %vm7266_vm11 = vmmov %vm7265_vm14 }
0x11bf   : > { %vm7267_vm15 = vmmov %vm7266_vm11 }
0x11c1   : > { %v2888_v37 = vpop.permute.xlu0 %2887  ;;  %v2890_v9 = vpop.permute.xlu1 %2889 }
0x11c2   : > { %v2903_v5 = vmul.f32 0.0, %v2888_v37  ;;  %v2895_v3 = vsel %vm7265_vm14, %v2888_v37, %v2890_v9  ;;  %v2896_v19 = vsel %vm7266_vm11, %v2890_v9, %v2892_v22  ;;  %v2966_v9 = vperm.slane %v4135_v1, 2  ;;  %vm7269_vm14 = vmmov %vm7268_vm13 }
0x11c3   : > { %v2904_v53 = vmul.f32 %v2895_v3, %v6001_v33  ;;  %v2905_v18 = vmul.f32 %v2896_v19, %v6015_v15  ;;  %v2964_v3 = vperm.slane %v4135_v1, 0  ;;  %vm7270_vm11 = vmmov %vm7268_vm13 }
0x11c5   : > { %v4563_v2 = vpack.i.bf16 %v2904_v53, %v2903_v5  ;;  %v2967_v53 = vperm.slane %v4135_v1, 3 }
0x11c7   : > { %4564 = vrot.lane.b32.xlu1 %v4563_v2, %s4736_s8  ;;  %v2965_v2 = vperm.slane %v4135_v1, 1 }
0x11c9   : > { %v2894_v62 = vpop.permute.xlu0 %2893 }
0x11ca   : > { %v2897_v23 = vsel %vm7267_vm15, %v2892_v22, %v2894_v62  ;;  %v2907_v20 = vmul.f32 %v2894_v62, %v6010_v47  ;;  %v6423_v62 = vld [vmem:[%s7085_s1 + $0x25] ss:$8 sm:$0xf]  ;;  %vm7271_vm15 = vmmov %vm7270_vm11 }
0x11cb   : > { %v2906_v37 = vmul.f32 %v2897_v23, %v6017_v30 }
0x11cc   : > { %2921 = vrot.lane.b32.xlu0 %v2907_v20, %s4736_s8 }
0x11cd   : > { %v4568_v5 = vpack.i.bf16 %v2906_v37, %v2905_v18  ;;  %v2943_v18 = vperm.slane %v6423_v62, 2 }
0x11cf   : > { %4569 = vrot.lane.b32.xlu2 %v4568_v5, %s4736_s8  ;;  %2968 = vrot.lane.b32.xlu1 %v2964_v3, %s4736_s8  ;;  %v6427_v19 = vmul.f32 %v2943_v18, %v6017_v30 }
0x11d4   : > { %2972 = vrot.lane.b32.xlu0 %v2966_v9, %s4736_s8  ;;  %v2944_v9 = vperm.slane %v6423_v62, 3 }
0x11d7   : > { %2974 = vrot.lane.b32.xlu1 %v2967_v53, %s4736_s8  ;;  %2970 = vrot.lane.b32.xlu2 %v2965_v2, %s4736_s8  ;;  %v6444_v2 = vmul.f32 %v2944_v9, %v6010_v47 }
0x1229   : > { %v4570_v20 = vpop.permute.xlu2 %4569 }
0x122a   : > { %v4572_v23 = vunpack.i.h.bf16 %v4570_v20  ;;  %v4571_v22 = vunpack.i.l.bf16 %v4570_v20 }
0x122c   : > { %v6430_v1 = vsel %vm7268_vm13, %v4571_v22, %v4572_v23  ;;  %vm7272_vm13 = vmmov %vm7270_vm11 }
0x1231   : > { %v2971_v43 = vpop.permute.xlu2 %2970 }
0x1239   : > { %v6434_v3 = vpop.permute.xlu1 %4564 }
0x123a   : > { %v7153_v5 = vunpack.i.h.bf16 %v6434_v3 }
0x123c   : > { %v6441_v53 = vsel %vm7269_vm14, %v7153_v5, %v4571_v22  ;;  %vm7273_vm14 = vmmov %vm7270_vm11 }
0x123e   : > { %v2922_v18 = vpop.permute.xlu0 %2921 }
0x123f   : > { %v6447_v20 = vsel %vm7270_vm11, %v4572_v23, %v2922_v18  ;;  %v4136_v23 = vld [vmem:[%s7085_s1 + $0x27] ss:$8 sm:$0xf]  ;;  %vm7274_vm11 = vcmask 1039360  }
0x1240   : > { %v3023_v42 = vperm.slane %v4136_v23, 0 }
0x1241   : > { %v2969_v41 = vpop.permute.xlu1 %2968 }
0x1242   : > { %v2976_v63 = vsel %vm7271_vm15, %v2969_v41, %v2971_v43  ;;  %v2984_v7 = vmul.f32 %v2969_v41, %v6001_v33  ;;  %vm7275_vm15 = vmmov %vm7274_vm11 }
0x1243   : > { %v2985_v55 = vmul.f32 %v2976_v63, %v6015_v15 }
0x1245   : > { %v4573_v22 = vpack.i.bf16 %v2985_v55, %v2984_v7  ;;  %v3024_v7 = vperm.slane %v4136_v23, 1  ;;  %v3026_v55 = vperm.slane %v4136_v23, 3 }
0x1246   : > { %v2973_v5 = vpop.permute.xlu0 %2972 }
0x1247   : > { %4574 = vrot.lane.b32.xlu2 %v4573_v22, %s4735_s23  ;;  %v2977_v9 = vsel %vm7272_vm13, %v2971_v43, %v2973_v5  ;;  %v3025_v43 = vperm.slane %v4136_v23, 2  ;;  %vm7276_vm13 = vmmov %vm7274_vm11 }
0x1248   : > { %v2986_v56 = vmul.f32 %v2977_v9, %v6017_v30 }
0x1249   : > { %v2975_v18 = vpop.permute.xlu1 %2974 }
0x124a   : > { %v2978_v37 = vsel %vm7273_vm14, %v2973_v5, %v2975_v18  ;;  %v2988_v36 = vmul.f32 0.0, %v2975_v18  ;;  %vm7277_vm14 = vcmask 56320  }
0x124b   : > { %v2987_v41 = vmul.f32 %v2978_v37, %v6010_v47  ;;  %vm7278_vm0 = vmmov %vm7277_vm14 }
0x124c   : > { %3002 = vrot.lane.b32.xlu1 %v2988_v36, %s4735_s23  ;;  %v4137_v36 = vld [vmem:[%s7085_s1 + $0x40] ss:$8 sm:$0xf]  ;;  %vm7279_vm3 = vmmov %vm7278_vm0 }
0x124d   : > { %v4578_v63 = vpack.i.bf16 %v2987_v41, %v2986_v56 }
0x124f   : > { %3027 = vrot.lane.b32.xlu2 %v3023_v42, %s4734_s12  ;;  %4579 = vrot.lane.b32.xlu0 %v4578_v63, %s4735_s23  ;;  %v3084_v42 = vperm.slane %v4137_v36, 2 }
0x1254   : > { %3031 = vrot.lane.b32.xlu1 %v3025_v43, %s4734_s12 }
0x1257   : > { %3029 = vrot.lane.b32.xlu0 %v3024_v7, %s4734_s12  ;;  %3033 = vrot.lane.b32.xlu2 %v3026_v55, %s4734_s12 }
0x12a1   : > { %v4575_v5 = vpop.permute.xlu2 %4574 }
0x12a2   : > { %v4577_v23 = vunpack.i.h.bf16 %v4575_v5 }
0x12a9   : > { %v3028_v22 = vpop.permute.xlu2 %3027 }
0x12b1   : > { %v3034_v37 = vpop.permute.xlu2 %3033 }
0x12b2   : > { %v3047_v9 = vmul.f32 0.0, %v3034_v37 }
0x12b4   : > { %3061 = vrot.lane.b32.xlu2 %v3047_v9, %s4733_s11 }
0x12bc   : > { %3090 = vrot.lane.b32.xlu2 %v3084_v42, %s4732_s30  ;;  %v3043_v42 = vmul.f32 %v3028_v22, %v6001_v33 }
0x12be   : > { %v3003_v56 = vpop.permute.xlu1 %3002 }
0x12c1   : > { %v4580_v18 = vpop.permute.xlu0 %4579 }
0x12c2   : > { %v4582_v41 = vunpack.i.h.bf16 %v4580_v18  ;;  %v4581_v63 = vunpack.i.l.bf16 %v4580_v18 }
0x12c4   : > { %v6474_v43 = vsel %vm7274_vm11, %v4582_v41, %v3003_v56  ;;  %v3005_v7 = vsel %vm7275_vm15, %v4577_v23, %v4581_v63  ;;  %v6478_v55 = vsel %vm7276_vm13, %v4581_v63, %v4582_v41  ;;  %v3082_v41 = vperm.slane %v4137_v36, 0 }
0x12c6   : > { %v3032_v9 = vpop.permute.xlu1 %3031 }
0x12c7   : > { %v3037_v16 = vsel %vm7277_vm14, %v3032_v9, %v3034_v37  ;;  %v3083_v37 = vperm.slane %v4137_v36, 1  ;;  %vm7286_vm14 = vcmask 7168  }
0x12c8   : > { %v3046_v18 = vmul.f32 %v3037_v16, %v6010_v47  ;;  %v4576_v16 = vunpack.i.l.bf16 %v4575_v5 }
0x12c9   : > { %v3030_v48 = vpop.permute.xlu0 %3029 }
0x12ca   : > { %v3036_v12 = vsel %vm7278_vm0, %v3030_v48, %v3032_v9  ;;  %v3035_v29 = vsel %vm7279_vm3, %v3028_v22, %v3030_v48  ;;  %v3085_v48 = vperm.slane %v4137_v36, 3  ;;  %vm7280_vm0 = vmmov %vm7274_vm11  ;;  %vm7281_vm3 = vcmask 990208  }
0x12cb   : > { %v3045_v56 = vmul.f32 %v3036_v12, %v6017_v30  ;;  %v3044_v44 = vmul.f32 %v3035_v29, %v6015_v15  ;;  %v4566_v12 = vunpack.i.l.bf16 %v6434_v3  ;;  %vm7282_vm11 = vmmov %vm7281_vm3 }
0x12cc   : > { %vm7283_vm15 = vmmov %vm7281_vm3 }
0x12cd   : > { %v4588_v38 = vpack.i.bf16 %v3046_v18, %v3045_v56  ;;  %v4583_v32 = vpack.i.bf16 %v3044_v44, %v3043_v42  ;;  %v2941_v18 = vperm.slane %v6423_v62, 0  ;;  %v2942_v56 = vperm.slane %v6423_v62, 1  ;;  %vm7284_vm13 = vmmov %vm7281_vm3 }
0x12ce   : > { %v7285_v62 = vunpack.i.h.bf16 %v6434_v3 }
0x12cf   : > { %4589 = vrot.lane.b32.xlu1 %v4588_v38, %s4733_s11  ;;  %4584 = vrot.lane.b32.xlu0 %v4583_v32, %s4733_s11  ;;  %v3004_v32 = vsel %vm7280_vm0, %v4576_v16, %v4577_v23 }
0x12d7   : > { %3088 = vrot.lane.b32.xlu1 %v3083_v37, %s4732_s30  ;;  %3086 = vrot.lane.b32.xlu0 %v3082_v41, %s4732_s30 }
0x12df   : > { %3092 = vrot.lane.b32.xlu0 %v3085_v48, %s4732_s30 }
0x130e   : > { %v3062_v42 = vpop.permute.xlu2 %3061 }
0x1316   : > { %v3091_v3 = vpop.permute.xlu2 %3090 }
0x1341   : > { %v4590_v22 = vpop.permute.xlu1 %4589  ;;  %v4585_v29 = vpop.permute.xlu0 %4584 }
0x1342   : > { %v4592_v63 = vunpack.i.h.bf16 %v4590_v22  ;;  %v4591_v44 = vunpack.i.l.bf16 %v4590_v22  ;;  %v4587_v9 = vunpack.i.h.bf16 %v4585_v29  ;;  %v4586_v38 = vunpack.i.l.bf16 %v4585_v29 }
0x1343   : > { %v2923_v29 = vsel %vm7286_vm14, %v4566_v12, %v7285_v62  ;;  %v4487_v62 = vunpack.i.h.bf16 %v6157_v0  ;;  %vm7305_vm14 = vcmask 449536  }
0x1344   : > { %v6497_v36 = vsel %vm7281_vm3, %v4592_v63, %v3062_v42  ;;  %v6500_v5 = vsel %vm7282_vm11, %v4591_v44, %v4592_v63  ;;  %v3064_v37 = vsel %vm7283_vm15, %v4587_v9, %v4591_v44  ;;  %v3063_v41 = vsel %vm7284_vm13, %v4586_v38, %v4587_v9 }
0x1345   : > { %v3861_v16 = vpack.c.bf16 %v3063_v41, %v3004_v32  ;;  %v3862_v22 = vpack.c.bf16 %v3064_v37, %v3005_v7  ;;  %v2949_v63 = vmul.f32 %v2941_v18, %v6001_v33  ;;  %v2950_v44 = vmul.f32 %v2942_v56, %v6015_v15 }
0x1346   : > { %v7287_v18 = vpack.c.bf16 %v6384_v57, %v6381_v58  ;;  %v7289_v57 = vpack.c.bf16 %v6323_v14, %v6320_v25  ;;  %v7291_v25 = vunpack.i.h.bf16 %v6182_v8  ;;  %v4467_v14 = vunpack.i.h.bf16 %v6093_v39 }
0x1347   : > { %3916 = vmatpush.bf16.msra.mxu3 %v3861_v16  ;;  %3942 = vmatpush.bf16.msra.mxu2 %v3862_v22  ;;  %v3857_v38 = vpack.c.bf16 %v2949_v63, %v2923_v29  ;;  %v3858_v48 = vpack.c.bf16 %v2950_v44, %v6441_v53  ;;  %v7288_v53 = vpack.c.bf16 %v6387_v28, %v6361_v17  ;;  %v4496_v16 = vunpack.i.l.bf16 %v6182_v8 }
0x1348   : > { %v7290_v28 = vpack.c.bf16 %v6326_v35, %v6292_v51  ;;  %v4486_v29 = vunpack.i.l.bf16 %v6157_v0  ;;  %v4477_v44 = vunpack.i.h.bf16 %v6136_v10  ;;  %v7292_v35 = vpack.c.bf16 %v6252_v13, %v6249_v4 }
0x1349   : > { %v3089_v42 = vpop.permute.xlu1 %3088  ;;  %v3087_v9 = vpop.permute.xlu0 %3086  ;;  %v2510_v51 = vsel %vm468_vm2, %v4496_v16, %v7291_v25  ;;  %v7293_v0 = vpack.c.bf16 %v6263_v27, %v6226_v60  ;;  %v7295_v27 = vunpack.i.l.bf16 %v6116_v52  ;;  %v7297_v16 = vunpack.i.l.bf16 %v6059_v61 }
0x134a   : > { %v3094_v6 = vsel %vm922_vm12, %v3087_v9, %v3089_v42  ;;  %v3102_v32 = vmul.f32 %v3087_v9, %v6001_v33  ;;  %v3095_v56 = vsel %vm922_vm12, %v3089_v42, %v3091_v3  ;;  %v4476_v42 = vunpack.i.l.bf16 %v6136_v10 }
0x134b   : > { %v3103_v7 = vmul.f32 %v3094_v6, %v6015_v15  ;;  %3917 = vmatpush.bf16.msra.mxu3 %v3857_v38  ;;  %3943 = vmatpush.bf16.msra.mxu2 %v3858_v48  ;;  %v4138_v6 = vld [vmem:[%s7085_s1 + $0x41] ss:$8 sm:$0xf]  ;;  %v3104_v22 = vmul.f32 %v3095_v56, %v6017_v30  ;;  %v4466_v10 = vunpack.i.l.bf16 %v6093_v39  ;;  %v2451_v9 = vsel %vm530_vm4, %v4486_v29, %v4487_v62 }
0x134c   : > { %v3141_v17 = vperm.slane %v4138_v6, 0  ;;  %v7294_v38 = vunpack.i.l.bf16 %v6166_v24  ;;  %v3144_v13 = vperm.slane %v4138_v6, 3  ;;  %v2392_v60 = vsel %vm497_vm5, %v4476_v42, %v4477_v44  ;;  %v6598_v42 = vld [vmem:[%s7085_s1 + $0x61] ss:$8 sm:$0xf] }
0x134d   : > { %v4593_v12 = vpack.i.bf16 %v3103_v7, %v3102_v32  ;;  %v3143_v32 = vperm.slane %v4138_v6, 2  ;;  %v4457_v7 = vunpack.i.h.bf16 %v6048_v34  ;;  %v2393_v39 = vsel %vm497_vm5, %v4477_v44, %v7295_v27 }
0x134e   : > { %v2452_v8 = vsel %vm530_vm4, %v4487_v62, %v7294_v38  ;;  %v4447_v56 = vunpack.i.h.bf16 %v6025_v45  ;;  %v3613_v25 = vperm.slane %v6598_v42, 0  ;;  %vm7302_vm11 = vcmask 465920  }
0x134f   : > { %4594 = vrot.lane.b32.xlu1 %v4593_v12, %s4731_s24  ;;  %3918 = vmatpush.bf16.msra.mxu3 %v7287_v18  ;;  %v3841_v12 = vpack.c.bf16 %v2510_v51, %v2451_v9  ;;  %v3842_v4 = vpack.c.bf16 %v6188_v40, %v2452_v8  ;;  %v3142_v18 = vperm.slane %v4138_v6, 1  ;;  %v7296_v40 = vunpack.i.l.bf16 %v6091_v11  ;;  %v4143_v51 = vld [vmem:[%s7085_s1 + $0x46] ss:$8 sm:$0xf]  ;;  %vm7303_vm15 = vmmov %vm7302_vm11 }
0x1350   : > { %3944 = vmatpush.bf16.msra.mxu2 %v7288_v53  ;;  %v4446_v53 = vunpack.i.l.bf16 %v6025_v45  ;;  %v4147_v45 = vld [vmem:[%s7085_s1 + $0x62] ss:$8 sm:$0xf]  ;;  %v6617_v9 = vld [vmem:[%s7085_s1 + $0x44] ss:$8 sm:$0xf]  ;;  %vm7304_vm13 = vmmov %vm7302_vm11 }
0x1351   : > { %v3093_v37 = vpop.permute.xlu0 %3092  ;;  %v3672_v29 = vperm.slane %v4147_v45, 0  ;;  %v3320_v38 = vperm.slane %v6617_v9, 2  ;;  %v4142_v8 = vld [vmem:[%s7085_s1 + $0x45] ss:$8 sm:$0xf] }
0x1352   : > { %v3096_v41 = vsel %vm922_vm12, %v3091_v3, %v3093_v37  ;;  %v3106_v48 = vmul.f32 0.0, %v3093_v37  ;;  %v4456_v3 = vunpack.i.l.bf16 %v6048_v34  ;;  %v2333_v34 = vsel %vm435_vm6, %v4466_v10, %v4467_v14 }
0x1353   : > { %v3105_v58 = vmul.f32 %v3096_v41, %v6010_v47  ;;  %3919 = vmatpush.bf16.msra.mxu3 %v7289_v57  ;;  %v2334_v37 = vsel %vm435_vm6, %v4467_v14, %v7296_v40  ;;  %v3837_v41 = vpack.c.bf16 %v2392_v60, %v2333_v34  ;;  %v7298_v57 = vunpack.i.l.bf16 %v6033_v46 }
0x1354   : > { %3945 = vmatpush.bf16.msra.mxu2 %v7290_v28  ;;  %3120 = vrot.lane.b32.xlu0 %v3106_v48, %s4731_s24  ;;  %v3838_v48 = vpack.c.bf16 %v2393_v39, %v2334_v37  ;;  %v2274_v6 = vsel %vm373_vm8, %v4456_v3, %v4457_v7  ;;  %v3436_v14 = vperm.slane %v4143_v51, 0  ;;  %v3675_v10 = vperm.slane %v4147_v45, 3 }
0x1355   : > { %v4598_v63 = vpack.i.bf16 %v3105_v58, %v3104_v22  ;;  %v2275_v22 = vsel %vm373_vm8, %v4457_v7, %v7297_v16  ;;  %v2215_v58 = vsel %vm311_vm7, %v4446_v53, %v4447_v56  ;;  %v6628_v7 = vld [vmem:[%s7085_s1 + $0x42] ss:$8 sm:$0xf]  ;;  %v3380_v60 = vperm.slane %v4142_v8, 3 }
0x1356   : > { %v3833_v28 = vpack.c.bf16 %v2274_v6, %v2215_v58  ;;  %v3200_v3 = vperm.slane %v6628_v7, 0  ;;  %vm7299_vm12 = vcmask 982016  }
0x1357   : > { %3145 = vrot.lane.b32.xlu1 %v3141_v17, %s4730_s17  ;;  %4599 = vrot.lane.b32.xlu2 %v4598_v63, %s4731_s24  ;;  %v2216_v17 = vsel %vm311_vm7, %v4447_v56, %v7298_v57  ;;  %v6591_v63 = vld [vmem:[%s7085_s1 + $0x60] ss:$8 sm:$0xf]  ;;  %vm7300_vm0 = vmmov %vm7299_vm12 }
0x1358   : > { %3920 = vmatpush.bf16.msra.mxu3 %v7292_v35  ;;  %3946 = vmatpush.bf16.msra.mxu2 %v7293_v0  ;;  %v3834_v62 = vpack.c.bf16 %v2275_v22, %v2216_v17  ;;  %v3554_v44 = vperm.slane %v6591_v63, 0  ;;  %v6609_v35 = vld [vmem:[%s7085_s1 + $0x47] ss:$8 sm:$0xf]  ;;  %vm7301_vm3 = vmmov %vm7300_vm0 }
0x1359   : > { %v3495_v0 = vperm.slane %v6609_v35, 0 }
0x135c   : > { %3921 = vmatpush.bf16.msra.mxu3 %v3841_v12  ;;  %3947 = vmatpush.bf16.msra.mxu2 %v3842_v4  ;;  %v6635_v12 = vld [vmem:[%s7085_s1 + $0x43] ss:$8 sm:$0xf] }
0x135d   : > { %3149 = vrot.lane.b32.xlu0 %v3143_v32, %s4730_s17  ;;  %v3379_v32 = vperm.slane %v4142_v8, 2  ;;  %v3259_v4 = vperm.slane %v6635_v12, 0 }
0x135f   : > { %3151 = vrot.lane.b32.xlu1 %v3144_v13, %s4730_s17  ;;  %3147 = vrot.lane.b32.xlu2 %v3142_v18, %s4730_s17  ;;  %v3439_v13 = vperm.slane %v4143_v51, 3 }
0x1360   : > { %3922 = vmatpush.bf16.msra.mxu3 %v3837_v41  ;;  %3948 = vmatpush.bf16.msra.mxu2 %v3838_v48 }
0x1364   : > { %3923 = vmatpush.bf16.msra.mxu3 %v3833_v28  ;;  %3949 = vmatpush.bf16.msra.mxu2 %v3834_v62  ;;  %v3673_v62 = vperm.slane %v4147_v45, 1 }
0x1367   : > { %3676 = vrot.lane.b32.xlu1 %v3672_v29, %s4727_s26  ;;  %v3674_v29 = vperm.slane %v4147_v45, 2  ;;  %v3438_v45 = vperm.slane %v4143_v51, 2 }
0x136f   : > { %3558 = vrot.lane.b32.xlu1 %v3554_v44, %s4726_s19  ;;  %v3555_v44 = vperm.slane %v6591_v63, 1 }
0x1377   : > { %3617 = vrot.lane.b32.xlu1 %v3613_v25, %s4728_s29  ;;  %v3556_v25 = vperm.slane %v6591_v63, 2 }
0x137f   : > { %3440 = vrot.lane.b32.xlu1 %v3436_v14, %s4724_s13  ;;  %v3614_v14 = vperm.slane %v6598_v42, 1 }
0x1387   : > { %3499 = vrot.lane.b32.xlu1 %v3495_v0, %s4725_s16  ;;  %v3615_v0 = vperm.slane %v6598_v42, 2 }
0x138f   : > { %3682 = vrot.lane.b32.xlu1 %v3675_v10, %s4727_s26  ;;  %v3437_v10 = vperm.slane %v4143_v51, 1  ;;  %v3377_v51 = vperm.slane %v4142_v8, 0 }
0x1397   : > { %3326 = vrot.lane.b32.xlu1 %v3320_v38, %s4722_s7  ;;  %v3496_v38 = vperm.slane %v6609_v35, 1 }
0x139f   : > { %3385 = vrot.lane.b32.xlu1 %v3379_v32, %s4723_s10 }
0x13a7   : > { %3204 = vrot.lane.b32.xlu1 %v3200_v3, %s4721_s28  ;;  %v3497_v3 = vperm.slane %v6609_v35, 2 }
0x13af   : > { %3263 = vrot.lane.b32.xlu1 %v3259_v4, %s4720_s27  ;;  %v3318_v4 = vperm.slane %v6617_v9, 0 }
0x13b1   : > { %v6640_v27 = vpop.permute.xlu2 %4599 }
0x13b2   : > { %v7165_v18 = vunpack.i.l.bf16 %v6640_v27  ;;  %v7166_v34 = vunpack.i.h.bf16 %v6640_v27 }
0x13b7   : > { %3446 = vrot.lane.b32.xlu1 %v3439_v13, %s4724_s13  ;;  %v3319_v13 = vperm.slane %v6617_v9, 1 }
0x13b9   : > { %v3148_v41 = vpop.permute.xlu2 %3147 }
0x13bf   : > { %3387 = vrot.lane.b32.xlu1 %v3380_v60, %s4723_s10 }
0x13c1   : > { %v6643_v39 = vpop.permute.xlu1 %4594 }
0x13c2   : > { %v4597_v56 = vunpack.i.h.bf16 %v6643_v39 }
0x13c4   : > { %v6652_v53 = vsel %vm7299_vm12, %v4597_v56, %v7165_v18  ;;  %vm7306_vm12 = vmmov %vm7305_vm14 }
0x13c6   : > { %v3121_v40 = vpop.permute.xlu0 %3120 }
0x13c7   : > { %v6658_v37 = vsel %vm7300_vm0, %v7166_v34, %v3121_v40  ;;  %v3378_v40 = vperm.slane %v4142_v8, 1  ;;  %v3260_v8 = vperm.slane %v6635_v12, 1  ;;  %vm7307_vm0 = vmmov %vm7306_vm12 }
0x13c9   : > { %v3146_v48 = vpop.permute.xlu1 %3145 }
0x13ca   : > { %v3161_v6 = vmul.f32 %v3146_v48, %v6001_v33  ;;  %v3153_v16 = vsel %vm860_vm10, %v3146_v48, %v3148_v41  ;;  %v3557_v48 = vperm.slane %v6591_v63, 3  ;;  %v3261_v63 = vperm.slane %v6635_v12, 2 }
0x13cb   : > { %v3162_v22 = vmul.f32 %v3153_v16, %v6015_v15  ;;  %v3201_v16 = vperm.slane %v6628_v7, 1 }
0x13cd   : > { %v4603_v58 = vpack.i.bf16 %v3162_v22, %v3161_v6  ;;  %v3616_v6 = vperm.slane %v6598_v42, 3  ;;  %v3498_v42 = vperm.slane %v6609_v35, 3 }
0x13cf   : > { %v6663_v57 = vpop.permute.xlu0 %3149  ;;  %4604 = vrot.lane.b32.xlu2 %v4603_v58, %s4729_s15  ;;  %v3202_v58 = vperm.slane %v6628_v7, 2 }
0x13d0   : > { %v3154_v17 = vsel %vm860_vm10, %v3148_v41, %v6663_v57 }
0x13d1   : > { %v3163_v28 = vmul.f32 %v3154_v17, %v6017_v30  ;;  %v6683_v32 = vpop.permute.xlu1 %3151 }
0x13d3   : > { %3175 = vrot.lane.b32.xlu0 %v3163_v28, %s4729_s15  ;;  %v3321_v28 = vperm.slane %v6617_v9, 3 }
0x13d7   : > { %3678 = vrot.lane.b32.xlu2 %v3673_v62, %s4727_s26  ;;  %v4596_v62 = vunpack.i.l.bf16 %v6643_v39 }
0x13d9   : > { %v3677_v60 = vpop.permute.xlu1 %3676 }
0x13db   : > { %3680 = vrot.lane.b32.xlu0 %v3674_v29, %s4727_s26 }
0x13df   : > { %3560 = vrot.lane.b32.xlu2 %v3555_v44, %s4726_s19 }
0x13e1   : > { %v3559_v41 = vpop.permute.xlu1 %3558 }
0x13e3   : > { %3562 = vrot.lane.b32.xlu0 %v3556_v25, %s4726_s19 }
0x13e7   : > { %3619 = vrot.lane.b32.xlu2 %v3614_v14, %s4728_s29 }
0x13e9   : > { %v3618_v22 = vpop.permute.xlu1 %3617 }
0x13eb   : > { %3621 = vrot.lane.b32.xlu0 %v3615_v0, %s4728_s29  ;;  %v3203_v0 = vperm.slane %v6628_v7, 3  ;;  %v3692_v7 = vmul.f32 %v3677_v60, %v6001_v33 }
0x13ef   : > { %3442 = vrot.lane.b32.xlu2 %v3437_v10, %s4724_s13  ;;  %v6719_v10 = vsel %vm7301_vm3, %v4596_v62, %v4597_v56  ;;  %vm7308_vm3 = vmmov %vm7307_vm0 }
0x13f1   : > { %v6703_v17 = vpop.permute.xlu1 %3440 }
0x13f3   : > { %3444 = vrot.lane.b32.xlu0 %v3438_v45, %s4724_s13  ;;  %v3262_v45 = vperm.slane %v6635_v12, 3  ;;  %v3574_v12 = vmul.f32 %v3559_v41, %v6001_v33 }
0x13f7   : > { %3501 = vrot.lane.b32.xlu2 %v3496_v38, %s4725_s16 }
0x13f9   : > { %v6712_v29 = vpop.permute.xlu1 %3499 }
0x13fb   : > { %3503 = vrot.lane.b32.xlu0 %v3497_v3, %s4725_s16 }
0x13ff   : > { %3322 = vrot.lane.b32.xlu2 %v3318_v4, %s4722_s7 }
0x1401   : > { %v3683_v4 = vpop.permute.xlu1 %3682 }
0x1403   : > { %3324 = vrot.lane.b32.xlu0 %v3319_v13, %s4722_s7 }
0x1407   : > { %3381 = vrot.lane.b32.xlu2 %v3377_v51, %s4723_s10 }
0x140b   : > { %3383 = vrot.lane.b32.xlu0 %v3378_v40, %s4723_s10 }
0x140f   : > { %3564 = vrot.lane.b32.xlu2 %v3557_v48, %s4726_s19  ;;  %v6736_v48 = vpop.permute.xlu1 %3326 }
0x1413   : > { %3623 = vrot.lane.b32.xlu0 %v3616_v6, %s4728_s29 }
0x1417   : > { %3206 = vrot.lane.b32.xlu2 %v3201_v16, %s4721_s28 }
0x141b   : > { %3208 = vrot.lane.b32.xlu0 %v3202_v58, %s4721_s28 }
0x141f   : > { %3265 = vrot.lane.b32.xlu2 %v3260_v8, %s4720_s27  ;;  %v6747_v8 = vpop.permute.xlu1 %3385 }
0x1423   : > { %3267 = vrot.lane.b32.xlu0 %v3261_v63, %s4720_s27 }
0x1427   : > { %3505 = vrot.lane.b32.xlu2 %v3498_v42, %s4725_s16 }
0x1429   : > { %v4605_v44 = vpop.permute.xlu2 %4604 }
0x142a   : > { %v4607_v25 = vunpack.i.h.bf16 %v4605_v44  ;;  %v4606_v14 = vunpack.i.l.bf16 %v4605_v44 }
0x142b   : > { %3328 = vrot.lane.b32.xlu0 %v3321_v28, %s4722_s7 }
0x142c   : > { %v6722_v35 = vsel %vm831_vm9, %v4606_v14, %v4607_v25 }
0x142f   : > { %3210 = vrot.lane.b32.xlu2 %v3203_v0, %s4721_s28  ;;  %v6755_v0 = vpop.permute.xlu1 %3204 }
0x1431   : > { %v3679_v38 = vpop.permute.xlu2 %3678 }
0x1432   : > { %v3684_v3 = vsel %vm311_vm7, %v3677_v60, %v3679_v38 }
0x1433   : > { %v3693_v39 = vmul.f32 %v3684_v3, %v6015_v15  ;;  %3269 = vrot.lane.b32.xlu0 %v3262_v45, %s4720_s27 }
0x1435   : > { %v4608_v56 = vpack.i.bf16 %v3693_v39, %v3692_v7 }
0x1437   : > { %4609 = vrot.lane.b32.xlu1 %v4608_v56, %s4721_s28 }
0x1439   : > { %v3561_v13 = vpop.permute.xlu2 %3560 }
0x143a   : > { %v3566_v51 = vsel %vm435_vm6, %v3559_v41, %v3561_v13 }
0x143b   : > { %v3575_v40 = vmul.f32 %v3566_v51, %v6015_v15 }
0x143d   : > { %v4618_v6 = vpack.i.bf16 %v3575_v40, %v3574_v12  ;;  %v6766_v12 = vpop.permute.xlu1 %3263 }
0x143f   : > { %4619 = vrot.lane.b32.xlu0 %v4618_v6, %s4722_s7  ;;  %v6772_v6 = vld [vmem:[%s7088_s4] sm:$0xff] }
0x1441   : > { %v6739_v60 = vpop.permute.xlu2 %3619 }
0x1442   : > { %v3625_v3 = vsel %vm373_vm8, %v3618_v22, %v6739_v60 }
0x1443   : > { %v3634_v7 = vmul.f32 %v3625_v3, %v6015_v15 }
0x1445   : > { %v6741_v16 = vpop.permute.xlu0 %3175 }
0x1446   : > { %v6745_v58 = vsel %vm831_vm9, %v4607_v25, %v6741_v16 }
0x1449   : > { %v3443_v63 = vpop.permute.xlu2 %3442 }
0x144d   : > { %v3681_v42 = vpop.permute.xlu0 %3680 }
0x144e   : > { %v3685_v28 = vsel %vm311_vm7, %v3679_v38, %v3681_v42  ;;  %v3686_v62 = vsel %vm311_vm7, %v3681_v42, %v3683_v4  ;;  %v3633_v38 = vmul.f32 %v3618_v22, %v6001_v33  ;;  %v3896_v42 = vunpack.c.l.b16 %v6772_v6  ;;  %v6779_v22 = vpop.permute.xlu1 %3446 }
0x144f   : > { %v3694_v44 = vmul.f32 %v3685_v28, %v6017_v30  ;;  %v3695_v14 = vmul.f32 %v3686_v62, %v6010_v47 }
0x1450   : > { %v4628_v56 = vpack.i.bf16 %v3634_v7, %v3633_v38  ;;  %v6775_v28 = vpack.c.b16 %v3896_v42, %v3896_v42 }
0x1451   : > { %v4613_v45 = vpack.i.bf16 %v3695_v14, %v3694_v44  ;;  %v6757_v25 = vpop.permute.xlu2 %3501 }
0x1452   : > { %3924 = vmatmul.bf16.vlgmr.msra.gmra.mxu3 %v6775_v28  ;;  %3950 = vmatmul.bf16.vlgmr.msra.gmra.mxu2 %v6775_v28 }
0x1453   : > { %4614 = vrot.lane.b32.xlu2 %v4613_v45, %s4721_s28 }
0x1455   : > { %v3563_v39 = vpop.permute.xlu0 %3562 }
0x1456   : > { %v3567_v38 = vsel %vm435_vm6, %v3561_v13, %v3563_v39 }
0x1457   : > { %v3576_v34 = vmul.f32 %v3567_v38, %v6017_v30 }
0x1459   : > { %v6764_v51 = vpop.permute.xlu2 %3322 }
0x145b   : > { %4629 = vrot.lane.b32.xlu2 %v4628_v56, %s4720_s27 }
0x145d   : > { %v3622_v40 = vpop.permute.xlu0 %3621 }
0x1461   : > { %v3382_v62 = vpop.permute.xlu2 %3381 }
0x1465   : > { %v3445_v44 = vpop.permute.xlu0 %3444 }
0x1466   : > { %v3449_v14 = vsel %vm530_vm4, %v3443_v63, %v3445_v44  ;;  %v3450_v45 = vsel %vm530_vm4, %v3445_v44, %v6779_v22 }
0x1467   : > { %v3458_v3 = vmul.f32 %v3449_v14, %v6017_v30  ;;  %v3459_v7 = vmul.f32 %v3450_v45, %v6010_v47  ;;  %v3448_v14 = vsel %vm530_vm4, %v6703_v17, %v3443_v63  ;;  %v3696_v45 = vmul.f32 0.0, %v3683_v4 }
0x1468   : > { %v3457_v13 = vmul.f32 %v3448_v14, %v6015_v15 }
0x1469   : > { %v4643_v56 = vpack.i.bf16 %v3459_v7, %v3458_v3  ;;  %v6787_v42 = vpop.permute.xlu2 %3564 }
0x146a   : > { %v3568_v18 = vsel %vm435_vm6, %v3563_v39, %v6787_v42  ;;  %v3456_v39 = vmul.f32 %v6703_v17, %v6001_v33 }
0x146b   : > { %v3577_v23 = vmul.f32 %v3568_v18, %v6010_v47  ;;  %4644 = vrot.lane.b32.xlu2 %v4643_v56, %s4724_s13 }
0x146c   : > { %v4638_v18 = vpack.i.bf16 %v3457_v13, %v3456_v39  ;;  %v3626_v39 = vsel %vm373_vm8, %v6739_v60, %v3622_v40 }
0x146d   : > { %v4623_v41 = vpack.i.bf16 %v3577_v23, %v3576_v34  ;;  %v3504_v44 = vpop.permute.xlu0 %3503  ;;  %v3635_v9 = vmul.f32 %v3626_v39, %v6017_v30 }
0x146e   : > { %v3508_v38 = vsel %vm497_vm5, %v6757_v25, %v3504_v44 }
0x146f   : > { %4624 = vrot.lane.b32.xlu1 %v4623_v41, %s4722_s7  ;;  %v3397_v41 = vmul.f32 %v3382_v62, %v6001_v33 }
0x1471   : > { %v6798_v3 = vpop.permute.xlu2 %3206 }
0x1473   : > { %3710 = vrot.lane.b32.xlu2 %v3696_v45, %s4721_s28  ;;  %v3517_v45 = vmul.f32 %v3508_v38, %v6017_v30  ;;  %v3507_v38 = vsel %vm497_vm5, %v6712_v29, %v6757_v25 }
0x1475   : > { %v3325_v7 = vpop.permute.xlu0 %3324 }
0x1476   : > { %v3330_v39 = vsel %vm7302_vm11, %v6764_v51, %v3325_v7  ;;  %vm7309_vm11 = vcmask 1043456  }
0x1477   : > { %4639 = vrot.lane.b32.xlu1 %v4638_v18, %s4724_s13 }
0x1479   : > { %v6804_v23 = vpop.permute.xlu2 %3265 }
0x147a   : > { %v3271_v60 = vsel %vm344_vm1, %v6766_v12, %v6804_v23 }
0x147d   : > { %v3384_v34 = vpop.permute.xlu0 %3383 }
0x147e   : > { %v3389_v4 = vsel %vm468_vm2, %v3382_v62, %v3384_v34 }
0x147f   : > { %v3398_v63 = vmul.f32 %v3389_v4, %v6015_v15 }
0x1481   : > { %v4668_v56 = vpack.i.bf16 %v3398_v63, %v3397_v41  ;;  %v3506_v17 = vpop.permute.xlu2 %3505 }
0x1482   : > { %v3509_v14 = vsel %vm497_vm5, %v3504_v44, %v3506_v17 }
0x1483   : > { %v3518_v13 = vmul.f32 %v3509_v14, %v6010_v47  ;;  %4669 = vrot.lane.b32.xlu2 %v4668_v56, %s4725_s16  ;;  %v3280_v56 = vmul.f32 %v3271_v60, %v6015_v15 }
0x1485   : > { %v4653_v18 = vpack.i.bf16 %v3518_v13, %v3517_v45  ;;  %v3624_v62 = vpop.permute.xlu0 %3623  ;;  %v3279_v45 = vmul.f32 %v6766_v12, %v6001_v33  ;;  %v3519_v12 = vmul.f32 0.0, %v3506_v17 }
0x1486   : > { %v3627_v4 = vsel %vm373_vm8, %v3622_v40, %v3624_v62  ;;  %v3637_v44 = vmul.f32 0.0, %v3624_v62  ;;  %v3516_v40 = vmul.f32 %v3507_v38, %v6015_v15  ;;  %v3331_v38 = vsel %vm7303_vm15, %v3325_v7, %v6736_v48  ;;  %vm7310_vm15 = vmmov %vm7307_vm0 }
0x1487   : > { %v3636_v41 = vmul.f32 %v3627_v4, %v6010_v47  ;;  %4654 = vrot.lane.b32.xlu1 %v4653_v18, %s4723_s10  ;;  %v4688_v13 = vpack.i.bf16 %v3280_v56, %v3279_v45  ;;  %v3339_v18 = vmul.f32 %v3330_v39, %v6015_v15  ;;  %v3338_v4 = vmul.f32 %v6764_v51, %v6001_v33 }
0x1488   : > { %v3220_v7 = vmul.f32 %v6755_v0, %v6001_v33  ;;  %v3578_v39 = vmul.f32 0.0, %v6787_v42 }
0x1489   : > { %v4633_v63 = vpack.i.bf16 %v3636_v41, %v3635_v9  ;;  %v3515_v9 = vmul.f32 %v6712_v29, %v6001_v33  ;;  %v6844_v29 = vpop.permute.xlu1 %3387  ;;  %v4658_v41 = vpack.i.bf16 %v3339_v18, %v3338_v4  ;;  %v3211_v56 = vpop.permute.xlu2 %3210 }
0x148a   : > { %v3224_v45 = vmul.f32 0.0, %v3211_v56 }
0x148b   : > { %4634 = vrot.lane.b32.xlu0 %v4633_v63, %s4720_s27  ;;  %3651 = vrot.lane.b32.xlu2 %v3637_v44, %s4720_s27  ;;  %v4648_v25 = vpack.i.bf16 %v3516_v40, %v3515_v9  ;;  %v3390_v44 = vsel %vm468_vm2, %v3384_v34, %v6747_v8  ;;  %v3391_v63 = vsel %vm468_vm2, %v6747_v8, %v6844_v29 }
0x148c   : > { %v3399_v51 = vmul.f32 %v3390_v44, %v6017_v30  ;;  %v3400_v40 = vmul.f32 %v3391_v63, %v6010_v47  ;;  %v3340_v34 = vmul.f32 %v3331_v38, %v6017_v30  ;;  %v3212_v8 = vsel %vm7305_vm14, %v6755_v0, %v6798_v3  ;;  %vm7312_vm14 = vmmov %vm7309_vm11 }
0x148d   : > { %v3209_v14 = vpop.permute.xlu0 %3208 }
0x148e   : > { %v3213_v44 = vsel %vm7306_vm12, %v6798_v3, %v3209_v14  ;;  %v3214_v63 = vsel %vm7307_vm0, %v3209_v14, %v3211_v56  ;;  %vm7313_vm12 = vmmov %vm7309_vm11 }
0x148f   : > { %v3223_v0 = vmul.f32 %v3214_v63, %v6010_v47 }
0x1493   : > { %4649 = vrot.lane.b32.xlu0 %v4648_v25, %s4723_s10  ;;  %4689 = vrot.lane.b32.xlu2 %v4688_v13, %s4728_s29  ;;  %v4673_v25 = vpack.i.bf16 %v3400_v40, %v3399_v51 }
0x1495   : > { %v6840_v62 = vpop.permute.xlu0 %3267 }
0x1496   : > { %v3272_v3 = vsel %vm344_vm1, %v6804_v23, %v6840_v62 }
0x149b   : > { %4659 = vrot.lane.b32.xlu0 %v4658_v41, %s4726_s19  ;;  %3533 = vrot.lane.b32.xlu2 %v3519_v12, %s4723_s10  ;;  %v3889_v12 = vld [vmem:[%s7089_s5] sm:$0xff] }
0x149d   : > { %v3329_v60 = vpop.permute.xlu0 %3328 }
0x149e   : > { %v3332_v17 = vsel %vm7304_vm13, %v6736_v48, %v3329_v60  ;;  %v3221_v48 = vmul.f32 %v3212_v8, %v6015_v15  ;;  %v3222_v15 = vmul.f32 %v3213_v44, %v6017_v30  ;;  %vm7311_vm13 = vmmov %vm7307_vm0  ;;  %vm7314_vm0 = vcmask 465920  }
0x149f   : > { %v3341_v9 = vmul.f32 %v3332_v17, %v6010_v47 }
0x14a0   : > { %v4678_v18 = vpack.i.bf16 %v3221_v48, %v3220_v7 }
0x14a1   : > { %v4663_v13 = vpack.i.bf16 %v3341_v9, %v3340_v34 }
0x14a3   : > { %4674 = vrot.lane.b32.xlu0 %v4673_v25, %s4725_s16  ;;  %4664 = vrot.lane.b32.xlu1 %v4663_v13, %s4726_s19  ;;  %v3281_v25 = vmul.f32 %v3272_v3, %v6017_v30 }
0x14a4   : > { %3238 = vrot.lane.b32.xlu2 %v3224_v45, %s4727_s26  ;;  %v4683_v45 = vpack.i.bf16 %v3223_v0, %v3222_v15 }
0x14a5   : > { %v3270_v4 = vpop.permute.xlu0 %3269 }
0x14a6   : > { %v3273_v15 = vsel %vm344_vm1, %v6840_v62, %v3270_v4 }
0x14a7   : > { %v3282_v0 = vmul.f32 %v3273_v15, %v6010_v47 }
0x14a9   : > { %v4610_v41 = vpop.permute.xlu1 %4609 }
0x14aa   : > { %v4612_v38 = vunpack.i.h.bf16 %v4610_v41  ;;  %v4611_v51 = vunpack.i.l.bf16 %v4610_v41 }
0x14ab   : > { %4679 = vrot.lane.b32.xlu0 %v4678_v18, %s4727_s26  ;;  %3592 = vrot.lane.b32.xlu1 %v3578_v39, %s4722_s7 }
0x14ac   : > { %3892 = vperm.xlu2 %4442, %v3889_v12   ;;  %v3712_v33 = vsel %vm7308_vm3, %v4611_v51, %v4612_v38  ;;  %v3342_v51 = vmul.f32 0.0, %v3329_v60  ;;  %v3165_v60 = vmul.f32 0.0, %v6683_v32 }
0x14ad   : > { %v4615_v42 = vpop.permute.xlu2 %4614  ;;  %v3885_v17 = vpack.c.bf16 %v3712_v33, %v3712_v33 }
0x14ae   : > { %v4617_v14 = vunpack.i.h.bf16 %v4615_v42  ;;  %v4616_v40 = vunpack.i.l.bf16 %v4615_v42  ;;  %v3283_v42 = vmul.f32 0.0, %v3270_v4 }
0x14af   : > { %v3905_v34 = vsel %vm7309_vm11, %v3885_v17, 0  ;;  %v3401_v17 = vmul.f32 0.0, %v6844_v29 }
0x14b0   : > { %3931 = vmatpush.bf16.msra.mxu1 %v3905_v34  ;;  %v3713_v56 = vsel %vm7310_vm15, %v4612_v38, %v4616_v40  ;;  %v3714_v9 = vsel %vm7311_vm13, %v4616_v40, %v4617_v14  ;;  %v3460_v38 = vmul.f32 0.0, %v6779_v22  ;;  %v4693_v3 = vpack.i.bf16 %v3283_v42, %v3282_v0  ;;  %vm7316_vm15 = vmmov %vm7314_vm0 }
0x14b1   : > { %v4620_v13 = vpop.permute.xlu0 %4619  ;;  %v3886_v8 = vpack.c.bf16 %v3713_v56, %v3713_v56  ;;  %v3887_v48 = vpack.c.bf16 %v3714_v9, %v3714_v9  ;;  %v3155_v22 = vsel %vm860_vm10, %v6663_v57, %v6683_v32  ;;  %vm7315_vm10 = vmmov %vm7314_vm0 }
0x14b2   : > { %v4622_v39 = vunpack.i.h.bf16 %v4620_v13  ;;  %v4621_v18 = vunpack.i.l.bf16 %v4620_v13  ;;  %v3164_v62 = vmul.f32 %v3155_v22, %v6010_v47  ;;  %vm7317_vm13 = vmmov %vm7314_vm0 }
0x14b3   : > { %3293 = vrot.lane.b32.xlu0 %v3281_v25, %s4728_s29  ;;  %4684 = vrot.lane.b32.xlu1 %v4683_v45, %s4727_s26  ;;  %v3908_v23 = vsel %vm7312_vm14, %v3886_v8, 0  ;;  %v3911_v7 = vsel %vm7313_vm12, %v3887_v48, 0 }
0x14b4   : > { %3957 = vmatpush.bf16.msra.mxu0 %v3908_v23  ;;  %3983 = vmatpush.bf16.msrb.mxu3 %v3911_v7  ;;  %v3594_v30 = vsel %vm7314_vm0, %v4621_v18, %v4622_v39  ;;  %v4698_v34 = vpack.i.bf16 %v3165_v60, %v3164_v62 }
0x14b5   : > { %v4630_v41 = vpop.permute.xlu2 %4629 }
0x14b6   : > { %v4632_v12 = vunpack.i.h.bf16 %v4630_v41  ;;  %v4631_v44 = vunpack.i.l.bf16 %v4630_v41 }
0x14b8   : > { %v3653_v63 = vsel %vm344_vm1, %v4631_v44, %v4632_v12 }
0x14b9   : > { %v3881_v33 = vpack.c.bf16 %v3653_v63, %v3594_v30 }
0x14bb   : > { %3356 = vrot.lane.b32.xlu0 %v3342_v51, %s4726_s19  ;;  %3474 = vrot.lane.b32.xlu1 %v3460_v38, %s4724_s13  ;;  %s251_s13 = scalar_lea.vmem %s7090_s6, %s4154_s20 }
0x14bc   : > { %3932 = vmatpush.bf16.msra.mxu1 %v3881_v33 }
0x14c3   : > { %4694 = vrot.lane.b32.xlu0 %v4693_v3, %s4728_s29  ;;  %3415 = vrot.lane.b32.xlu1 %v3401_v17, %s4725_s16 }
0x14c5   : > { %v6909_v40 = vpop.permute.xlu2 %4644 }
0x14c6   : > { %v4647_v30 = vunpack.i.h.bf16 %v6909_v40  ;;  %v4646_v63 = vunpack.i.l.bf16 %v6909_v40  ;;  %v7326_v40 = vpack.c.bf16 %v6315_v21, %v6295_v54  ;;  %v7329_v54 = vld [vmem:[#allocation4_spill] sm:$0xff] }
0x14c7   : > { %v7330_v21 = vpack.c.bf16 %v6393_v31, %v7329_v54  ;;  %v7335_v31 = vld [vmem:[#allocation12_spill] sm:$0xff] }
0x14cb   : > { %4699 = vrot.lane.b32.xlu1 %v4698_v34, %s4729_s15 }
0x14cd   : > { %v3711_v4 = vpop.permute.xlu2 %3710 }
0x14ce   : > { %v3715_v29 = vsel %vm7308_vm3, %v4617_v14, %v3711_v4 }
0x14cf   : > { %v3888_v56 = vpack.c.bf16 %v3715_v29, %v3715_v29 }
0x14d1   : > { %v3914_v9 = vsel %vm7309_vm11, %v3888_v56, 0 }
0x14d2   : > { %4009 = vmatpush.bf16.msrb.mxu2 %v3914_v9 }
0x14d5   : > { %v6914_v57 = vpop.f32.mrf.mxu3  ;;  %v6916_v45 = vpop.f32.mrf.mxu2 }
0x14dd   : > { %v3927_v47 = vpop.f32.mrf.mxu3  ;;  %v3953_v32 = vpop.f32.mrf.mxu2 }
0x14de   : > { %v4670_v22 = vpop.permute.xlu2 %4669 }
0x14e1   : > { %v6918_v25 = vpop.permute.xlu1 %4624 }
0x14e2   : > { %v4627_v48 = vunpack.i.h.bf16 %v6918_v25  ;;  %v4626_v23 = vunpack.i.l.bf16 %v6918_v25 }
0x14e4   : > { %v3595_v38 = vsel %vm7315_vm10, %v4622_v39, %v4626_v23  ;;  %v3596_v33 = vsel %vm7316_vm15, %v4626_v23, %v4627_v48  ;;  %v4672_v23 = vunpack.i.h.bf16 %v4670_v22 }
0x14e9   : > { %v4640_v13 = vpop.permute.xlu1 %4639 }
0x14ea   : > { %v4642_v3 = vunpack.i.h.bf16 %v4640_v13  ;;  %v4641_v39 = vunpack.i.l.bf16 %v4640_v13 }
0x14ec   : > { %v3476_v29 = vsel %vm530_vm4, %v4641_v39, %v4642_v3  ;;  %v3477_v9 = vsel %vm530_vm4, %v4642_v3, %v4646_v63 }
0x14f9   : > { %v6920_v8 = vpop.permute.xlu1 %4654 }
0x14fa   : > { %v4657_v7 = vunpack.i.h.bf16 %v6920_v8  ;;  %v4656_v18 = vunpack.i.l.bf16 %v6920_v8 }
0x14fc   : > { %v3537_v17 = vsel %vm468_vm2, %v4656_v18, %v4657_v7 }
0x14fd   : > { %v6924_v14 = vpop.permute.xlu0 %4634 }
0x14fe   : > { %v4637_v41 = vunpack.i.h.bf16 %v6924_v14  ;;  %v4636_v44 = vunpack.i.l.bf16 %v6924_v14 }
0x1500   : > { %v3654_v51 = vsel %vm344_vm1, %v4632_v12, %v4636_v44  ;;  %v3655_v15 = vsel %vm344_vm1, %v4636_v44, %v4637_v41  ;;  %v3478_v12 = vsel %vm530_vm4, %v4646_v63, %v4647_v30  ;;  %v4671_v44 = vunpack.i.l.bf16 %v4670_v22 }
0x1501   : > { %v3882_v0 = vpack.c.bf16 %v3654_v51, %v3595_v38  ;;  %v3883_v42 = vpack.c.bf16 %v3655_v15, %v3596_v33  ;;  %v3879_v60 = vpack.c.bf16 %v3537_v17, %v3478_v12  ;;  %v3652_v15 = vpop.permute.xlu2 %3651 }
0x1503   : > { %3958 = vmatpush.bf16.msra.mxu0 %v3882_v0  ;;  %3984 = vmatpush.bf16.msrb.mxu3 %v3883_v42  ;;  %v3417_v42 = vsel %vm497_vm5, %v4671_v44, %v4672_v23 }
0x1505   : > { %v4650_v62 = vpop.permute.xlu0 %4649 }
0x1506   : > { %v4652_v34 = vunpack.i.h.bf16 %v4650_v62  ;;  %v4651_v4 = vunpack.i.l.bf16 %v4650_v62 }
0x1507   : > { %3985 = vmatpush.bf16.msrb.mxu3 %v3879_v60 }
0x1508   : > { %v3535_v56 = vsel %vm468_vm2, %v4651_v4, %v4652_v34  ;;  %v3536_v47 = vsel %vm468_vm2, %v4652_v34, %v4656_v18 }
0x1509   : > { %v3877_v32 = vpack.c.bf16 %v3535_v56, %v3476_v29  ;;  %v3878_v13 = vpack.c.bf16 %v3536_v47, %v3477_v9  ;;  %v4690_v29 = vpop.permute.xlu2 %4689 }
0x150a   : > { %v4692_v47 = vunpack.i.h.bf16 %v4690_v29 }
0x150b   : > { %3933 = vmatpush.bf16.msra.mxu1 %v3877_v32  ;;  %3959 = vmatpush.bf16.msra.mxu0 %v3878_v13  ;;  %v4691_v32 = vunpack.i.l.bf16 %v4690_v29  ;;  %v7322_v29 = vpack.c.bf16 %v6745_v58, %v6652_v53  ;;  %v7327_v53 = vpack.c.bf16 %v6444_v2, %v6447_v20 }
0x150d   : > { %v4660_v38 = vpop.permute.xlu0 %4659 }
0x150e   : > { %v4662_v51 = vunpack.i.h.bf16 %v4660_v38  ;;  %v4661_v33 = vunpack.i.l.bf16 %v4660_v38 }
0x1510   : > { %v3358_v0 = vsel %vm435_vm6, %v4661_v33, %v4662_v51 }
0x1511   : > { %v3873_v17 = vpack.c.bf16 %v3417_v42, %v3358_v0 }
0x1513   : > { %3934 = vmatpush.bf16.msra.mxu1 %v3873_v17  ;;  %v3299_v17 = vsel %vm373_vm8, %v4691_v32, %v4692_v47 }
0x1515   : > { %v6952_v39 = vpop.permute.xlu0 %4674  ;;  %v4665_v63 = vpop.permute.xlu1 %4664 }
0x1516   : > { %v4677_v18 = vunpack.i.h.bf16 %v6952_v39  ;;  %v4676_v3 = vunpack.i.l.bf16 %v6952_v39  ;;  %v4667_v12 = vunpack.i.h.bf16 %v4665_v63  ;;  %v4666_v62 = vunpack.i.l.bf16 %v4665_v63 }
0x1517   : > { %v3897_v63 = vunpack.c.h.b16 %v6772_v6  ;;  %v3534_v6 = vpop.permute.xlu2 %3533 }
0x1518   : > { %v3359_v22 = vsel %vm435_vm6, %v4662_v51, %v4666_v62  ;;  %v3418_v60 = vsel %vm497_vm5, %v4672_v23, %v4676_v3  ;;  %v3360_v34 = vsel %vm435_vm6, %v4666_v62, %v4667_v12  ;;  %v3419_v4 = vsel %vm497_vm5, %v4676_v3, %v4677_v18 }
0x1519   : > { %v3874_v56 = vpack.c.bf16 %v3418_v60, %v3359_v22  ;;  %v3875_v9 = vpack.c.bf16 %v3419_v4, %v3360_v34  ;;  %v3656_v23 = vsel %vm344_vm1, %v4637_v41, %v3652_v15  ;;  %v6969_v22 = vpack.c.b16 %v3897_v63, %v3897_v63  ;;  %v7341_v63 = vld [vmem:[#allocation11_spill] sm:$0xff] }
0x151a   : > { %v7319_v41 = vpack.c.bf16 %v6500_v5, %v6478_v55  ;;  %vm7320_vm1 = vcmask 719872   ;;  %v7321_v34 = vpack.c.bf16 %v6427_v19, %v6430_v1  ;;  %v3538_v55 = vsel %vm468_vm2, %v4657_v7, %v3534_v6  ;;  %v7346_v6 = vld [vmem:[#allocation15_spill] sm:$0xff] }
0x151b   : > { %3960 = vmatpush.bf16.msra.mxu0 %v3874_v56  ;;  %3986 = vmatpush.bf16.msrb.mxu3 %v3875_v9  ;;  %v7323_v56 = vpack.c.bf16 %v6390_v49, %v6364_v26  ;;  %v7324_v19 = vpack.c.bf16 %v6497_v36, %v6474_v43  ;;  %vm7325_vm14 = vmmov %vm7320_vm1  ;;  %vm7345_vm2 = vcmask 982016  }
0x151d   : > { %v4680_v13 = vpop.permute.xlu0 %4679  ;;  %v3593_v44 = vpop.permute.xlu1 %3592 }
0x151e   : > { %v4682_v38 = vunpack.i.h.bf16 %v4680_v13  ;;  %v4681_v33 = vunpack.i.l.bf16 %v4680_v13  ;;  %v3597_v51 = vsel %vm7317_vm13, %v4627_v48, %v3593_v44  ;;  %v7318_v48 = vpack.c.bf16 %v6722_v35, %v6719_v10  ;;  %v7331_v13 = vld [vmem:[#allocation10_spill] sm:$0xff]  ;;  %v7334_v44 = vld [vmem:[#allocation9_spill] sm:$0xff] }
0x151f   : > { %v3884_v0 = vpack.c.bf16 %v3656_v23, %v3597_v51 }
0x1520   : > { %v3240_v42 = vsel %vm311_vm7, %v4681_v33, %v4682_v38 }
0x1521   : > { %4010 = vmatpush.bf16.msrb.mxu2 %v3884_v0  ;;  %v3869_v39 = vpack.c.bf16 %v3299_v17, %v3240_v42  ;;  %v7337_v0 = vld [vmem:[#allocation17_spill] sm:$0xff]  ;;  %v7338_v42 = vld [vmem:[#allocation18_spill] sm:$0xff] }
0x1522   : > { %v7339_v17 = vpack.c.bf16 %v7337_v0, %v7338_v42 }
0x1523   : > { %3935 = vmatpush.bf16.msra.mxu1 %v3869_v39  ;;  %v7340_v39 = vld [vmem:[#allocation6_spill] sm:$0xff] }
0x1525   : > { %v3294_v3 = vpop.permute.xlu0 %3293  ;;  %v4685_v62 = vpop.permute.xlu1 %4684 }
0x1526   : > { %v4686_v25 = vunpack.i.l.bf16 %v4685_v62  ;;  %v3300_v14 = vsel %vm373_vm8, %v4692_v47, %v3294_v3  ;;  %v4687_v1 = vunpack.i.h.bf16 %v4685_v62  ;;  %v7343_v62 = vunpack.i.h.bf16 %v6640_v27 }
0x1527   : > { %3936 = vmatpush.bf16.msra.mxu1 %v7318_v48 }
0x1528   : > { %v3241_v15 = vsel %vm311_vm7, %v4682_v38, %v4686_v25  ;;  %v3242_v2 = vsel %vm311_vm7, %v4686_v25, %v4687_v1  ;;  %v7336_v38 = vpack.c.bf16 %v7334_v44, %v7335_v31  ;;  %v7344_v25 = vunpack.i.l.bf16 %v6640_v27  ;;  %v4711_v31 = vld [vmem:[%s4844_s25 + $0x18] sm:$0xff] }
0x1529   : > { %v3870_v60 = vpack.c.bf16 %v3300_v14, %v3241_v15  ;;  %v7350_v27 = vunpack.i.h.bf16 %v6116_v52  ;;  %v7358_v52 = vld [vmem:[#allocation8_spill] sm:$0xff] }
0x152a   : > { %4148 = vmatmul.msk.bf16.vlgmr.msra.gmra.mxu1 %vm7320_vm1, %v6969_v22  ;;  %v3124_v48 = vsel %vm7345_vm2, %v7344_v25, %v7343_v62 }
0x152b   : > { %3968 = vmatpush.bf16.msrb.mxu1 %v7319_v41  ;;  %3961 = vmatpush.bf16.msra.mxu0 %v3870_v60 }
0x152d   : > { %v3357_v10 = vpop.permute.xlu0 %3356  ;;  %v3475_v35 = vpop.permute.xlu1 %3474 }
0x152e   : > { %v3479_v4 = vsel %vm530_vm4, %v4647_v30, %v3475_v35  ;;  %v3361_v49 = vsel %vm435_vm6, %v4667_v12, %v3357_v10  ;;  %v7328_v30 = vpack.c.bf16 %v6266_v50, %v6223_v59  ;;  %v3239_v12 = vpop.permute.xlu2 %3238  ;;  %v7332_v59 = vld [vmem:[#allocation14_spill] sm:$0xff]  ;;  %v7348_v35 = vld [vmem:[#allocation13_spill] sm:$0xff] }
0x152f   : > { %3969 = vmatpush.bf16.msrb.mxu1 %v7321_v34  ;;  %v3880_v5 = vpack.c.bf16 %v3538_v55, %v3479_v4  ;;  %3962 = vmatpush.bf16.msra.mxu0 %v7322_v29  ;;  %v7333_v50 = vpack.c.bf16 %v7331_v13, %v7332_v59  ;;  %v7347_v34 = vunpack.i.h.bf16 %v6166_v24  ;;  %v7349_v55 = vld [vmem:[#allocation16_spill] sm:$0xff]  ;;  %v7352_v29 = vld [vmem:[#allocation5_spill] sm:$0xff] }
0x1531   : > { %4011 = vmatpush.bf16.msrb.mxu2 %v3880_v5  ;;  %v2454_v10 = vsel %vm530_vm4, %v7347_v34, %v7346_v6  ;;  %v2395_v5 = vsel %vm497_vm5, %v7350_v27, %v7349_v55  ;;  %vm7356_vm4 = vmmov %vm7320_vm1 }
0x1532   : > { %4149 = vmatmul.msk.bf16.vlgmr.msra.gmra.mxu0 %vm7325_vm14, %v6969_v22  ;;  %v3844_v4 = vpack.c.bf16 %v7348_v35, %v2454_v10 }
0x1533   : > { %3970 = vmatpush.bf16.msrb.mxu1 %v7323_v56  ;;  %3994 = vmatpush.bf16.msrb.mxu0 %v7324_v19  ;;  %v7355_v19 = vunpack.i.h.bf16 %v6091_v11  ;;  %v7360_v11 = vld [vmem:[#allocation7_spill] sm:$0xff] }
0x1535   : > { %v4695_v58 = vpop.permute.xlu0 %4694  ;;  %v3416_v26 = vpop.permute.xlu1 %3415 }
0x1536   : > { %v4697_v8 = vunpack.i.h.bf16 %v4695_v58  ;;  %v4696_v43 = vunpack.i.l.bf16 %v4695_v58  ;;  %v3420_v36 = vsel %vm497_vm5, %v4677_v18, %v3416_v26  ;;  %v3243_v18 = vsel %vm311_vm7, %v4687_v1, %v3239_v12  ;;  %vm7357_vm5 = vmmov %vm7320_vm1 }
0x1537   : > { %3971 = vmatpush.bf16.msrb.mxu1 %v7326_v40  ;;  %3995 = vmatpush.bf16.msrb.mxu0 %v7327_v53  ;;  %v3876_v7 = vpack.c.bf16 %v3420_v36, %v3361_v49  ;;  %v7359_v40 = vunpack.i.h.bf16 %v6059_v61  ;;  %v7361_v58 = vunpack.i.h.bf16 %v6033_v46  ;;  %v4708_v61 = vld [vmem:[%s4844_s25] sm:$0xff] }
0x1538   : > { %v3301_v20 = vsel %vm373_vm8, %v3294_v3, %v4696_v43  ;;  %v3302_v9 = vsel %vm373_vm8, %v4696_v43, %v4697_v8  ;;  %v7342_v3 = vpack.c.bf16 %v7340_v39, %v7341_v63  ;;  %v3893_v8 = vpop.permute.xlu2 %3892 }
0x1539   : > { %4012 = vmatpush.bf16.msrb.mxu2 %v3876_v7  ;;  %v3871_v47 = vpack.c.bf16 %v3301_v20, %v3242_v2  ;;  %v3872_v32 = vpack.c.bf16 %v3302_v9, %v3243_v18  ;;  %v2277_v53 = vsel %vm373_vm8, %v7359_v40, %v7358_v52  ;;  %v2218_v26 = vsel %vm311_vm7, %v7361_v58, %v7360_v11 }
0x153a   : > { %v3836_v49 = vpack.c.bf16 %v2277_v53, %v2218_v26  ;;  %v3952_v7 = vadd.f32 %v6916_v45, %v3893_v8 }
0x153b   : > { %3972 = vmatpush.bf16.msrb.mxu1 %v7328_v30  ;;  %3996 = vmatpush.bf16.msrb.mxu0 %v7330_v21 }
0x153c   : > { %3987 = vmatpush.bf16.msrb.mxu3 %v3871_v47 }
0x153d   : > { %v4700_v33 = vpop.permute.xlu1 %4699  ;;  %4013 = vmatpush.bf16.msrb.mxu2 %v3872_v32  ;;  %v4710_v32 = vld [vmem:[%s4844_s25 + $0x10] sm:$0xff] }
0x153e   : > { %v4702_v51 = vunpack.i.h.bf16 %v4700_v33  ;;  %v4701_v23 = vunpack.i.l.bf16 %v4700_v33 }
0x153f   : > { %3973 = vmatpush.bf16.msrb.mxu1 %v7333_v50  ;;  %3997 = vmatpush.bf16.msrb.mxu0 %v7336_v38 }
0x1540   : > { %v3183_v14 = vsel %vm831_vm9, %v6741_v16, %v4701_v23  ;;  %v3184_v41 = vsel %vm831_vm9, %v4701_v23, %v4702_v51  ;;  %v7351_v16 = vld [vmem:[#allocation19_spill] sm:$0xff] }
0x1541   : > { %v3867_v15 = vpack.c.bf16 %v3183_v14, %v3124_v48  ;;  %v3868_v60 = vpack.c.bf16 %v3184_v41, %v6658_v37  ;;  %v7353_v56 = vpack.c.bf16 %v7351_v16, %v7352_v29  ;;  %v7354_v37 = vld [vmem:[#allocation20_spill] sm:$0xff] }
0x1542   : > { %v2336_v24 = vsel %vm435_vm6, %v7355_v19, %v7354_v37 }
0x1543   : > { %3974 = vmatpush.bf16.msrb.mxu1 %v7339_v17  ;;  %3998 = vmatpush.bf16.msrb.mxu0 %v7342_v3  ;;  %v3840_v1 = vpack.c.bf16 %v2395_v5, %v2336_v24 }
0x1544   : > { %3988 = vmatpush.bf16.msrb.mxu3 %v3867_v15  ;;  %4014 = vmatpush.bf16.msrb.mxu2 %v3868_v60 }
0x1547   : > { %3975 = vmatpush.bf16.msrb.mxu1 %v7353_v56  ;;  %3999 = vmatpush.bf16.msrb.mxu0 %v3844_v4 }
0x1548   : > { %4150 = vmatmul.msk.bf16.vlgmr.msrb.gmra.mxu3 %vm7356_vm4, %v6969_v22  ;;  %4151 = vmatmul.msk.bf16.vlgmr.msrb.gmra.mxu2 %vm7357_vm5, %v6969_v22  ;;  %v3926_v22 = vadd.f32 %v6914_v57, %v3893_v8 }
0x154a   : > { %3976 = vmatmul.bf16.vlgmr.msrb.gmra.mxu1 %v6775_v28 }
0x154b   : > { %4000 = vmatpush.bf16.msrb.mxu0 %v3840_v1 }
0x154f   : > { %4001 = vmatpush.bf16.msrb.mxu0 %v3836_v49 }
0x1552   : > { %4002 = vmatmul.bf16.vlgmr.msrb.gmra.mxu0 %v6775_v28  ;;  %v4709_v28 = vld [vmem:[%s4844_s25 + $0x8] sm:$0xff] }
0x15a7   : > { %v3938_v43 = vpop.f32.mrf.mxu1 }
0x15a8   : > { %v3939_v36 = vadd.f32 %v3938_v43, %v3926_v22 }
0x15aa   : > { %v4020_v46 = vadd.f32 %v4708_v61, %v3939_v36 }
0x15ac   : > { %4024 = vst [vmem:[%s251_s13] sm:$0xff] %v4020_v46 }
0x15af   : > { %v3964_v30 = vpop.f32.mrf.mxu0  ;;  %v3940_v54 = vpop.f32.mrf.mxu1 }
0x15b0   : > { %v3965_v21 = vadd.f32 %v3964_v30, %v3952_v7 }
0x15b2   : > { %v4021_v2 = vadd.f32 %v4709_v28, %v3965_v21 }
0x15b4   : > { %4025 = vst [vmem:[%s251_s13 + $0x8] sm:$0xff] %v4021_v2 }
0x15b7   : > { %v3966_v57 = vpop.f32.mrf.mxu0 }
0x15c7   : > { %v3977_v20 = vpop.f32.mrf.mxu1 }
0x15c8   : > { %v3978_v9 = vadd.f32 %v3977_v20, %v3893_v8 }
0x15cb   : > { %v3990_v12 = vpop.f32.mrf.mxu3  ;;  %v4016_v47 = vpop.f32.mrf.mxu2 }
0x15cc   : > { %v3991_v18 = vadd.f32 %v3990_v12, %v3978_v9 }
0x15ce   : > { %v4022_v13 = vadd.f32 %v4710_v32, %v3991_v18 }
0x15cf   : > { %v3979_v59 = vpop.f32.mrf.mxu1  ;;  %v4003_v50 = vpop.f32.mrf.mxu0 }
0x15d0   : > { %v4004_v44 = vadd.f32 %v4003_v50, %v3893_v8  ;;  %4026 = vst [vmem:[%s251_s13 + $0x10] sm:$0xff] %v4022_v13 }
0x15d2   : > { %v4017_v45 = vadd.f32 %v4016_v47, %v4004_v44 }
0x15d3   : > { %v3992_v33 = vpop.f32.mrf.mxu3  ;;  %v4018_v51 = vpop.f32.mrf.mxu2 }
0x15d4   : > { %v4023_v38 = vadd.f32 %v4711_v31, %v4017_v45 }
0x15d6   : > { %4027 = vst [vmem:[%s251_s13 + $0x18] sm:$0xff] %v4023_v38 }
0x15d7   : > { %v4005_v23 = vpop.f32.mrf.mxu0 }
0x15d8 PF: > { %s16_s21 = sadd.s32 1, %s4718_s21  }
0x15d9   : > { %p13_p4 = scmp.ge.s32.totalorder %s16_s21, 4  }
0x15db   :  { %15 = sbr.rel (!%p13_p4) target bundleno = 1 (0x1), region = 100 }

</bundles_post_ra>
